<compile_context>
chip_gen: v7x
topology: tpu7x:2x2x1
jax: 0.10.0
libtpu: 0.0.40
codegen_flags: <defaults>
</compile_context>

<pallas_src>
import numpy as np
import jax
import jax.numpy as jnp
from jax import lax
from jax.experimental import pallas as pl
from jax.experimental.pallas import tpu as pltpu

# ----- model hyper-parameters (QuantumEEGNet defaults) -----
F1 = 8
D = 2
F2 = 16
NUM_CLASSES = 2
N_QUBITS = 4
N_LAYERS = 2
EPS = 1e-5

# ----- input geometry -----
B = 2              # batch
H = 2              # electrode rows (conv2 kernel (2,1) collapses this to 1)
T = 128            # time samples
PAD1, K1 = 32, 64
T1 = T + 2 * PAD1 - K1 + 1      # 129  (conv1 / conv2 output width)
T1L = 256                       # lane-padded conv1 block per filter (aligned)
T2 = T1 // 4                    # 32   (after avg_pool (1,4))
PAD3, K3 = 8, 16
T2P = T2 + 2 * PAD3             # 48   (conv3 padded input width)
T3 = T2P - K3 + 1               # 33   (conv3 / conv4 output width)
T3L = 128                       # lane-padded conv3 block per tap (aligned)
T4 = T3 // 8                    # 4    (after avg_pool (1,8)) == n_qubits
NSTATE = 2 ** N_QUBITS          # 16
assert T4 == N_QUBITS


def _elu(v):
    # exact F.elu (alpha=1); clamp exp arg so unused branch never overflows
    return jnp.where(v > 0, v, jnp.exp(jnp.minimum(v, 0.0)) - 1.0)


# ---------------------------------------------------------------------------
# kernel: one program per batch sample (grid=(B,), "parallel")
# ---------------------------------------------------------------------------
def eegnet_kernel(x_ref, m1_ref, b1_ref, w2_ref, b2_ref, p4w_ref, w3_ref, b3_ref,
                  w4_ref, b4_ref, p8_ref, bit_ref, ut_ref, acat_ref, sel_ref,
                  bfc_ref, out_ref):
    f32 = jnp.float32
    bf16 = jnp.bfloat16

    # ---- conv1 (1,64) + pad(0,32) + BN1(+scale folded) + ELU: one MXU matmul ----
    x = x_ref[...].astype(bf16)                                     # (H, T)
    h1 = _elu(jnp.dot(x, m1_ref[...], preferred_element_type=f32)
              + b1_ref[...])                                        # (H, F1*T1L)

    # regroup lanes -> channel-on-sublane layout (row = f*H + h), aligned slices
    h1r = jnp.concatenate([h1[:, f * T1L:(f + 1) * T1L] for f in range(F1)],
                          axis=0)                                   # (F1*H, T1L)

    # ---- depthwise conv2 (2,1) + BN2 + ELU: one matmul (BN scale folded) ----
    h2 = _elu(jnp.dot(w2_ref[...], h1r, preferred_element_type=f32)
              + b2_ref[...])                                        # (16, T1L)

    # ---- avg_pool(1,4) + conv3 zero-pad + conv3 tap shifts: fused matrix ----
    p2w = jnp.dot(h2.astype(bf16), p4w_ref[...],
                  preferred_element_type=f32)                       # (16, K3*T3L)
    stacked = jnp.concatenate(
        [p2w[:, k * T3L:(k + 1) * T3L] for k in range(K3)], axis=0
    ).astype(bf16)                                                  # (K3*16, T3L)

    # ---- conv3 (1,16) + BN3 + ELU: one deep (16,256)@(256,128) matmul ----
    h3 = _elu(jnp.dot(w3_ref[...], stacked, preferred_element_type=f32)
              + b3_ref[...])                                        # (16, T3L)

    # ---- conv4 1x1 + BN4 + ELU ----
    h4 = _elu(jnp.dot(w4_ref[...], h3, preferred_element_type=f32)
              + b4_ref[...])                                        # (16, T3L)

    # ---- avg_pool (1,8) -> per-channel quantum input angles ----
    feat = jnp.dot(h4, p8_ref[...], preferred_element_type=f32)     # (F2, 4)

    # ---- quantum layer: exact real 4-qubit statevector simulation ----
    half = 0.5 * feat
    cth = jnp.cos(half)
    sth = jnp.sin(half)
    bits = bit_ref[...]                                             # (4, 16)
    state = jnp.ones((F2, NSTATE), f32)
    for i in range(N_QUBITS):
        sel = bits[i:i + 1, :]                                      # (1, 16)
        state = state * (cth[:, i:i + 1] * (1.0 - sel) + sth[:, i:i + 1] * sel)
    fin = jnp.dot(state, ut_ref[...], preferred_element_type=f32)   # (F2, 16)
    probs = fin * fin

    # ---- fc1 folded with PauliZ readout: tile over classes, reduce on MXU ----
    probs_t = jnp.concatenate([probs] * NUM_CLASSES, axis=1)        # (F2, C*16)
    prod = probs_t * acat_ref[...]
    colsum = jnp.dot(jnp.ones((1, F2), f32), prod,
                     preferred_element_type=f32)                    # (1, C*16)
    out_ref[...] = (jnp.dot(colsum, sel_ref[...],
                            preferred_element_type=f32) + bfc_ref[...])  # (1, C)


# ---------------------------------------------------------------------------
# parameter construction (deterministic, synthetic)
# ---------------------------------------------------------------------------
def _bits_table():
    bits = np.zeros((N_QUBITS, NSTATE), np.float32)
    for i in range(N_QUBITS):
        for n in range(NSTATE):
            bits[i, n] = (n >> (N_QUBITS - 1 - i)) & 1
    return bits


def _zsign_table():
    return np.ascontiguousarray((1.0 - 2.0 * _bits_table()).T).astype(np.float32)


def build_circuit_unitary(qw):
    """Fixed 16x16 real unitary = n_layers of [CNOT ring + RY(weights)]."""
    qw = np.asarray(qw, np.float64)

    def ry(theta):
        c, s = np.cos(theta / 2.0), np.sin(theta / 2.0)
        return np.array([[c, -s], [s, c]])

    def on_wire(mat, wire):                       # wire 0 = most significant
        full = np.array([[1.0]])
        for w in range(N_QUBITS):
            full = np.kron(full, mat if w == wire else np.eye(2))
        return full

    def cnot(ctrl, tgt):
        P = np.zeros((NSTATE, NSTATE))
        for idx in range(NSTATE):
            bts = [(idx >> (N_QUBITS - 1 - w)) & 1 for w in range(N_QUBITS)]
            if bts[ctrl]:
                bts[tgt] ^= 1
            j = sum(bit << (N_QUBITS - 1 - w) for w, bit in enumerate(bts))
            P[j, idx] = 1.0
        return P

    U = np.eye(NSTATE)
    for _layer in range(N_LAYERS):
        for k in range(N_QUBITS):
            U = cnot(k, (k + 1) % N_QUBITS) @ U
        for i in range(N_QUBITS):
            U = on_wire(ry(qw[_layer, i]), i) @ U
    return U.astype(np.float32)


def make_raw_params(key):
    ks = jax.random.split(key, 11)

    def bn_params(k, c):
        k1, k2, k3, k4 = jax.random.split(k, 4)
        gamma = 1.0 + 0.1 * jax.random.normal(k1, (c,), jnp.float32)
        beta = 0.1 * jax.random.normal(k2, (c,), jnp.float32)
        mean = 0.1 * jax.random.normal(k3, (c,), jnp.float32)
        var = 1.0 + 0.1 * jax.random.uniform(k4, (c,), jnp.float32)
        return gamma, beta, mean, var

    return {
        'w1': 0.1 * jax.random.normal(ks[0], (F1, 1, 1, K1), jnp.float32),
        'bn1': bn_params(ks[1], F1),
        'w2': 0.3 * jax.random.normal(ks[2], (F1 * D, 1, 2, 1), jnp.float32),
        'bn2': bn_params(ks[3], F1 * D),
        'w3': 0.1 * jax.random.normal(ks[4], (F1 * D, F1 * D, 1, K3), jnp.float32),
        'bn3': bn_params(ks[5], F1 * D),
        'w4': 0.2 * jax.random.normal(ks[6], (F2, F1 * D, 1, 1), jnp.float32),
        'bn4': bn_params(ks[7], F2),
        'qw': jax.random.uniform(ks[8], (N_LAYERS, N_QUBITS), jnp.float32,
                                 minval=0.0, maxval=2.0 * np.pi),
        'wfc': 0.2 * jax.random.normal(ks[9], (NUM_CLASSES, F2 * N_QUBITS), jnp.float32),
        'bfc': 0.1 * jax.random.normal(ks[10], (NUM_CLASSES,), jnp.float32),
    }


def build_kernel_args(raw):
    def fold_bn(bn):
        gamma, beta, mean, var = (np.asarray(v, np.float64) for v in bn)
        scale = gamma / np.sqrt(var + EPS)
        return scale, beta - mean * scale

    s1, sh1 = fold_bn(raw['bn1'])
    s2, sh2 = fold_bn(raw['bn2'])
    s3, sh3 = fold_bn(raw['bn3'])
    s4, sh4 = fold_bn(raw['bn4'])

    # conv1 band matrix: M1[t+k-32, f*T1L+t] = s1[f]*w1[f,k]; zero-pad folded in
    w1s = np.asarray(raw['w1'], np.float64)[:, 0, 0, :] * s1[:, None]   # (F1, K1)
    m1 = np.zeros((T, F1 * T1L), np.float64)
    for f in range(F1):
        for k in range(K1):
            tt = np.arange(T1)
            src = tt + k - PAD1
            ok = (src >= 0) & (src < T)
            m1[src[ok], f * T1L + tt[ok]] = w1s[f, k]
    b1row = np.zeros((1, F1 * T1L), np.float64)
    for f in range(F1):
        b1row[0, f * T1L:(f + 1) * T1L] = sh1[f]

    # depthwise conv2 expanded to dense (out, f*H + h), BN2 scale folded
    w2_np = np.asarray(raw['w2'], np.float64)                           # (16,1,2,1)
    w2d = np.zeros((F1 * D, F1 * H), np.float64)
    for c in range(F1 * D):
        f = c // D
        for h in range(H):
            w2d[c, f * H + h] = w2_np[c, 0, h, 0] * s2[c]
    b2col = sh2.reshape(-1, 1)

    # avg_pool(1,4) + conv3 zero-pad + K3 tap shifts fused into one matrix
    p4pad = np.zeros((T1L, T2P), np.float64)
    for m in range(T2):
        p4pad[4 * m:4 * m + 4, PAD3 + m] = 0.25
    p4w = np.zeros((T1L, K3 * T3L), np.float64)
    for k in range(K3):
        width = T2P - k
        p4w[:, k * T3L:k * T3L + width] = p4pad[:, k:]

    # conv3 merged weights (contraction over (tap, in_ch)), BN3 scale folded
    w3_np = np.asarray(raw['w3'], np.float64)[:, :, 0, :]               # (16,16,K3)
    w3cat = np.zeros((F1 * D, K3 * F1 * D), np.float64)
    for k in range(K3):
        w3cat[:, k * (F1 * D):(k + 1) * (F1 * D)] = w3_np[:, :, k] * s3[:, None]
    b3col = sh3.reshape(-1, 1)

    # conv4 1x1, BN4 folded
    w4s = np.asarray(raw['w4'], np.float64)[:, :, 0, 0] * s4[:, None]
    b4col = sh4.reshape(-1, 1)

    # avg_pool(1,8)
    p8 = np.zeros((T3L, N_QUBITS), np.float64)
    for m in range(N_QUBITS):
        p8[8 * m:8 * m + 8, m] = 0.125

    # quantum tables
    bits = _bits_table()
    zsign = _zsign_table()                                              # (16, 4)
    ut = build_circuit_unitary(raw['qw']).T                             # (16, 16)

    # fc1 folded with PauliZ readout: per-class 16x16 mats tiled along lanes
    wfc3 = np.asarray(raw['wfc'], np.float64).reshape(NUM_CLASSES, F2, N_QUBITS)
    amat = np.einsum('nq,jcq->jcn', zsign, wfc3)                        # (C, F2, 16)
    acat = np.zeros((F2, NUM_CLASSES * NSTATE), np.float64)
    sel = np.zeros((NUM_CLASSES * NSTATE, NUM_CLASSES), np.float64)
    for j in range(NUM_CLASSES):
        acat[:, j * NSTATE:(j + 1) * NSTATE] = amat[j]
        sel[j * NSTATE:(j + 1) * NSTATE, j] = 1.0
    bfc = np.asarray(raw['bfc'], np.float64).reshape(1, NUM_CLASSES)

    bf = lambda v: jnp.asarray(np.asarray(v), jnp.bfloat16)
    f32 = lambda v: jnp.asarray(np.asarray(v), jnp.float32)
    return (bf(m1), f32(b1row), f32(w2d), f32(b2col),
            bf(p4w), bf(w3cat), f32(b3col), f32(w4s), f32(b4col),
            f32(p8), f32(bits), f32(ut), f32(acat), f32(sel), f32(bfc))


# ---------------------------------------------------------------------------
# wrapper
# ---------------------------------------------------------------------------
def quantum_eegnet_forward(x, kargs):
    # x: (B, 1, H, T) float32 (PyTorch NCHW); conv1 zero-padding is folded into m1.
    x_sq = x[:, 0, :, :]                                               # (B, H, T)
    in_specs = [pl.BlockSpec((None, H, T), lambda b: (b, 0, 0))]
    in_specs += [pl.BlockSpec(a.shape, lambda b: (0, 0)) for a in kargs]
    out = pl.pallas_call(
        eegnet_kernel,
        out_shape=jax.ShapeDtypeStruct((B, 1, NUM_CLASSES), jnp.float32),
        grid=(B,),
        in_specs=in_specs,
        out_specs=pl.BlockSpec((None, 1, NUM_CLASSES), lambda b: (b, 0, 0)),
        compiler_params=pltpu.CompilerParams(
            dimension_semantics=("parallel",)),
    )(x_sq, *kargs)
    return out[:, 0, :]


# ---------------------------------------------------------------------------
# pure-JAX reference (for self-check of the Pallas kernel)
# ---------------------------------------------------------------------------
def reference_forward(x, raw):
    def bn(v, p):
        gamma, beta, mean, var = p
        inv = gamma / jnp.sqrt(var + EPS)
        return (v - mean[None, :, None, None]) * inv[None, :, None, None] \
            + beta[None, :, None, None]

    dn = ('NCHW', 'OIHW', 'NCHW')
    hp = lax.Precision.HIGHEST

    y = lax.conv_general_dilated(x, raw['w1'], (1, 1), ((0, 0), (PAD1, PAD1)),
                                 dimension_numbers=dn, precision=hp)
    y = _elu(bn(y, raw['bn1']))
    y = lax.conv_general_dilated(y, raw['w2'], (1, 1), ((0, 0), (0, 0)),
                                 dimension_numbers=dn, feature_group_count=F1,
                                 precision=hp)
    y = _elu(bn(y, raw['bn2']))
    w = (y.shape[-1] // 4) * 4
    y = y[..., :w].reshape(y.shape[0], y.shape[1], y.shape[2], w // 4, 4).mean(-1)
    y = lax.conv_general_dilated(y, raw['w3'], (1, 1), ((0, 0), (PAD3, PAD3)),
                                 dimension_numbers=dn, precision=hp)
    y = _elu(bn(y, raw['bn3']))
    y = lax.conv_general_dilated(y, raw['w4'], (1, 1), ((0, 0), (0, 0)),
                                 dimension_numbers=dn, precision=hp)
    y = _elu(bn(y, raw['bn4']))
    w = (y.shape[-1] // 8) * 8
    y = y[..., :w].reshape(y.shape[0], y.shape[1], y.shape[2], w // 8, 8).mean(-1)
    feat = y.reshape(y.shape[0], y.shape[1], -1)                        # (B, F2, 4)

    bits = jnp.asarray(_bits_table())
    zsign = jnp.asarray(_zsign_table())
    U = jnp.asarray(build_circuit_unitary(raw['qw']))
    half = 0.5 * feat
    state = jnp.ones(feat.shape[:2] + (NSTATE,), jnp.float32)
    for i in range(N_QUBITS):
        sel = bits[i]
        state = state * (jnp.cos(half[..., i:i + 1]) * (1.0 - sel)
                         + jnp.sin(half[..., i:i + 1]) * sel)
    fin = jnp.einsum('bcn,mn->bcm', state, U, precision=hp)
    expv = jnp.einsum('bcm,mq->bcq', fin * fin, zsign, precision=hp)
    q = expv.reshape(expv.shape[0], -1)                                 # (B, F2*n_qubits)
    return jnp.dot(q, raw['wfc'].T, precision=hp) + raw['bfc']


if __name__ == "__main__":
    key = jax.random.PRNGKey(0)
    kx, kp = jax.random.split(key)
    x = jax.random.normal(kx, (B, 1, H, T), jnp.float32)

    raw = make_raw_params(kp)
    kargs = build_kernel_args(raw)

    out = jax.jit(quantum_eegnet_forward)(x, kargs)
    out = jax.block_until_ready(out)

    ref = reference_forward(x, raw)
    np.testing.assert_allclose(np.asarray(out), np.asarray(ref),
                               rtol=2e-2, atol=2e-2)
    print("KERNEL_OK")
</pallas_src>

<mosaic_0001>
module attributes {stable_mosaic.version = 11 : i64} {
  func.func @eegnet_kernel(%arg0: i32, %arg1: memref<1x2x128xf32, #tpu.memory_space<vmem>>, %arg2: memref<128x2048xbf16, #tpu.memory_space<vmem>>, %arg3: memref<1x2048xf32, #tpu.memory_space<vmem>>, %arg4: memref<16x16xf32, #tpu.memory_space<vmem>>, %arg5: memref<16x1xf32, #tpu.memory_space<vmem>>, %arg6: memref<256x2048xbf16, #tpu.memory_space<vmem>>, %arg7: memref<16x256xbf16, #tpu.memory_space<vmem>>, %arg8: memref<16x1xf32, #tpu.memory_space<vmem>>, %arg9: memref<16x16xf32, #tpu.memory_space<vmem>>, %arg10: memref<16x1xf32, #tpu.memory_space<vmem>>, %arg11: memref<128x4xf32, #tpu.memory_space<vmem>>, %arg12: memref<4x16xf32, #tpu.memory_space<vmem>>, %arg13: memref<16x16xf32, #tpu.memory_space<vmem>>, %arg14: memref<16x32xf32, #tpu.memory_space<vmem>>, %arg15: memref<32x2xf32, #tpu.memory_space<vmem>>, %arg16: memref<1x2xf32, #tpu.memory_space<vmem>>, %arg17: memref<1x1x2xf32, #tpu.memory_space<vmem>>) attributes {dimension_semantics = [#tpu.dimension_semantics<parallel>], iteration_bounds = array<i64: 2>, scalar_prefetch = 0 : i64, scratch_operands = 0 : i64, tpu.core_type = #tpu.core_type<tc>, window_params = [{transform_indices = @transform_0, window_bounds = array<i64: 1, 2, 128>}, {pipeline_mode = #tpu.pipeline_mode<synchronous>, transform_indices = @transform_1, window_bounds = array<i64: 128, 2048>}, {pipeline_mode = #tpu.pipeline_mode<synchronous>, transform_indices = @transform_2, window_bounds = array<i64: 1, 2048>}, {pipeline_mode = #tpu.pipeline_mode<synchronous>, transform_indices = @transform_3, window_bounds = array<i64: 16, 16>}, {pipeline_mode = #tpu.pipeline_mode<synchronous>, transform_indices = @transform_4, window_bounds = array<i64: 16, 1>}, {pipeline_mode = #tpu.pipeline_mode<synchronous>, transform_indices = @transform_5, window_bounds = array<i64: 256, 2048>}, {pipeline_mode = #tpu.pipeline_mode<synchronous>, transform_indices = @transform_6, window_bounds = array<i64: 16, 256>}, {pipeline_mode = #tpu.pipeline_mode<synchronous>, transform_indices = @transform_7, window_bounds = array<i64: 16, 1>}, {pipeline_mode = #tpu.pipeline_mode<synchronous>, transform_indices = @transform_8, window_bounds = array<i64: 16, 16>}, {pipeline_mode = #tpu.pipeline_mode<synchronous>, transform_indices = @transform_9, window_bounds = array<i64: 16, 1>}, {pipeline_mode = #tpu.pipeline_mode<synchronous>, transform_indices = @transform_10, window_bounds = array<i64: 128, 4>}, {pipeline_mode = #tpu.pipeline_mode<synchronous>, transform_indices = @transform_11, window_bounds = array<i64: 4, 16>}, {pipeline_mode = #tpu.pipeline_mode<synchronous>, transform_indices = @transform_12, window_bounds = array<i64: 16, 16>}, {pipeline_mode = #tpu.pipeline_mode<synchronous>, transform_indices = @transform_13, window_bounds = array<i64: 16, 32>}, {pipeline_mode = #tpu.pipeline_mode<synchronous>, transform_indices = @transform_14, window_bounds = array<i64: 32, 2>}, {pipeline_mode = #tpu.pipeline_mode<synchronous>, transform_indices = @transform_15, window_bounds = array<i64: 1, 2>}, {transform_indices = @transform_16, window_bounds = array<i64: 1, 1, 2>}]} {
    %c0 = arith.constant 0 : index
    %c0_0 = arith.constant 0 : index
    %c0_1 = arith.constant 0 : index
    %0 = vector.load %arg1[%c0, %c0_0, %c0_1] : memref<1x2x128xf32, #tpu.memory_space<vmem>>, vector<1x2x128xf32>
    %1 = vector.shape_cast %0 : vector<1x2x128xf32> to vector<2x128xf32>
    %2 = arith.truncf %1 : vector<2x128xf32> to vector<2x128xbf16>
    %c0_2 = arith.constant 0 : index
    %c0_3 = arith.constant 0 : index
    %3 = vector.load %arg2[%c0_2, %c0_3] : memref<128x2048xbf16, #tpu.memory_space<vmem>>, vector<128x2048xbf16>
    %cst = arith.constant dense<0.000000e+00> : vector<2x2048xf32>
    %4 = tpu.matmul %2, %3, %cst {dimension_numbers = #tpu.dot_dimension_numbers<[1], [0], [0], [1], [0, 0, 1, 1], [], []>} : vector<2x128xbf16>, vector<128x2048xbf16>, vector<2x2048xf32> -> vector<2x2048xf32>
    %c0_4 = arith.constant 0 : index
    %c0_5 = arith.constant 0 : index
    %5 = vector.load %arg3[%c0_4, %c0_5] : memref<1x2048xf32, #tpu.memory_space<vmem>>, vector<1x2048xf32>
    %6 = vector.broadcast %5 : vector<1x2048xf32> to vector<2x2048xf32>
    %7 = arith.addf %4, %6 : vector<2x2048xf32>
    %cst_6 = arith.constant 0.000000e+00 : f32
    %8 = vector.broadcast %cst_6 : f32 to vector<2x2048xf32>
    %9 = arith.cmpf ogt, %7, %8 : vector<2x2048xf32>
    %cst_7 = arith.constant 0.000000e+00 : f32
    %10 = vector.broadcast %cst_7 : f32 to vector<2x2048xf32>
    %11 = arith.minimumf %7, %10 : vector<2x2048xf32>
    %12 = math.exp %11 : vector<2x2048xf32>
    %cst_8 = arith.constant 1.000000e+00 : f32
    %13 = vector.broadcast %cst_8 : f32 to vector<2x2048xf32>
    %14 = arith.subf %12, %13 : vector<2x2048xf32>
    %15 = arith.select %9, %7, %14 : vector<2x2048xi1>, vector<2x2048xf32>
    %16 = vector.extract_strided_slice %15 {offsets = [0, 0], sizes = [2, 256], strides = [1, 1]} : vector<2x2048xf32> to vector<2x256xf32>
    %17 = vector.extract_strided_slice %15 {offsets = [0, 256], sizes = [2, 256], strides = [1, 1]} : vector<2x2048xf32> to vector<2x256xf32>
    %18 = vector.extract_strided_slice %15 {offsets = [0, 512], sizes = [2, 256], strides = [1, 1]} : vector<2x2048xf32> to vector<2x256xf32>
    %19 = vector.extract_strided_slice %15 {offsets = [0, 768], sizes = [2, 256], strides = [1, 1]} : vector<2x2048xf32> to vector<2x256xf32>
    %20 = vector.extract_strided_slice %15 {offsets = [0, 1024], sizes = [2, 256], strides = [1, 1]} : vector<2x2048xf32> to vector<2x256xf32>
    %21 = vector.extract_strided_slice %15 {offsets = [0, 1280], sizes = [2, 256], strides = [1, 1]} : vector<2x2048xf32> to vector<2x256xf32>
    %22 = vector.extract_strided_slice %15 {offsets = [0, 1536], sizes = [2, 256], strides = [1, 1]} : vector<2x2048xf32> to vector<2x256xf32>
    %23 = vector.extract_strided_slice %15 {offsets = [0, 1792], sizes = [2, 256], strides = [1, 1]} : vector<2x2048xf32> to vector<2x256xf32>
    %24 = tpu.concatenate %16, %17, %18, %19, %20, %21, %22, %23 in 0 : vector<2x256xf32>, vector<2x256xf32>, vector<2x256xf32>, vector<2x256xf32>, vector<2x256xf32>, vector<2x256xf32>, vector<2x256xf32>, vector<2x256xf32> -> vector<16x256xf32>
    %c0_9 = arith.constant 0 : index
    %c0_10 = arith.constant 0 : index
    %25 = vector.load %arg4[%c0_9, %c0_10] : memref<16x16xf32, #tpu.memory_space<vmem>>, vector<16x16xf32>
    %cst_11 = arith.constant dense<0.000000e+00> : vector<16x256xf32>
    %26 = tpu.matmul %25, %24, %cst_11 {dimension_numbers = #tpu.dot_dimension_numbers<[1], [0], [0], [1], [0, 0, 1, 1], [], []>} : vector<16x16xf32>, vector<16x256xf32>, vector<16x256xf32> -> vector<16x256xf32>
    %c0_12 = arith.constant 0 : index
    %c0_13 = arith.constant 0 : index
    %27 = vector.load %arg5[%c0_12, %c0_13] : memref<16x1xf32, #tpu.memory_space<vmem>>, vector<16x1xf32>
    %28 = vector.broadcast %27 : vector<16x1xf32> to vector<16x256xf32>
    %29 = arith.addf %26, %28 : vector<16x256xf32>
    %cst_14 = arith.constant 0.000000e+00 : f32
    %30 = vector.broadcast %cst_14 : f32 to vector<16x256xf32>
    %31 = arith.cmpf ogt, %29, %30 : vector<16x256xf32>
    %cst_15 = arith.constant 0.000000e+00 : f32
    %32 = vector.broadcast %cst_15 : f32 to vector<16x256xf32>
    %33 = arith.minimumf %29, %32 : vector<16x256xf32>
    %34 = math.exp %33 : vector<16x256xf32>
    %cst_16 = arith.constant 1.000000e+00 : f32
    %35 = vector.broadcast %cst_16 : f32 to vector<16x256xf32>
    %36 = arith.subf %34, %35 : vector<16x256xf32>
    %37 = arith.select %31, %29, %36 : vector<16x256xi1>, vector<16x256xf32>
    %38 = arith.truncf %37 : vector<16x256xf32> to vector<16x256xbf16>
    %c0_17 = arith.constant 0 : index
    %c0_18 = arith.constant 0 : index
    %39 = vector.load %arg6[%c0_17, %c0_18] : memref<256x2048xbf16, #tpu.memory_space<vmem>>, vector<256x2048xbf16>
    %cst_19 = arith.constant dense<0.000000e+00> : vector<16x2048xf32>
    %40 = tpu.matmul %38, %39, %cst_19 {dimension_numbers = #tpu.dot_dimension_numbers<[1], [0], [0], [1], [0, 0, 1, 1], [], []>} : vector<16x256xbf16>, vector<256x2048xbf16>, vector<16x2048xf32> -> vector<16x2048xf32>
    %41 = vector.extract_strided_slice %40 {offsets = [0, 0], sizes = [16, 128], strides = [1, 1]} : vector<16x2048xf32> to vector<16x128xf32>
    %42 = vector.extract_strided_slice %40 {offsets = [0, 128], sizes = [16, 128], strides = [1, 1]} : vector<16x2048xf32> to vector<16x128xf32>
    %43 = vector.extract_strided_slice %40 {offsets = [0, 256], sizes = [16, 128], strides = [1, 1]} : vector<16x2048xf32> to vector<16x128xf32>
    %44 = vector.extract_strided_slice %40 {offsets = [0, 384], sizes = [16, 128], strides = [1, 1]} : vector<16x2048xf32> to vector<16x128xf32>
    %45 = vector.extract_strided_slice %40 {offsets = [0, 512], sizes = [16, 128], strides = [1, 1]} : vector<16x2048xf32> to vector<16x128xf32>
    %46 = vector.extract_strided_slice %40 {offsets = [0, 640], sizes = [16, 128], strides = [1, 1]} : vector<16x2048xf32> to vector<16x128xf32>
    %47 = vector.extract_strided_slice %40 {offsets = [0, 768], sizes = [16, 128], strides = [1, 1]} : vector<16x2048xf32> to vector<16x128xf32>
    %48 = vector.extract_strided_slice %40 {offsets = [0, 896], sizes = [16, 128], strides = [1, 1]} : vector<16x2048xf32> to vector<16x128xf32>
    %49 = vector.extract_strided_slice %40 {offsets = [0, 1024], sizes = [16, 128], strides = [1, 1]} : vector<16x2048xf32> to vector<16x128xf32>
    %50 = vector.extract_strided_slice %40 {offsets = [0, 1152], sizes = [16, 128], strides = [1, 1]} : vector<16x2048xf32> to vector<16x128xf32>
    %51 = vector.extract_strided_slice %40 {offsets = [0, 1280], sizes = [16, 128], strides = [1, 1]} : vector<16x2048xf32> to vector<16x128xf32>
    %52 = vector.extract_strided_slice %40 {offsets = [0, 1408], sizes = [16, 128], strides = [1, 1]} : vector<16x2048xf32> to vector<16x128xf32>
    %53 = vector.extract_strided_slice %40 {offsets = [0, 1536], sizes = [16, 128], strides = [1, 1]} : vector<16x2048xf32> to vector<16x128xf32>
    %54 = vector.extract_strided_slice %40 {offsets = [0, 1664], sizes = [16, 128], strides = [1, 1]} : vector<16x2048xf32> to vector<16x128xf32>
    %55 = vector.extract_strided_slice %40 {offsets = [0, 1792], sizes = [16, 128], strides = [1, 1]} : vector<16x2048xf32> to vector<16x128xf32>
    %56 = vector.extract_strided_slice %40 {offsets = [0, 1920], sizes = [16, 128], strides = [1, 1]} : vector<16x2048xf32> to vector<16x128xf32>
    %57 = tpu.concatenate %41, %42, %43, %44, %45, %46, %47, %48, %49, %50, %51, %52, %53, %54, %55, %56 in 0 : vector<16x128xf32>, vector<16x128xf32>, vector<16x128xf32>, vector<16x128xf32>, vector<16x128xf32>, vector<16x128xf32>, vector<16x128xf32>, vector<16x128xf32>, vector<16x128xf32>, vector<16x128xf32>, vector<16x128xf32>, vector<16x128xf32>, vector<16x128xf32>, vector<16x128xf32>, vector<16x128xf32>, vector<16x128xf32> -> vector<256x128xf32>
    %58 = arith.truncf %57 : vector<256x128xf32> to vector<256x128xbf16>
    %c0_20 = arith.constant 0 : index
    %c0_21 = arith.constant 0 : index
    %59 = vector.load %arg7[%c0_20, %c0_21] : memref<16x256xbf16, #tpu.memory_space<vmem>>, vector<16x256xbf16>
    %cst_22 = arith.constant dense<0.000000e+00> : vector<16x128xf32>
    %60 = tpu.matmul %59, %58, %cst_22 {dimension_numbers = #tpu.dot_dimension_numbers<[1], [0], [0], [1], [0, 0, 1, 1], [], []>} : vector<16x256xbf16>, vector<256x128xbf16>, vector<16x128xf32> -> vector<16x128xf32>
    %c0_23 = arith.constant 0 : index
    %c0_24 = arith.constant 0 : index
    %61 = vector.load %arg8[%c0_23, %c0_24] : memref<16x1xf32, #tpu.memory_space<vmem>>, vector<16x1xf32>
    %62 = vector.broadcast %61 : vector<16x1xf32> to vector<16x128xf32>
    %63 = arith.addf %60, %62 : vector<16x128xf32>
    %cst_25 = arith.constant 0.000000e+00 : f32
    %64 = vector.broadcast %cst_25 : f32 to vector<16x128xf32>
    %65 = arith.cmpf ogt, %63, %64 : vector<16x128xf32>
    %cst_26 = arith.constant 0.000000e+00 : f32
    %66 = vector.broadcast %cst_26 : f32 to vector<16x128xf32>
    %67 = arith.minimumf %63, %66 : vector<16x128xf32>
    %68 = math.exp %67 : vector<16x128xf32>
    %cst_27 = arith.constant 1.000000e+00 : f32
    %69 = vector.broadcast %cst_27 : f32 to vector<16x128xf32>
    %70 = arith.subf %68, %69 : vector<16x128xf32>
    %71 = arith.select %65, %63, %70 : vector<16x128xi1>, vector<16x128xf32>
    %c0_28 = arith.constant 0 : index
    %c0_29 = arith.constant 0 : index
    %72 = vector.load %arg9[%c0_28, %c0_29] : memref<16x16xf32, #tpu.memory_space<vmem>>, vector<16x16xf32>
    %cst_30 = arith.constant dense<0.000000e+00> : vector<16x128xf32>
    %73 = tpu.matmul %72, %71, %cst_30 {dimension_numbers = #tpu.dot_dimension_numbers<[1], [0], [0], [1], [0, 0, 1, 1], [], []>} : vector<16x16xf32>, vector<16x128xf32>, vector<16x128xf32> -> vector<16x128xf32>
    %c0_31 = arith.constant 0 : index
    %c0_32 = arith.constant 0 : index
    %74 = vector.load %arg10[%c0_31, %c0_32] : memref<16x1xf32, #tpu.memory_space<vmem>>, vector<16x1xf32>
    %75 = vector.broadcast %74 : vector<16x1xf32> to vector<16x128xf32>
    %76 = arith.addf %73, %75 : vector<16x128xf32>
    %cst_33 = arith.constant 0.000000e+00 : f32
    %77 = vector.broadcast %cst_33 : f32 to vector<16x128xf32>
    %78 = arith.cmpf ogt, %76, %77 : vector<16x128xf32>
    %cst_34 = arith.constant 0.000000e+00 : f32
    %79 = vector.broadcast %cst_34 : f32 to vector<16x128xf32>
    %80 = arith.minimumf %76, %79 : vector<16x128xf32>
    %81 = math.exp %80 : vector<16x128xf32>
    %cst_35 = arith.constant 1.000000e+00 : f32
    %82 = vector.broadcast %cst_35 : f32 to vector<16x128xf32>
    %83 = arith.subf %81, %82 : vector<16x128xf32>
    %84 = arith.select %78, %76, %83 : vector<16x128xi1>, vector<16x128xf32>
    %c0_36 = arith.constant 0 : index
    %c0_37 = arith.constant 0 : index
    %85 = vector.load %arg11[%c0_36, %c0_37] : memref<128x4xf32, #tpu.memory_space<vmem>>, vector<128x4xf32>
    %cst_38 = arith.constant dense<0.000000e+00> : vector<16x4xf32>
    %86 = tpu.matmul %84, %85, %cst_38 {dimension_numbers = #tpu.dot_dimension_numbers<[1], [0], [0], [1], [0, 0, 1, 1], [], []>} : vector<16x128xf32>, vector<128x4xf32>, vector<16x4xf32> -> vector<16x4xf32>
    %cst_39 = arith.constant 5.000000e-01 : f32
    %87 = vector.broadcast %cst_39 : f32 to vector<16x4xf32>
    %88 = arith.mulf %87, %86 : vector<16x4xf32>
    %89 = math.cos %88 : vector<16x4xf32>
    %90 = math.sin %88 : vector<16x4xf32>
    %c0_40 = arith.constant 0 : index
    %c0_41 = arith.constant 0 : index
    %91 = vector.load %arg12[%c0_40, %c0_41] : memref<4x16xf32, #tpu.memory_space<vmem>>, vector<4x16xf32>
    %cst_42 = arith.constant 1.000000e+00 : f32
    %92 = vector.broadcast %cst_42 : f32 to vector<16x16xf32>
    %93 = vector.extract_strided_slice %91 {offsets = [0, 0], sizes = [1, 16], strides = [1, 1]} : vector<4x16xf32> to vector<1x16xf32>
    %94 = vector.extract_strided_slice %89 {offsets = [0, 0], sizes = [16, 1], strides = [1, 1]} : vector<16x4xf32> to vector<16x1xf32>
    %cst_43 = arith.constant 1.000000e+00 : f32
    %95 = vector.broadcast %cst_43 : f32 to vector<1x16xf32>
    %96 = arith.subf %95, %93 : vector<1x16xf32>
    %97 = vector.broadcast %94 : vector<16x1xf32> to vector<16x16xf32>
    %98 = vector.broadcast %96 : vector<1x16xf32> to vector<16x16xf32>
    %99 = arith.mulf %97, %98 : vector<16x16xf32>
    %100 = vector.extract_strided_slice %90 {offsets = [0, 0], sizes = [16, 1], strides = [1, 1]} : vector<16x4xf32> to vector<16x1xf32>
    %101 = vector.broadcast %100 : vector<16x1xf32> to vector<16x16xf32>
    %102 = vector.broadcast %93 : vector<1x16xf32> to vector<16x16xf32>
    %103 = arith.mulf %101, %102 : vector<16x16xf32>
    %104 = arith.addf %99, %103 : vector<16x16xf32>
    %105 = arith.mulf %92, %104 : vector<16x16xf32>
    %106 = vector.extract_strided_slice %91 {offsets = [1, 0], sizes = [1, 16], strides = [1, 1]} : vector<4x16xf32> to vector<1x16xf32>
    %107 = vector.extract_strided_slice %89 {offsets = [0, 1], sizes = [16, 1], strides = [1, 1]} : vector<16x4xf32> to vector<16x1xf32>
    %cst_44 = arith.constant 1.000000e+00 : f32
    %108 = vector.broadcast %cst_44 : f32 to vector<1x16xf32>
    %109 = arith.subf %108, %106 : vector<1x16xf32>
    %110 = vector.broadcast %107 : vector<16x1xf32> to vector<16x16xf32>
    %111 = vector.broadcast %109 : vector<1x16xf32> to vector<16x16xf32>
    %112 = arith.mulf %110, %111 : vector<16x16xf32>
    %113 = vector.extract_strided_slice %90 {offsets = [0, 1], sizes = [16, 1], strides = [1, 1]} : vector<16x4xf32> to vector<16x1xf32>
    %114 = vector.broadcast %113 : vector<16x1xf32> to vector<16x16xf32>
    %115 = vector.broadcast %106 : vector<1x16xf32> to vector<16x16xf32>
    %116 = arith.mulf %114, %115 : vector<16x16xf32>
    %117 = arith.addf %112, %116 : vector<16x16xf32>
    %118 = arith.mulf %105, %117 : vector<16x16xf32>
    %119 = vector.extract_strided_slice %91 {offsets = [2, 0], sizes = [1, 16], strides = [1, 1]} : vector<4x16xf32> to vector<1x16xf32>
    %120 = vector.extract_strided_slice %89 {offsets = [0, 2], sizes = [16, 1], strides = [1, 1]} : vector<16x4xf32> to vector<16x1xf32>
    %cst_45 = arith.constant 1.000000e+00 : f32
    %121 = vector.broadcast %cst_45 : f32 to vector<1x16xf32>
    %122 = arith.subf %121, %119 : vector<1x16xf32>
    %123 = vector.broadcast %120 : vector<16x1xf32> to vector<16x16xf32>
    %124 = vector.broadcast %122 : vector<1x16xf32> to vector<16x16xf32>
    %125 = arith.mulf %123, %124 : vector<16x16xf32>
    %126 = vector.extract_strided_slice %90 {offsets = [0, 2], sizes = [16, 1], strides = [1, 1]} : vector<16x4xf32> to vector<16x1xf32>
    %127 = vector.broadcast %126 : vector<16x1xf32> to vector<16x16xf32>
    %128 = vector.broadcast %119 : vector<1x16xf32> to vector<16x16xf32>
    %129 = arith.mulf %127, %128 : vector<16x16xf32>
    %130 = arith.addf %125, %129 : vector<16x16xf32>
    %131 = arith.mulf %118, %130 : vector<16x16xf32>
    %132 = vector.extract_strided_slice %91 {offsets = [3, 0], sizes = [1, 16], strides = [1, 1]} : vector<4x16xf32> to vector<1x16xf32>
    %133 = vector.extract_strided_slice %89 {offsets = [0, 3], sizes = [16, 1], strides = [1, 1]} : vector<16x4xf32> to vector<16x1xf32>
    %cst_46 = arith.constant 1.000000e+00 : f32
    %134 = vector.broadcast %cst_46 : f32 to vector<1x16xf32>
    %135 = arith.subf %134, %132 : vector<1x16xf32>
    %136 = vector.broadcast %133 : vector<16x1xf32> to vector<16x16xf32>
    %137 = vector.broadcast %135 : vector<1x16xf32> to vector<16x16xf32>
    %138 = arith.mulf %136, %137 : vector<16x16xf32>
    %139 = vector.extract_strided_slice %90 {offsets = [0, 3], sizes = [16, 1], strides = [1, 1]} : vector<16x4xf32> to vector<16x1xf32>
    %140 = vector.broadcast %139 : vector<16x1xf32> to vector<16x16xf32>
    %141 = vector.broadcast %132 : vector<1x16xf32> to vector<16x16xf32>
    %142 = arith.mulf %140, %141 : vector<16x16xf32>
    %143 = arith.addf %138, %142 : vector<16x16xf32>
    %144 = arith.mulf %131, %143 : vector<16x16xf32>
    %c0_47 = arith.constant 0 : index
    %c0_48 = arith.constant 0 : index
    %145 = vector.load %arg13[%c0_47, %c0_48] : memref<16x16xf32, #tpu.memory_space<vmem>>, vector<16x16xf32>
    %cst_49 = arith.constant dense<0.000000e+00> : vector<16x16xf32>
    %146 = tpu.matmul %144, %145, %cst_49 {dimension_numbers = #tpu.dot_dimension_numbers<[1], [0], [0], [1], [0, 0, 1, 1], [], []>} : vector<16x16xf32>, vector<16x16xf32>, vector<16x16xf32> -> vector<16x16xf32>
    %147 = arith.mulf %146, %146 : vector<16x16xf32>
    %148 = tpu.concatenate %147, %147 in 1 : vector<16x16xf32>, vector<16x16xf32> -> vector<16x32xf32>
    %c0_50 = arith.constant 0 : index
    %c0_51 = arith.constant 0 : index
    %149 = vector.load %arg14[%c0_50, %c0_51] : memref<16x32xf32, #tpu.memory_space<vmem>>, vector<16x32xf32>
    %150 = arith.mulf %148, %149 : vector<16x32xf32>
    %cst_52 = arith.constant 1.000000e+00 : f32
    %151 = vector.broadcast %cst_52 : f32 to vector<1x16xf32>
    %cst_53 = arith.constant dense<0.000000e+00> : vector<1x32xf32>
    %152 = tpu.matmul %151, %150, %cst_53 {dimension_numbers = #tpu.dot_dimension_numbers<[1], [0], [0], [1], [0, 0, 1, 1], [], []>} : vector<1x16xf32>, vector<16x32xf32>, vector<1x32xf32> -> vector<1x32xf32>
    %c0_54 = arith.constant 0 : index
    %c0_55 = arith.constant 0 : index
    %153 = vector.load %arg15[%c0_54, %c0_55] : memref<32x2xf32, #tpu.memory_space<vmem>>, vector<32x2xf32>
    %cst_56 = arith.constant dense<0.000000e+00> : vector<1x2xf32>
    %154 = tpu.matmul %152, %153, %cst_56 {dimension_numbers = #tpu.dot_dimension_numbers<[1], [0], [0], [1], [0, 0, 1, 1], [], []>} : vector<1x32xf32>, vector<32x2xf32>, vector<1x2xf32> -> vector<1x2xf32>
    %c0_57 = arith.constant 0 : index
    %c0_58 = arith.constant 0 : index
    %155 = vector.load %arg16[%c0_57, %c0_58] : memref<1x2xf32, #tpu.memory_space<vmem>>, vector<1x2xf32>
    %156 = arith.addf %154, %155 : vector<1x2xf32>
    %c0_59 = arith.constant 0 : index
    %c0_60 = arith.constant 0 : index
    %c0_61 = arith.constant 0 : index
    %157 = vector.load %arg17[%c0_59, %c0_60, %c0_61] : memref<1x1x2xf32, #tpu.memory_space<vmem>>, vector<1x1x2xf32>
    %158 = vector.shape_cast %157 : vector<1x1x2xf32> to vector<1x2xf32>
    %159 = vector.shape_cast %156 : vector<1x2xf32> to vector<1x1x2xf32>
    tpu.vector_store %arg17[%c0_59, %c0_60, %c0_61], %159 {strides = array<i32>} : memref<1x1x2xf32, #tpu.memory_space<vmem>>, vector<1x1x2xf32>,
    return
  }
  func.func @transform_0(%arg0: i32) -> (i32, i32, i32) {
    %c0_i32 = arith.constant 0 : i32
    %c0_i32_0 = arith.constant 0 : i32
    %c0_i32_1 = arith.constant 0 : i32
    return %arg0, %c0_i32, %c0_i32_0 : i32, i32, i32
  }
  func.func @transform_1(%arg0: i32) -> (i32, i32) {
    %c0_i32 = arith.constant 0 : i32
    %c0_i32_0 = arith.constant 0 : i32
    %c0_i32_1 = arith.constant 0 : i32
    return %c0_i32, %c0_i32_0 : i32, i32
  }
  func.func @transform_2(%arg0: i32) -> (i32, i32) {
    %c0_i32 = arith.constant 0 : i32
    %c0_i32_0 = arith.constant 0 : i32
    %c0_i32_1 = arith.constant 0 : i32
    return %c0_i32, %c0_i32_0 : i32, i32
  }
  func.func @transform_3(%arg0: i32) -> (i32, i32) {
    %c0_i32 = arith.constant 0 : i32
    %c0_i32_0 = arith.constant 0 : i32
    %c0_i32_1 = arith.constant 0 : i32
    return %c0_i32, %c0_i32_0 : i32, i32
  }
  func.func @transform_4(%arg0: i32) -> (i32, i32) {
    %c0_i32 = arith.constant 0 : i32
    %c0_i32_0 = arith.constant 0 : i32
    %c0_i32_1 = arith.constant 0 : i32
    return %c0_i32, %c0_i32_0 : i32, i32
  }
  func.func @transform_5(%arg0: i32) -> (i32, i32) {
    %c0_i32 = arith.constant 0 : i32
    %c0_i32_0 = arith.constant 0 : i32
    %c0_i32_1 = arith.constant 0 : i32
    return %c0_i32, %c0_i32_0 : i32, i32
  }
  func.func @transform_6(%arg0: i32) -> (i32, i32) {
    %c0_i32 = arith.constant 0 : i32
    %c0_i32_0 = arith.constant 0 : i32
    %c0_i32_1 = arith.constant 0 : i32
    return %c0_i32, %c0_i32_0 : i32, i32
  }
  func.func @transform_7(%arg0: i32) -> (i32, i32) {
    %c0_i32 = arith.constant 0 : i32
    %c0_i32_0 = arith.constant 0 : i32
    %c0_i32_1 = arith.constant 0 : i32
    return %c0_i32, %c0_i32_0 : i32, i32
  }
  func.func @transform_8(%arg0: i32) -> (i32, i32) {
    %c0_i32 = arith.constant 0 : i32
    %c0_i32_0 = arith.constant 0 : i32
    %c0_i32_1 = arith.constant 0 : i32
    return %c0_i32, %c0_i32_0 : i32, i32
  }
  func.func @transform_9(%arg0: i32) -> (i32, i32) {
    %c0_i32 = arith.constant 0 : i32
    %c0_i32_0 = arith.constant 0 : i32
    %c0_i32_1 = arith.constant 0 : i32
    return %c0_i32, %c0_i32_0 : i32, i32
  }
  func.func @transform_10(%arg0: i32) -> (i32, i32) {
    %c0_i32 = arith.constant 0 : i32
    %c0_i32_0 = arith.constant 0 : i32
    %c0_i32_1 = arith.constant 0 : i32
    return %c0_i32, %c0_i32_0 : i32, i32
  }
  func.func @transform_11(%arg0: i32) -> (i32, i32) {
    %c0_i32 = arith.constant 0 : i32
    %c0_i32_0 = arith.constant 0 : i32
    %c0_i32_1 = arith.constant 0 : i32
    return %c0_i32, %c0_i32_0 : i32, i32
  }
  func.func @transform_12(%arg0: i32) -> (i32, i32) {
    %c0_i32 = arith.constant 0 : i32
    %c0_i32_0 = arith.constant 0 : i32
    %c0_i32_1 = arith.constant 0 : i32
    return %c0_i32, %c0_i32_0 : i32, i32
  }
  func.func @transform_13(%arg0: i32) -> (i32, i32) {
    %c0_i32 = arith.constant 0 : i32
    %c0_i32_0 = arith.constant 0 : i32
    %c0_i32_1 = arith.constant 0 : i32
    return %c0_i32, %c0_i32_0 : i32, i32
  }
  func.func @transform_14(%arg0: i32) -> (i32, i32) {
    %c0_i32 = arith.constant 0 : i32
    %c0_i32_0 = arith.constant 0 : i32
    %c0_i32_1 = arith.constant 0 : i32
    return %c0_i32, %c0_i32_0 : i32, i32
  }
  func.func @transform_15(%arg0: i32) -> (i32, i32) {
    %c0_i32 = arith.constant 0 : i32
    %c0_i32_0 = arith.constant 0 : i32
    %c0_i32_1 = arith.constant 0 : i32
    return %c0_i32, %c0_i32_0 : i32, i32
  }
  func.func @transform_16(%arg0: i32) -> (i32, i32, i32) {
    %c0_i32 = arith.constant 0 : i32
    %c0_i32_0 = arith.constant 0 : i32
    %c0_i32_1 = arith.constant 0 : i32
    return %arg0, %c0_i32, %c0_i32_0 : i32, i32, i32
  }
}

</mosaic_0001>

<bundles_post_ra>
// kernel: quantum_eegnet_forward.1
= control target key start
LH: loop header
LB: loop body
LE: loop exit
PB: predicated region body
PF: predicated region fallthrough
CT: control target
= control target key end

     0   :  { %s6608_s0 = inlined_call_operand.vmem [shape: f32[2,2,128], index: 0, kind: input, shape index: {}]   ;;  %s6609_s1 = inlined_call_operand.hbm [shape: bf16[128,2048], index: 1, kind: input, shape index: {}]   ;;  %s6610_s2 = inlined_call_operand.vmem [shape: f32[1,2048], index: 2, kind: input, shape index: {}]   ;;  %s6611_s3 = inlined_call_operand.vmem [shape: f32[16,16], index: 3, kind: input, shape index: {}]   ;;  %s6612_s4 = inlined_call_operand.vmem [shape: f32[16,1], index: 4, kind: input, shape index: {}]   ;;  %s6613_s5 = inlined_call_operand.hbm [shape: bf16[256,2048], index: 5, kind: input, shape index: {}]   ;;  %s6614_s6 = inlined_call_operand.vmem [shape: bf16[16,256], index: 6, kind: input, shape index: {}]   ;;  %s6615_s7 = inlined_call_operand.vmem [shape: f32[16,1], index: 7, kind: input, shape index: {}]   ;;  %s6616_s8 = inlined_call_operand.vmem [shape: f32[16,16], index: 8, kind: input, shape index: {}]   ;;  %s6617_s9 = inlined_call_operand.vmem [shape: f32[16,1], index: 9, kind: input, shape index: {}]   ;;  %s6618_s10 = inlined_call_operand.vmem [shape: f32[128,4], index: 10, kind: input, shape index: {}]   ;;  %s6619_s11 = inlined_call_operand.vmem [shape: f32[4,16], index: 11, kind: input, shape index: {}]   ;;  %s6620_s12 = inlined_call_operand.vmem [shape: f32[16,16], index: 12, kind: input, shape index: {}]   ;;  %s6621_s13 = inlined_call_operand.vmem [shape: f32[16,32], index: 13, kind: input, shape index: {}]   ;;  %s6622_s14 = inlined_call_operand.vmem [shape: f32[32,2], index: 14, kind: input, shape index: {}]   ;;  %s6623_s15 = inlined_call_operand.vmem [shape: f32[1,2], index: 15, kind: input, shape index: {}]   ;;  %s6624_s16 = inlined_call_operand.hbm [shape: f32[2,1,2], index: 16, kind: output, shape index: {}]  }
   0x1   :  { %6637 = sst [smem:[#allocation18_spill]] %s6608_s0 }
   0x2   :  { %6638 = sst [smem:[#allocation19_spill]] %s6623_s15 }
   0x3   :  { %6639 = sst [smem:[#allocation20_spill]] %s6624_s16 }
   0x4   :  { %21 = vsyncpa [#allocation3], 0 }
   0x5   :  { %22 = vsyncpa [#allocation6], 0 }
   0x6   :  { %23 = vsyncpa [#allocation4], 0 }
   0x7   :  { %25 = vsyncpa [#allocation4 + $0x1], 0  ;;  %s6074_s21 = smov 0   ;;  %s6076_s22 = smov 0  }
   0x8   :  { %s6078_s23 = smov 0   ;;  %s6080_s24 = smov 0  }
   0x9 LB: > { %6640 = sst [smem:[#allocation11_spill]] %s5955_s21  ;;  %s6095_s25 = sadd.s32 4294967295, %s5967_s24   ;;  %s5967_s24 = sphi %s6080_s24, %s6667_s24   ;;  %s5963_s23 = sphi %s6078_s23, %s6669_s23   ;;  %s5959_s22 = sphi %s6076_s22, %s6671_s22   ;;  %s5955_s21 = sphi %s6074_s21, %s6670_s21  }
   0xa   : > { %6641 = sst [smem:[#allocation12_spill]] %s5963_s23  ;;  %s5062_s26 = sadd.s32 4294967294, %s5967_s24  }
   0xb   : > { %6642 = sst [smem:[#allocation13_spill]] %s5967_s24  ;;  %s6099_s27 = sadd.s32 1, %s5967_s24  }
   0xc   : > { %6643 = sst [smem:[#allocation14_spill]] %s6099_s27  ;;  %s379_s28 = sadd.s32 1, %s5963_s23 }
   0xd   : > { %s376_s29 = ssub.s32 %s5967_s24, %s6099_s27  ;;  %p389_p0 = scmp.ne.s32.totalorder %s5963_s23, %s5959_s22 }
   0xe   : > { %p377_p1 = scmp.eq.s32.totalorder %s376_s29, 0  ;;  %p390_p2 = scmp.eq.s32.totalorder %s6095_s25, 1 }
   0xf   : > { %p395_p3 = scmp.ne.s32.totalorder %s5959_s22, %s5955_s21  ;;  %p396_p4 = scmp.eq.s32.totalorder %s5062_s26, 1 }
  0x10   : > { %s6110_s30 = scalar_select %p377_p1, %s5963_s23, %s379_s28  }
  0x11   : > { %p6112_p5 = por %p390_p2, %p389_p0  ;;  %p6116_p6 = por %p396_p4, %p395_p3 }
  0x12   : > { %6644 = sst [smem:[#allocation15_spill]] %s6110_s30  ;;  %p5063_p7 = scmp.ge.s32.totalorder %s5967_s24, 1 }
  0x13   : > { %s6645_s0 = scalar_select %p6112_p5, 1, 0 }
  0x14   : > { %s6647_s17 = scalar_select %p6116_p6, 1, 0 }
  0x15   : > { %6646 = sst [smem:[#allocation16_spill]] %s6645_s0  ;;  %p403_p8 = scmp.lt.s32.totalorder %s5967_s24, 3 }
  0x16   : > { %6648 = sst [smem:[#allocation17_spill]] %s6647_s17  ;;  %p6631_p9 = scmp.eq.s32.totalorder %s6095_s25, 0 }
  0x17   : > { %p6123_p10 = pnand %p5063_p7, %p403_p8  ;;  %s5969_s19 = smov [#allocation2]  }
  0x18   : > { %s415_s20 = sshll.u32 %s5969_s19, 4  ;;  %s5970_s28 = smov [#allocation5]   ;;  %s416_s20 = int_to_ptr.vmem [resolvable:$true] %s415_s20 }
  0x19   : > { %s6649_s18 = scalar_select %p6123_p10, 1, 0 }
  0x1a   : > { %p5702_p11 = pneg %p6123_p10  ;;  %s437_s29 = sshll.u32 %s5970_s28, 4  ;;  %s6135_s29 = int_to_ptr.vmem [resolvable:$true] %s437_s29 }
  0x1b   : > { %s5841_s27 = scalar_lea.hbm %s6609_s1, 16384 }
  0x1c   : > { %p6131_p12 = pnand %p6631_p9, %p5702_p11  ;;  %p5842_p13 = scmp.ne.s32.totalorder %s6609_s1, %s5841_s27 }
  0x1d   : > { %p5848_p3 = scmp.lt.u32.totalorder %s5841_s27, %s6609_s1 }
  0x1e   : > { %p5843_p0 = pneg %p6131_p12 }
  0x20   : > { %p5844_p1 = pnand %p5843_p0, %p5842_p13 }
  0x22   : > { %p5845_p2 = pneg %p5844_p1 }
  0x24   : > { %p5850_p4 = pnand %p5848_p3, %p5845_p2 }
  0x26   : > { %5853 = shalt.err (!%p5850_p4)
}
  0x27   : > { %s5854_s28 = scalar_lea.vmem %s416_s20, 16384  ;;  %p5862_p9 = scmp.lt.s32.totalorder %s416_s20, %s416_s20 }
  0x28   : > { %p5855_p7 = scmp.ne.s32.totalorder %s416_s20, %s5854_s28  ;;  %p5863_p6 = scmp.lt.s32.totalorder %s5854_s28, %s5854_s28 }
  0x2a   : > { %p5857_p8 = pnand %p5855_p7, %p5843_p0  ;;  %p5864_p5 = por %p5863_p6, %p5862_p9 }
  0x2c   : > { %p5858_p11 = pneg %p5857_p8 }
  0x2e   : > { %p5865_p10 = pnand %p5864_p5, %p5858_p11 }
  0x30   : > { %5868 = shalt.err (!%p5865_p10)
}
  0x31   : > { %s5971_s23 = smov 1024   ;;  %s5972_s30 = smov 64  }
  0x32   : > { %5705 = dma.hbm_to_vmem [thread:$0]  (!%p6131_p12), %s6609_s1, 16384, %s416_s20, [#allocation3], %s5971_s23, %s5971_s23, %s5972_s30  }
  0x33   : > { %s5869_s19 = scalar_lea.hbm %s6613_s5, 32768 }
  0x34   : > { %p5870_p13 = scmp.ne.s32.totalorder %s6613_s5, %s5869_s19  ;;  %p5876_p9 = scmp.lt.u32.totalorder %s5869_s19, %s6613_s5 }
  0x36   : > { %p5872_p5 = pnand %p5870_p13, %p5843_p0 }
  0x38   : > { %p5873_p6 = pneg %p5872_p5 }
  0x3a   : > { %p5878_p10 = pnand %p5876_p9, %p5873_p6 }
  0x3c   : > { %5881 = shalt.err (!%p5878_p10)
}
  0x3d   : > { %s5882_s20 = scalar_lea.vmem %s6135_s29, 32768  ;;  %p5890_p4 = scmp.lt.s32.totalorder %s6135_s29, %s6135_s29 }
  0x3e   : > { %p5883_p1 = scmp.ne.s32.totalorder %s6135_s29, %s5882_s20  ;;  %p5891_p7 = scmp.lt.s32.totalorder %s5882_s20, %s5882_s20 }
  0x40   : > { %p5885_p2 = pnand %p5883_p1, %p5843_p0  ;;  %p5892_p8 = por %p5891_p7, %p5890_p4 }
  0x42   : > { %p5886_p3 = pneg %p5885_p2 }
  0x44   : > { %p5893_p11 = pnand %p5892_p8, %p5886_p3 }
  0x46   : > { %5896 = shalt.err (!%p5893_p11)
}
  0x47   : > { %5708 = dma.hbm_to_vmem [thread:$0]  (!%p6131_p12), %s6613_s5, 32768, %s6135_s29, [#allocation6], %s5971_s23, %s5971_s23, %s5972_s30  }
  0x48   : > { %p6651_p13 = scmp.ne.s32.totalorder %s6649_s18, 0 }
  0x49   : > { %p6652_p5 = scmp.eq.s32.totalorder (!%p6651_p13), %s6095_s25, 0 }
  0x4a   : > { %490 = sbr.rel (%p6651_p13) target bundleno = 2852 (0xb24), region = 84 }
  0x51   : > { %5942 = dma.done.wait (%p6652_p5), [#allocation3], 16384   ;;  %p6653_p0 = pmov %p6652_p5 }
  0x53   : > { %5944 = vsyncadd (%p6653_p0), [#allocation3], 4294950912  ;;  %p6654_p6 = pmov %p6653_p0 }
  0x54   : > { %p6655_p9 = pmov %p6653_p0 }
  0x55   : > { %5946 = dma.done.wait (%p6654_p6), [#allocation6], 32768  }
  0x56   : > { %5948 = vsyncadd (%p6655_p9), [#allocation6], 4294934528  ;;  %v5973_v0 = vmov 0   ;;  %v549_v1 = vld [vmem:[#allocation2] sm:$0xff]  ;;  %v550_v3 = vld [vmem:[#allocation2 + $0x8] sm:$0xff]  ;;  %p542_p12 = scmp.lt.s32.totalorder %s6095_s25, 1 }
  0x57   : > { %1433 = vmatprep.mubr.bf16.mxu0 %v5973_v0  ;;  %1474 = vmatprep.mubr.bf16.mxu1 %v5973_v0  ;;  %v557_v2 = vld [vmem:[#allocation2 + $0x40] sm:$0xff]  ;;  %v558_v5 = vld [vmem:[#allocation2 + $0x48] sm:$0xff]  ;;  %s6656_s23 = sld [smem:[#allocation18_spill]]  ;;  %v551_v63 = vld [vmem:[#allocation2 + $0x10] sm:$0xff]  ;;  %vm1861_vm1 = vcmask 1041408   ;;  %vm1864_vm6 = vcmask 1043456  }
  0x58   : > { %5769 = vset.pattern.permute.xlu0 %v5973_v0  ;;  %5770 = vset.pattern.permute.xlu1 %v5973_v0  ;;  %v5072_v4 = vcombine.high %v549_v1, %v557_v2  ;;  %v5071_v6 = vcombine.low %v549_v1, %v557_v2  ;;  %v565_v7 = vld [vmem:[#allocation2 + $0x80] sm:$0xff]  ;;  %v5074_v9 = vcombine.high %v550_v3, %v558_v5  ;;  %v566_v12 = vld [vmem:[#allocation2 + $0x88] sm:$0xff]  ;;  %s543_s0 = scalar_select %p542_p12, %s6095_s25, 1  ;;  %v559_v1 = vld [vmem:[#allocation2 + $0x50] sm:$0xff]  ;;  %vm1867_vm8 = vcmask 1045504  }
  0x59   : > { %v573_v8 = vld [vmem:[#allocation2 + $0xc0] sm:$0xff]  ;;  %v5073_v10 = vcombine.low %v550_v3, %v558_v5  ;;  %v574_v13 = vld [vmem:[#allocation2 + $0xc8] sm:$0xff]  ;;  %v552_v2 = vld [vmem:[#allocation2 + $0x18] sm:$0xff]  ;;  %s5986_s20 = smov 16   ;;  %s6659_s19 = sld [smem:[#allocation16_spill]] }
  0x5a   : > { %v5088_v11 = vcombine.high %v565_v7, %v573_v8  ;;  %v581_v14 = vld [vmem:[#allocation2 + $0x100] sm:$0xff]  ;;  %1401 = vmatprep.subr.bf16.mxu0 %v5072_v4  ;;  %v5090_v15 = vcombine.high %v566_v12, %v574_v13  ;;  %v582_v17 = vld [vmem:[#allocation2 + $0x108] sm:$0xff]  ;;  %1442 = vmatprep.subr.bf16.mxu1 %v5074_v9  ;;  %v5087_v19 = vcombine.low %v565_v7, %v573_v8  ;;  %s5070_s18 = sshll.u32 %s543_s0, 1  ;;  %v560_v3 = vld [vmem:[#allocation2 + $0x58] sm:$0xff]  ;;  %s540_s28 = sand.u32 1, %s5959_s22  }
  0x5b   : > { %v589_v16 = vld [vmem:[#allocation2 + $0x140] sm:$0xff]  ;;  %v590_v18 = vld [vmem:[#allocation2 + $0x148] sm:$0xff]  ;;  %1402 = vmatpush1.bf16.msra.mxu0 %v5071_v6  ;;  %1443 = vmatpush1.bf16.msra.mxu1 %v5073_v10  ;;  %v5089_v20 = vcombine.low %v566_v12, %v574_v13  ;;  %v5076_v7 = vcombine.high %v551_v63, %v559_v1  ;;  %v5078_v8 = vcombine.high %v552_v2, %v560_v3  ;;  %v567_v9 = vld [vmem:[#allocation2 + $0x90] sm:$0xff]  ;;  %s6660_s16 = sld [smem:[#allocation19_spill]]  ;;  %s5505_s0 = sshll.u32 %s6095_s25, 4 }
  0x5c   : > { %1403 = vmatprep.subr.bf16.mxu0 %v5088_v11  ;;  %v5104_v21 = vcombine.high %v581_v14, %v589_v16  ;;  %1444 = vmatprep.subr.bf16.mxu1 %v5090_v15  ;;  %v5106_v22 = vcombine.high %v582_v17, %v590_v18  ;;  %v597_v23 = vld [vmem:[#allocation2 + $0x180] sm:$0xff]  ;;  %v598_v25 = vld [vmem:[#allocation2 + $0x188] sm:$0xff]  ;;  %v5103_v27 = vcombine.low %v581_v14, %v589_v16  ;;  %v575_v10 = vld [vmem:[#allocation2 + $0xd0] sm:$0xff]  ;;  %s4973_s24 = scalar_lea.sflag [#allocation4], %s540_s28  ;;  %s5988_s25 = smov [#allocation7]  }
  0x5d   : > { %v605_v24 = vld [vmem:[#allocation2 + $0x1c0] sm:$0xff]  ;;  %v606_v26 = vld [vmem:[#allocation2 + $0x1c8] sm:$0xff]  ;;  %v5105_v28 = vcombine.low %v582_v17, %v590_v18  ;;  %s545_s30 = scalar_lea.vmem %s6656_s23, %s5070_s18  ;;  %v568_v12 = vld [vmem:[#allocation2 + $0x98] sm:$0xff]  ;;  %v5075_v14 = vcombine.low %v551_v63, %v559_v1  ;;  %v5077_v15 = vcombine.low %v552_v2, %v560_v3  ;;  %v5092_v16 = vcombine.high %v567_v9, %v575_v10  ;;  %s541_s18 = scalar_lea.vmem [#allocation7], %s540_s28 }
  0x5e   : > { %v5120_v29 = vcombine.high %v597_v23, %v605_v24  ;;  %v5122_v30 = vcombine.high %v598_v25, %v606_v26  ;;  %v613_v31 = vld [vmem:[#allocation2 + $0x200] sm:$0xff]  ;;  %v614_v33 = vld [vmem:[#allocation2 + $0x208] sm:$0xff]  ;;  %v5119_v35 = vcombine.low %v597_v23, %v605_v24  ;;  %v5121_v36 = vcombine.low %v598_v25, %v606_v26  ;;  %v576_v13 = vld [vmem:[#allocation2 + $0xd8] sm:$0xff]  ;;  %s4985_s26 = sshll.u32 %s541_s18, 4  ;;  %s5901_s17 = sshll.u32 %s5988_s25, 4  ;;  %s6568_s26 = int_to_ptr.vmem [resolvable:$true] %s4985_s26  ;;  %s5902_s17 = int_to_ptr.vmem [resolvable:$false] %s5901_s17 }
  0x5f   : > { %1404 = vmatpush1.bf16.msra.mxu0 %v5087_v19  ;;  %1445 = vmatpush1.bf16.msra.mxu1 %v5089_v20  ;;  %v621_v32 = vld [vmem:[#allocation2 + $0x240] sm:$0xff]  ;;  %v622_v34 = vld [vmem:[#allocation2 + $0x248] sm:$0xff]  ;;  %v5094_v17 = vcombine.high %v568_v12, %v576_v13  ;;  %v583_v18 = vld [vmem:[#allocation2 + $0x110] sm:$0xff]  ;;  %v5093_v23 = vcombine.low %v568_v12, %v576_v13  ;;  %s5897_s27 = scalar_lea.vmem %s6568_s26, 16  ;;  %p6662_p1 = scmp.ne.s32.totalorder %s6659_s19, 0 }
  0x60   : > { %1405 = vmatprep.subr.bf16.mxu0 %v5104_v21  ;;  %1446 = vmatprep.subr.bf16.mxu1 %v5106_v22  ;;  %v5136_v37 = vcombine.high %v613_v31, %v621_v32  ;;  %v5138_v38 = vcombine.high %v614_v33, %v622_v34  ;;  %v629_v39 = vld [vmem:[#allocation2 + $0x280] sm:$0xff]  ;;  %v630_v41 = vld [vmem:[#allocation2 + $0x288] sm:$0xff]  ;;  %v5135_v43 = vcombine.low %v613_v31, %v621_v32  ;;  %v591_v19 = vld [vmem:[#allocation2 + $0x150] sm:$0xff]  ;;  %p5898_p10 = scmp.ne.s32.totalorder %s6568_s26, %s5897_s27  ;;  %p5904_p4 = scmp.lt.s32.totalorder %s6568_s26, %s5902_s17 }
  0x61   : > { %v637_v40 = vld [vmem:[#allocation2 + $0x2c0] sm:$0xff]  ;;  %v638_v42 = vld [vmem:[#allocation2 + $0x2c8] sm:$0xff]  ;;  %v5137_v44 = vcombine.low %v614_v33, %v622_v34  ;;  %v584_v20 = vld [vmem:[#allocation2 + $0x118] sm:$0xff]  ;;  %v5091_v22 = vcombine.low %v567_v9, %v575_v10  ;;  %v5108_v24 = vcombine.high %v583_v18, %v591_v19 }
  0x62   : > { %v5152_v45 = vcombine.high %v629_v39, %v637_v40  ;;  %v5154_v46 = vcombine.high %v630_v41, %v638_v42  ;;  %v645_v47 = vld [vmem:[#allocation2 + $0x300] sm:$0xff]  ;;  %v646_v49 = vld [vmem:[#allocation2 + $0x308] sm:$0xff]  ;;  %v5151_v51 = vcombine.low %v629_v39, %v637_v40  ;;  %v5153_v52 = vcombine.low %v630_v41, %v638_v42  ;;  %v592_v21 = vld [vmem:[#allocation2 + $0x158] sm:$0xff]  ;;  %p5899_p2 = pnand %p5898_p10, %p6662_p1 }
  0x63   : > { %1406 = vmatpush1.bf16.msra.mxu0 %v5103_v27  ;;  %1447 = vmatpush1.bf16.msra.mxu1 %v5105_v28  ;;  %v653_v48 = vld [vmem:[#allocation2 + $0x340] sm:$0xff]  ;;  %v654_v50 = vld [vmem:[#allocation2 + $0x348] sm:$0xff]  ;;  %v5110_v25 = vcombine.high %v584_v20, %v592_v21  ;;  %v599_v26 = vld [vmem:[#allocation2 + $0x190] sm:$0xff]  ;;  %v5109_v31 = vcombine.low %v584_v20, %v592_v21 }
  0x64   : > { %1407 = vmatprep.subr.bf16.mxu0 %v5120_v29  ;;  %1448 = vmatprep.subr.bf16.mxu1 %v5122_v30  ;;  %v5168_v53 = vcombine.high %v645_v47, %v653_v48  ;;  %v5170_v54 = vcombine.high %v646_v49, %v654_v50  ;;  %v661_v55 = vld [vmem:[#allocation2 + $0x380] sm:$0xff]  ;;  %v662_v57 = vld [vmem:[#allocation2 + $0x388] sm:$0xff]  ;;  %v5167_v59 = vcombine.low %v645_v47, %v653_v48  ;;  %v607_v27 = vld [vmem:[#allocation2 + $0x1d0] sm:$0xff]  ;;  %p5900_p3 = pneg %p5899_p2 }
  0x65   : > { %v669_v56 = vld [vmem:[#allocation2 + $0x3c0] sm:$0xff]  ;;  %v670_v58 = vld [vmem:[#allocation2 + $0x3c8] sm:$0xff]  ;;  %v5169_v60 = vcombine.low %v646_v49, %v654_v50  ;;  %v600_v28 = vld [vmem:[#allocation2 + $0x198] sm:$0xff]  ;;  %v5107_v30 = vcombine.low %v583_v18, %v591_v19  ;;  %v5124_v32 = vcombine.high %v599_v26, %v607_v27 }
  0x66   : > { %v5184_v61 = vcombine.high %v661_v55, %v669_v56  ;;  %v5186_v62 = vcombine.high %v662_v57, %v670_v58  ;;  %v5183_v4 = vcombine.low %v661_v55, %v669_v56  ;;  %v547_v5 = vld [vmem:[%s545_s30] sm:$0x3]  ;;  %v5185_v6 = vcombine.low %v662_v57, %v670_v58  ;;  %v608_v29 = vld [vmem:[#allocation2 + $0x1d8] sm:$0xff]  ;;  %v615_v34 = vld [vmem:[#allocation2 + $0x210] sm:$0xff]  ;;  %s6661_s30 = sld [smem:[#allocation20_spill]] }
  0x67   : > { %1408 = vmatpush1.bf16.msra.mxu0 %v5119_v35  ;;  %1449 = vmatpush1.bf16.msra.mxu1 %v5121_v36  ;;  %v6203_v11 = vpack.c.bf16 %v547_v5, %v547_v5  ;;  %v5126_v33 = vcombine.high %v600_v28, %v608_v29  ;;  %v623_v35 = vld [vmem:[#allocation2 + $0x250] sm:$0xff]  ;;  %v616_v36 = vld [vmem:[#allocation2 + $0x218] sm:$0xff]  ;;  %v5125_v39 = vcombine.low %v600_v28, %v608_v29  ;;  %v553_v3 = vld [vmem:[#allocation2 + $0x20] sm:$0xff] }
  0x68   : > { %1409 = vmatprep.subr.bf16.mxu0 %v5136_v37  ;;  %1450 = vmatprep.subr.bf16.mxu1 %v5138_v38  ;;  %v624_v37 = vld [vmem:[#allocation2 + $0x258] sm:$0xff]  ;;  %v5123_v38 = vcombine.low %v599_v26, %v607_v27  ;;  %v5140_v40 = vcombine.high %v615_v34, %v623_v35  ;;  %v631_v42 = vld [vmem:[#allocation2 + $0x290] sm:$0xff]  ;;  %v554_v5 = vld [vmem:[#allocation2 + $0x28] sm:$0xff] }
  0x69   : > { %v5142_v41 = vcombine.high %v616_v36, %v624_v37  ;;  %v5141_v47 = vcombine.low %v616_v36, %v624_v37  ;;  %v647_v50 = vld [vmem:[#allocation2 + $0x310] sm:$0xff]  ;;  %v569_v12 = vld [vmem:[#allocation2 + $0xa0] sm:$0xff] }
  0x6a   : > { %v663_v58 = vld [vmem:[#allocation2 + $0x390] sm:$0xff]  ;;  %v577_v13 = vld [vmem:[#allocation2 + $0xe0] sm:$0xff] }
  0x6b   : > { %1410 = vmatpush1.bf16.msra.mxu0 %v5135_v43  ;;  %1451 = vmatpush1.bf16.msra.mxu1 %v5137_v44  ;;  %v639_v43 = vld [vmem:[#allocation2 + $0x2d0] sm:$0xff]  ;;  %v632_v44 = vld [vmem:[#allocation2 + $0x298] sm:$0xff]  ;;  %v5096_v18 = vcombine.high %v569_v12, %v577_v13  ;;  %v585_v20 = vld [vmem:[#allocation2 + $0x120] sm:$0xff] }
  0x6c   : > { %1411 = vmatprep.subr.bf16.mxu0 %v5152_v45  ;;  %1452 = vmatprep.subr.bf16.mxu1 %v5154_v46  ;;  %v640_v45 = vld [vmem:[#allocation2 + $0x2d8] sm:$0xff]  ;;  %v5139_v46 = vcombine.low %v615_v34, %v623_v35  ;;  %v5156_v48 = vcombine.high %v631_v42, %v639_v43  ;;  %v593_v21 = vld [vmem:[#allocation2 + $0x160] sm:$0xff]  ;;  %s6566_s21 = scalar_lea.hbm %s6661_s30, %s5505_s0 }
  0x6d   : > { %v5158_v49 = vcombine.high %v632_v44, %v640_v45  ;;  %v5157_v55 = vcombine.low %v632_v44, %v640_v45  ;;  %v5112_v26 = vcombine.high %v585_v20, %v593_v21  ;;  %v601_v28 = vld [vmem:[#allocation2 + $0x1a0] sm:$0xff] }
  0x6e   : > { %v609_v29 = vld [vmem:[#allocation2 + $0x1e0] sm:$0xff] }
  0x6f   : > { %1412 = vmatpush1.bf16.msra.mxu0 %v5151_v51  ;;  %1453 = vmatpush1.bf16.msra.mxu1 %v5153_v52  ;;  %v655_v51 = vld [vmem:[#allocation2 + $0x350] sm:$0xff]  ;;  %v648_v52 = vld [vmem:[#allocation2 + $0x318] sm:$0xff]  ;;  %v5128_v34 = vcombine.high %v601_v28, %v609_v29  ;;  %v617_v36 = vld [vmem:[#allocation2 + $0x220] sm:$0xff] }
  0x70   : > { %1413 = vmatprep.subr.bf16.mxu0 %v5168_v53  ;;  %1454 = vmatprep.subr.bf16.mxu1 %v5170_v54  ;;  %v656_v53 = vld [vmem:[#allocation2 + $0x358] sm:$0xff]  ;;  %v5155_v54 = vcombine.low %v631_v42, %v639_v43  ;;  %v5172_v56 = vcombine.high %v647_v50, %v655_v51  ;;  %v625_v37 = vld [vmem:[#allocation2 + $0x260] sm:$0xff] }
  0x71   : > { %v5174_v57 = vcombine.high %v648_v52, %v656_v53  ;;  %v5173_v63 = vcombine.low %v648_v52, %v656_v53  ;;  %v5144_v42 = vcombine.high %v617_v36, %v625_v37  ;;  %v633_v44 = vld [vmem:[#allocation2 + $0x2a0] sm:$0xff] }
  0x72   : > { %v641_v45 = vld [vmem:[#allocation2 + $0x2e0] sm:$0xff] }
  0x73   : > { %1414 = vmatpush1.bf16.msra.mxu0 %v5167_v59  ;;  %1455 = vmatpush1.bf16.msra.mxu1 %v5169_v60  ;;  %v671_v59 = vld [vmem:[#allocation2 + $0x3d0] sm:$0xff]  ;;  %v664_v60 = vld [vmem:[#allocation2 + $0x398] sm:$0xff]  ;;  %v649_v52 = vld [vmem:[#allocation2 + $0x320] sm:$0xff] }
  0x74   : > { %1415 = vmatprep.subr.bf16.mxu0 %v5184_v61  ;;  %1456 = vmatprep.subr.bf16.mxu1 %v5186_v62  ;;  %v672_v61 = vld [vmem:[#allocation2 + $0x3d8] sm:$0xff]  ;;  %v5171_v62 = vcombine.low %v647_v50, %v655_v51  ;;  %v5188_v1 = vcombine.high %v663_v58, %v671_v59  ;;  %v5160_v50 = vcombine.high %v633_v44, %v641_v45  ;;  %v657_v53 = vld [vmem:[#allocation2 + $0x360] sm:$0xff] }
  0x75   : > { %v5190_v2 = vcombine.high %v664_v60, %v672_v61 }
  0x77   : > { %1416 = vmatpush1.bf16.msra.mxu0 %v5183_v4  ;;  %1457 = vmatpush1.bf16.msra.mxu1 %v5185_v6  ;;  %v561_v4 = vld [vmem:[#allocation2 + $0x60] sm:$0xff]  ;;  %v562_v6 = vld [vmem:[#allocation2 + $0x68] sm:$0xff] }
  0x78   : > { %1483 = vmatprep.subr.bf16.mxu0 %v5076_v7  ;;  %1524 = vmatprep.subr.bf16.mxu1 %v5078_v8  ;;  %v5187_v7 = vcombine.low %v663_v58, %v671_v59  ;;  %v5189_v8 = vcombine.low %v664_v60, %v672_v61  ;;  %v5080_v9 = vcombine.high %v553_v3, %v561_v4  ;;  %v665_v60 = vld [vmem:[#allocation2 + $0x3a0] sm:$0xff] }
  0x79   : > { %v5082_v10 = vcombine.high %v554_v5, %v562_v6  ;;  %v5176_v58 = vcombine.high %v649_v52, %v657_v53  ;;  %v673_v61 = vld [vmem:[#allocation2 + $0x3e0] sm:$0xff] }
  0x7a   : > { %1434 = vmatmul.mubr.bf16.vlgmr.msra.gmra.mrb[0].mxu0 %v6203_v11  ;;  %1475 = vmatmul.mubr.bf16.vlgmr.msra.gmra.mrb[0].mxu1 %v6203_v11 }
  0x7b   : > { %1484 = vmatpush1.bf16.msra.mxu0 %v5075_v14  ;;  %1525 = vmatpush1.bf16.msra.mxu1 %v5077_v15  ;;  %v570_v14 = vld [vmem:[#allocation2 + $0xa8] sm:$0xff] }
  0x7c   : > { %1485 = vmatprep.subr.bf16.mxu0 %v5092_v16  ;;  %1526 = vmatprep.subr.bf16.mxu1 %v5094_v17  ;;  %v578_v15 = vld [vmem:[#allocation2 + $0xe8] sm:$0xff]  ;;  %v5079_v16 = vcombine.low %v553_v3, %v561_v4  ;;  %v5081_v17 = vcombine.low %v554_v5, %v562_v6  ;;  %v5192_v3 = vcombine.high %v665_v60, %v673_v61  ;;  %v555_v5 = vld [vmem:[#allocation2 + $0x30] sm:$0xff] }
  0x7d   : > { %1515 = vmatprep.mubr.bf16.mxu0 %v5973_v0  ;;  %1556 = vmatprep.mubr.bf16.mxu1 %v5973_v0  ;;  %v5098_v19 = vcombine.high %v570_v14, %v578_v15  ;;  %v563_v6 = vld [vmem:[#allocation2 + $0x70] sm:$0xff] }
  0x7f   : > { %1486 = vmatpush1.bf16.msra.mxu0 %v5091_v22  ;;  %1527 = vmatpush1.bf16.msra.mxu1 %v5093_v23  ;;  %v586_v22 = vld [vmem:[#allocation2 + $0x128] sm:$0xff] }
  0x80   : > { %1487 = vmatprep.subr.bf16.mxu0 %v5108_v24  ;;  %1528 = vmatprep.subr.bf16.mxu1 %v5110_v25  ;;  %v594_v23 = vld [vmem:[#allocation2 + $0x168] sm:$0xff]  ;;  %v5095_v24 = vcombine.low %v569_v12, %v577_v13  ;;  %v5097_v25 = vcombine.low %v570_v14, %v578_v15  ;;  %v5084_v12 = vcombine.high %v555_v5, %v563_v6  ;;  %v571_v14 = vld [vmem:[#allocation2 + $0xb0] sm:$0xff] }
  0x81   : > { %v5114_v27 = vcombine.high %v586_v22, %v594_v23  ;;  %v579_v15 = vld [vmem:[#allocation2 + $0xf0] sm:$0xff] }
  0x83   : > { %1488 = vmatpush1.bf16.msra.mxu0 %v5107_v30  ;;  %1529 = vmatpush1.bf16.msra.mxu1 %v5109_v31  ;;  %v602_v30 = vld [vmem:[#allocation2 + $0x1a8] sm:$0xff] }
  0x84   : > { %1489 = vmatprep.subr.bf16.mxu0 %v5124_v32  ;;  %1530 = vmatprep.subr.bf16.mxu1 %v5126_v33  ;;  %v610_v31 = vld [vmem:[#allocation2 + $0x1e8] sm:$0xff]  ;;  %v5111_v32 = vcombine.low %v585_v20, %v593_v21  ;;  %v5113_v33 = vcombine.low %v586_v22, %v594_v23  ;;  %v5100_v20 = vcombine.high %v571_v14, %v579_v15  ;;  %v587_v22 = vld [vmem:[#allocation2 + $0x130] sm:$0xff] }
  0x85   : > { %v5130_v35 = vcombine.high %v602_v30, %v610_v31  ;;  %v595_v23 = vld [vmem:[#allocation2 + $0x170] sm:$0xff] }
  0x87   : > { %1490 = vmatpush1.bf16.msra.mxu0 %v5123_v38  ;;  %1531 = vmatpush1.bf16.msra.mxu1 %v5125_v39  ;;  %v618_v38 = vld [vmem:[#allocation2 + $0x228] sm:$0xff] }
  0x88   : > { %1491 = vmatprep.subr.bf16.mxu0 %v5140_v40  ;;  %1532 = vmatprep.subr.bf16.mxu1 %v5142_v41  ;;  %v626_v39 = vld [vmem:[#allocation2 + $0x268] sm:$0xff]  ;;  %v5127_v40 = vcombine.low %v601_v28, %v609_v29  ;;  %v5129_v41 = vcombine.low %v602_v30, %v610_v31  ;;  %v5116_v28 = vcombine.high %v587_v22, %v595_v23  ;;  %v603_v30 = vld [vmem:[#allocation2 + $0x1b0] sm:$0xff] }
  0x89   : > { %v5146_v43 = vcombine.high %v618_v38, %v626_v39  ;;  %v611_v31 = vld [vmem:[#allocation2 + $0x1f0] sm:$0xff] }
  0x8b   : > { %1492 = vmatpush1.bf16.msra.mxu0 %v5139_v46  ;;  %1533 = vmatpush1.bf16.msra.mxu1 %v5141_v47  ;;  %v634_v46 = vld [vmem:[#allocation2 + $0x2a8] sm:$0xff] }
  0x8c   : > { %1493 = vmatprep.subr.bf16.mxu0 %v5156_v48  ;;  %1534 = vmatprep.subr.bf16.mxu1 %v5158_v49  ;;  %v642_v47 = vld [vmem:[#allocation2 + $0x2e8] sm:$0xff]  ;;  %v5143_v48 = vcombine.low %v617_v36, %v625_v37  ;;  %v5145_v49 = vcombine.low %v618_v38, %v626_v39  ;;  %v5132_v36 = vcombine.high %v603_v30, %v611_v31  ;;  %v619_v38 = vld [vmem:[#allocation2 + $0x230] sm:$0xff] }
  0x8d   : > { %v5162_v51 = vcombine.high %v634_v46, %v642_v47  ;;  %v627_v39 = vld [vmem:[#allocation2 + $0x270] sm:$0xff] }
  0x8f   : > { %1494 = vmatpush1.bf16.msra.mxu0 %v5155_v54  ;;  %1535 = vmatpush1.bf16.msra.mxu1 %v5157_v55  ;;  %v650_v54 = vld [vmem:[#allocation2 + $0x328] sm:$0xff] }
  0x90   : > { %1495 = vmatprep.subr.bf16.mxu0 %v5172_v56  ;;  %1536 = vmatprep.subr.bf16.mxu1 %v5174_v57  ;;  %v658_v55 = vld [vmem:[#allocation2 + $0x368] sm:$0xff]  ;;  %v5159_v56 = vcombine.low %v633_v44, %v641_v45  ;;  %v5161_v57 = vcombine.low %v634_v46, %v642_v47  ;;  %v5148_v44 = vcombine.high %v619_v38, %v627_v39  ;;  %v635_v46 = vld [vmem:[#allocation2 + $0x2b0] sm:$0xff] }
  0x91   : > { %v5178_v59 = vcombine.high %v650_v54, %v658_v55  ;;  %v643_v47 = vld [vmem:[#allocation2 + $0x2f0] sm:$0xff] }
  0x93   : > { %1496 = vmatpush1.bf16.msra.mxu0 %v5171_v62  ;;  %1537 = vmatpush1.bf16.msra.mxu1 %v5173_v63  ;;  %v666_v62 = vld [vmem:[#allocation2 + $0x3a8] sm:$0xff] }
  0x94   : > { %1497 = vmatprep.subr.bf16.mxu0 %v5188_v1  ;;  %1538 = vmatprep.subr.bf16.mxu1 %v5190_v2  ;;  %v674_v63 = vld [vmem:[#allocation2 + $0x3e8] sm:$0xff]  ;;  %v5175_v1 = vcombine.low %v649_v52, %v657_v53  ;;  %v5177_v2 = vcombine.low %v650_v54, %v658_v55  ;;  %v5164_v52 = vcombine.high %v635_v46, %v643_v47  ;;  %v651_v54 = vld [vmem:[#allocation2 + $0x330] sm:$0xff] }
  0x95   : > { %v5194_v4 = vcombine.high %v666_v62, %v674_v63  ;;  %v659_v55 = vld [vmem:[#allocation2 + $0x370] sm:$0xff] }
  0x97   : > { %1498 = vmatpush1.bf16.msra.mxu0 %v5187_v7  ;;  %1539 = vmatpush1.bf16.msra.mxu1 %v5189_v8  ;;  %v556_v7 = vld [vmem:[#allocation2 + $0x38] sm:$0xff] }
  0x98   : > { %1565 = vmatprep.subr.bf16.mxu0 %v5080_v9  ;;  %1606 = vmatprep.subr.bf16.mxu1 %v5082_v10  ;;  %v564_v8 = vld [vmem:[#allocation2 + $0x78] sm:$0xff]  ;;  %v5191_v9 = vcombine.low %v665_v60, %v673_v61  ;;  %v5193_v10 = vcombine.low %v666_v62, %v674_v63  ;;  %v5180_v60 = vcombine.high %v651_v54, %v659_v55  ;;  %v667_v62 = vld [vmem:[#allocation2 + $0x3b0] sm:$0xff] }
  0x99   : > { %v5086_v13 = vcombine.high %v556_v7, %v564_v8  ;;  %v675_v63 = vld [vmem:[#allocation2 + $0x3f0] sm:$0xff] }
  0x9a   : > { %1516 = vmatmul.mubr.bf16.vlgmr.msra.gmra.mrb[4].mxu0 %v6203_v11  ;;  %1557 = vmatmul.mubr.bf16.vlgmr.msra.gmra.mrb[4].mxu1 %v6203_v11 }
  0x9b   : > { %1566 = vmatpush1.bf16.msra.mxu0 %v5079_v16  ;;  %1607 = vmatpush1.bf16.msra.mxu1 %v5081_v17  ;;  %v572_v16 = vld [vmem:[#allocation2 + $0xb8] sm:$0xff] }
  0x9c   : > { %1567 = vmatprep.subr.bf16.mxu0 %v5096_v18  ;;  %1608 = vmatprep.subr.bf16.mxu1 %v5098_v19  ;;  %v580_v17 = vld [vmem:[#allocation2 + $0xf8] sm:$0xff]  ;;  %v5083_v18 = vcombine.low %v555_v5, %v563_v6  ;;  %v5085_v19 = vcombine.low %v556_v7, %v564_v8  ;;  %v5196_v5 = vcombine.high %v667_v62, %v675_v63 }
  0x9d   : > { %1597 = vmatprep.mubr.bf16.mxu0 %v5973_v0  ;;  %1638 = vmatprep.mubr.bf16.mxu1 %v5973_v0  ;;  %v5102_v21 = vcombine.high %v572_v16, %v580_v17  ;;  %v5195_v7 = vcombine.low %v667_v62, %v675_v63 }
  0x9f   : > { %1568 = vmatpush1.bf16.msra.mxu0 %v5095_v24  ;;  %1609 = vmatpush1.bf16.msra.mxu1 %v5097_v25  ;;  %v588_v24 = vld [vmem:[#allocation2 + $0x138] sm:$0xff] }
  0xa0   : > { %1569 = vmatprep.subr.bf16.mxu0 %v5112_v26  ;;  %1610 = vmatprep.subr.bf16.mxu1 %v5114_v27  ;;  %v596_v25 = vld [vmem:[#allocation2 + $0x178] sm:$0xff]  ;;  %v5099_v26 = vcombine.low %v571_v14, %v579_v15  ;;  %v5101_v27 = vcombine.low %v572_v16, %v580_v17 }
  0xa1   : > { %v5118_v29 = vcombine.high %v588_v24, %v596_v25 }
  0xa3   : > { %1570 = vmatpush1.bf16.msra.mxu0 %v5111_v32  ;;  %1611 = vmatpush1.bf16.msra.mxu1 %v5113_v33  ;;  %v604_v32 = vld [vmem:[#allocation2 + $0x1b8] sm:$0xff] }
  0xa4   : > { %1571 = vmatprep.subr.bf16.mxu0 %v5128_v34  ;;  %1612 = vmatprep.subr.bf16.mxu1 %v5130_v35  ;;  %v612_v33 = vld [vmem:[#allocation2 + $0x1f8] sm:$0xff]  ;;  %v5115_v34 = vcombine.low %v587_v22, %v595_v23  ;;  %v5117_v35 = vcombine.low %v588_v24, %v596_v25 }
  0xa5   : > { %v5134_v37 = vcombine.high %v604_v32, %v612_v33 }
  0xa7   : > { %1572 = vmatpush1.bf16.msra.mxu0 %v5127_v40  ;;  %1613 = vmatpush1.bf16.msra.mxu1 %v5129_v41  ;;  %v620_v40 = vld [vmem:[#allocation2 + $0x238] sm:$0xff] }
  0xa8   : > { %1573 = vmatprep.subr.bf16.mxu0 %v5144_v42  ;;  %1614 = vmatprep.subr.bf16.mxu1 %v5146_v43  ;;  %v628_v41 = vld [vmem:[#allocation2 + $0x278] sm:$0xff]  ;;  %v5131_v42 = vcombine.low %v603_v30, %v611_v31  ;;  %v5133_v43 = vcombine.low %v604_v32, %v612_v33 }
  0xa9   : > { %v5150_v45 = vcombine.high %v620_v40, %v628_v41 }
  0xab   : > { %1574 = vmatpush1.bf16.msra.mxu0 %v5143_v48  ;;  %1615 = vmatpush1.bf16.msra.mxu1 %v5145_v49  ;;  %v636_v48 = vld [vmem:[#allocation2 + $0x2b8] sm:$0xff] }
  0xac   : > { %1575 = vmatprep.subr.bf16.mxu0 %v5160_v50  ;;  %1616 = vmatprep.subr.bf16.mxu1 %v5162_v51  ;;  %v644_v49 = vld [vmem:[#allocation2 + $0x2f8] sm:$0xff]  ;;  %v5147_v50 = vcombine.low %v619_v38, %v627_v39  ;;  %v5149_v51 = vcombine.low %v620_v40, %v628_v41  ;;  %v1878_v38 = vld [vmem:[%s6612_s4] sm:$0xff] }
  0xad   : > { %v5166_v53 = vcombine.high %v636_v48, %v644_v49  ;;  %1882 = vperm.xlu0 %5769, %v1878_v38   ;;  %v2000_v41 = vld [vmem:[#allocation5] sm:$0xff] }
  0xaf   : > { %1576 = vmatpush1.bf16.msra.mxu0 %v5159_v56  ;;  %1617 = vmatpush1.bf16.msra.mxu1 %v5161_v57  ;;  %v652_v56 = vld [vmem:[#allocation2 + $0x338] sm:$0xff] }
  0xb0   : > { %1577 = vmatprep.subr.bf16.mxu0 %v5176_v58  ;;  %1618 = vmatprep.subr.bf16.mxu1 %v5178_v59  ;;  %v660_v57 = vld [vmem:[#allocation2 + $0x378] sm:$0xff]  ;;  %v5163_v58 = vcombine.low %v635_v46, %v643_v47  ;;  %v5165_v59 = vcombine.low %v636_v48, %v644_v49  ;;  %v2016_v47 = vld [vmem:[#allocation5 + $0x80] sm:$0xff] }
  0xb1   : > { %v5182_v61 = vcombine.high %v652_v56, %v660_v57  ;;  %v2024_v48 = vld [vmem:[#allocation5 + $0xc0] sm:$0xff] }
  0xb2   : > { %v5238_v49 = vcombine.high %v2016_v47, %v2024_v48 }
  0xb3   : > { %1578 = vmatpush1.bf16.msra.mxu0 %v5175_v1  ;;  %1619 = vmatpush1.bf16.msra.mxu1 %v5177_v2  ;;  %v668_v1 = vld [vmem:[#allocation2 + $0x3b8] sm:$0xff] }
  0xb4   : > { %1579 = vmatprep.subr.bf16.mxu0 %v5192_v3  ;;  %1620 = vmatprep.subr.bf16.mxu1 %v5194_v4  ;;  %v676_v2 = vld [vmem:[#allocation2 + $0x3f8] sm:$0xff]  ;;  %v5179_v3 = vcombine.low %v651_v54, %v659_v55  ;;  %v5181_v4 = vcombine.low %v652_v56, %v660_v57  ;;  %v2048_v55 = vld [vmem:[#allocation5 + $0x180] sm:$0xff] }
  0xb5   : > { %v5198_v6 = vcombine.high %v668_v1, %v676_v2  ;;  %v5197_v8 = vcombine.low %v668_v1, %v676_v2  ;;  %v2056_v56 = vld [vmem:[#allocation5 + $0x1c0] sm:$0xff] }
  0xb7   : > { %1580 = vmatpush1.bf16.msra.mxu0 %v5191_v9  ;;  %1621 = vmatpush1.bf16.msra.mxu1 %v5193_v10  ;;  %v681_v9 = vlaneseq }
  0xb8   : > { %1647 = vmatprep.subr.bf16.mxu0 %v5084_v12  ;;  %1688 = vmatprep.subr.bf16.mxu1 %v5086_v13  ;;  %v6227_v13 = vld [vmem:[%s6610_s2] sm:$0xff] }
  0xb9   : > { %v6219_v10 = vshrl.u32 %v681_v9, 7  ;;  %v2080_v9 = vld [vmem:[#allocation5 + $0x280] sm:$0xff] }
  0xba   : > { %1598 = vmatmul.mubr.bf16.vlgmr.msra.gmra.mrb[8].mxu0 %v6203_v11  ;;  %1639 = vmatmul.mubr.bf16.vlgmr.msra.gmra.mrb[8].mxu1 %v6203_v11 }
  0xbb   : > { %1648 = vmatpush1.bf16.msra.mxu0 %v5083_v18  ;;  %1689 = vmatpush1.bf16.msra.mxu1 %v5085_v19  ;;  %v6222_v12 = vsub.s32 0, %v6219_v10  ;;  %v6230_v14 = vsub.s32 2, %v6219_v10  ;;  %v6233_v15 = vsub.s32 1, %v6219_v10  ;;  %v6236_v16 = vsub.s32 3, %v6219_v10 }
  0xbc   : > { %1649 = vmatprep.subr.bf16.mxu0 %v5100_v20  ;;  %1690 = vmatprep.subr.bf16.mxu1 %v5102_v21  ;;  %v5974_v20 = vmov 0.0  }
  0xbd   : > { %1679 = vmatprep.mubr.bf16.mxu0 %v5973_v0  ;;  %1720 = vmatprep.mubr.bf16.mxu1 %v5973_v0  ;;  %v692_v17 = vrot.slane %v6227_v13, %v6230_v14  ;;  %v688_v18 = vrot.slane %v6227_v13, %v6233_v15  ;;  %v696_v19 = vrot.slane %v6227_v13, %v6236_v16 }
  0xbf   : > { %1650 = vmatpush1.bf16.msra.mxu0 %v5099_v26  ;;  %1691 = vmatpush1.bf16.msra.mxu1 %v5101_v27 }
  0xc0   : > { %1651 = vmatprep.subr.bf16.mxu0 %v5116_v28  ;;  %1692 = vmatprep.subr.bf16.mxu1 %v5118_v29 }
  0xc3   : > { %1652 = vmatpush1.bf16.msra.mxu0 %v5115_v34  ;;  %1693 = vmatpush1.bf16.msra.mxu1 %v5117_v35 }
  0xc4   : > { %1653 = vmatprep.subr.bf16.mxu0 %v5132_v36  ;;  %1694 = vmatprep.subr.bf16.mxu1 %v5134_v37 }
  0xc7   : > { %1654 = vmatpush1.bf16.msra.mxu0 %v5131_v42  ;;  %1695 = vmatpush1.bf16.msra.mxu1 %v5133_v43  ;;  %v1879_v43 = vld [vmem:[%s6612_s4 + $0x8] sm:$0xff] }
  0xc8   : > { %1655 = vmatprep.subr.bf16.mxu0 %v5148_v44  ;;  %1696 = vmatprep.subr.bf16.mxu1 %v5150_v45  ;;  %v2008_v44 = vld [vmem:[#allocation5 + $0x40] sm:$0xff] }
  0xc9   : > { %v5221_v45 = vcombine.low %v2000_v41, %v2008_v44  ;;  %v5222_v46 = vcombine.high %v2000_v41, %v2008_v44  ;;  %1887 = vperm.xlu0 %5769, %v1879_v43  }
  0xcb   : > { %1656 = vmatpush1.bf16.msra.mxu0 %v5147_v50  ;;  %1697 = vmatpush1.bf16.msra.mxu1 %v5149_v51  ;;  %v2032_v50 = vld [vmem:[#allocation5 + $0x100] sm:$0xff] }
  0xcc   : > { %1657 = vmatprep.subr.bf16.mxu0 %v5164_v52  ;;  %1698 = vmatprep.subr.bf16.mxu1 %v5166_v53  ;;  %v2040_v51 = vld [vmem:[#allocation5 + $0x140] sm:$0xff]  ;;  %v5237_v53 = vcombine.low %v2016_v47, %v2024_v48 }
  0xcd   : > { %v3975_v52 = vld [vmem:[%s6617_s9] sm:$0xff]  ;;  %v5254_v54 = vcombine.high %v2032_v50, %v2040_v51  ;;  %v5253_v57 = vcombine.low %v2032_v50, %v2040_v51 }
  0xce   : > { %3979 = vperm.xlu0 %5769, %v3975_v52   ;;  %v2128_v47 = vld [vmem:[#allocation5 + $0x400] sm:$0xff] }
  0xcf   : > { %1658 = vmatpush1.bf16.msra.mxu0 %v5163_v58  ;;  %1699 = vmatpush1.bf16.msra.mxu1 %v5165_v59  ;;  %v5270_v58 = vcombine.high %v2048_v55, %v2056_v56  ;;  %v2136_v48 = vld [vmem:[#allocation5 + $0x440] sm:$0xff] }
  0xd0   : > { %1659 = vmatprep.subr.bf16.mxu0 %v5180_v60  ;;  %1700 = vmatprep.subr.bf16.mxu1 %v5182_v61  ;;  %v2064_v60 = vld [vmem:[#allocation5 + $0x200] sm:$0xff] }
  0xd1   : > { %v2072_v61 = vld [vmem:[#allocation5 + $0x240] sm:$0xff] }
  0xd3   : > { %1660 = vmatpush1.bf16.msra.mxu0 %v5179_v3  ;;  %1701 = vmatpush1.bf16.msra.mxu1 %v5181_v4  ;;  %v5269_v3 = vcombine.low %v2048_v55, %v2056_v56 }
  0xd4   : > { %1661 = vmatprep.subr.bf16.mxu0 %v5196_v5  ;;  %1702 = vmatprep.subr.bf16.mxu1 %v5198_v6  ;;  %v5286_v5 = vcombine.high %v2064_v60, %v2072_v61 }
  0xd7   : > { %1662 = vmatpush1.bf16.msra.mxu0 %v5195_v7  ;;  %1703 = vmatpush1.bf16.msra.mxu1 %v5197_v8 }
  0xd8   : > { %3536 = vmatprep.subr.bf16.mxu1 %v5222_v46 }
  0xda   : > { %1680 = vmatmul.mubr.bf16.vlgmr.msra.gmra.mrb[12].mxu0 %v6203_v11  ;;  %1721 = vmatmul.mubr.bf16.vlgmr.msra.gmra.mrb[12].mxu1 %v6203_v11  ;;  %v684_v11 = vrot.slane %v6227_v13, %v6222_v12 }
  0xdb   : > { %1961 = vmatprep.mubr.f32.mxu0 %v5974_v20  ;;  %3537 = vmatpush1.bf16.msra.mxu1 %v5221_v45 }
  0xdc   : > { %3538 = vmatprep.subr.bf16.mxu1 %v5238_v49 }
  0xdf   : > { %3539 = vmatpush1.bf16.msra.mxu1 %v5237_v53 }
  0xe0   : > { %3540 = vmatprep.subr.bf16.mxu1 %v5254_v54 }
  0xe3   : > { %3541 = vmatpush1.bf16.msra.mxu1 %v5253_v57 }
  0xe4   : > { %3542 = vmatprep.subr.bf16.mxu1 %v5270_v58 }
  0xe7   : > { %3543 = vmatpush1.bf16.msra.mxu1 %v5269_v3  ;;  %v5349_v3 = vcombine.low %v2128_v47, %v2136_v48 }
  0xe8   : > { %3544 = vmatprep.subr.bf16.mxu1 %v5286_v5 }
 0x14d   : > { %v1435_v21 = vpop.f32.mrb[0].mxu0  ;;  %v1476_v23 = vpop.f32.mrb[0].mxu1 }
 0x14e   : > { %v6247_v22 = vadd.f32 %v1435_v21, %v684_v11  ;;  %v1437_v24 = vpop.f32.mrb[1].mxu0  ;;  %v1477_v25 = vadd.f32 %v1476_v23, %v692_v17  ;;  %v1478_v27 = vpop.f32.mrb[1].mxu1  ;;  %v2088_v11 = vld [vmem:[#allocation5 + $0x2c0] sm:$0xff]  ;;  %v5285_v21 = vcombine.low %v2064_v60, %v2072_v61  ;;  %v5350_v60 = vcombine.high %v2128_v47, %v2136_v48 }
 0x14f   : > { %v6249_v26 = vadd.f32 %v1437_v24, %v688_v18  ;;  %v1439_v28 = vpop.f32.mrb[2].mxu0  ;;  %v6252_v30 = vadd.f32 %v1478_v27, %v696_v19  ;;  %v1480_v31 = vpop.f32.mrb[2].mxu1 }
 0x150   : > { %v1745_v29 = vmin.f32 %v6247_v22, 0.0  ;;  %v1440_v32 = vpop.f32.mrb[3].mxu0  ;;  %v1747_v33 = vmin.f32 %v1477_v25, 0.0  ;;  %v1481_v35 = vpop.f32.mrb[3].mxu1  ;;  %vm1731_vm0 = vcmp.gt.f32.partialorder %v1477_v25, 0.0  ;;  %vm1729_vm2 = vcmp.gt.f32.partialorder %v6247_v22, 0.0  ;;  %3545 = vmatpush1.bf16.msra.mxu1 %v5285_v21 }
 0x151   : > { %v1746_v34 = vmin.f32 %v6249_v26, 0.0  ;;  %v1748_v37 = vmin.f32 %v6252_v30, 0.0  ;;  %vm1732_vm3 = vcmp.gt.f32.partialorder %v6252_v30, 0.0  ;;  %vm1730_vm4 = vcmp.gt.f32.partialorder %v6249_v26, 0.0  ;;  %v2104_v31 = vld [vmem:[#allocation5 + $0x340] sm:$0xff] }
 0x152   : > { %v1761_v36 = vmul.f32 1.442695, %v1745_v29  ;;  %v1765_v39 = vmul.f32 1.442695, %v1747_v33  ;;  %v699_v28 = vsub.s32 4, %v6219_v10  ;;  %v2096_v29 = vld [vmem:[#allocation5 + $0x300] sm:$0xff] }
 0x153   : > { %v1763_v40 = vmul.f32 1.442695, %v1746_v34  ;;  %v1767_v42 = vmul.f32 1.442695, %v1748_v37  ;;  %v711_v33 = vsub.s32 7, %v6219_v10  ;;  %v5301_v34 = vcombine.low %v2080_v9, %v2088_v11  ;;  %v2120_v37 = vld [vmem:[#allocation5 + $0x3c0] sm:$0xff] }
 0x154   : > { %5785 = vpow2.f32 %v1761_v36  ;;  %v5318_v35 = vcombine.high %v2096_v29, %v2104_v31  ;;  %v2112_v36 = vld [vmem:[#allocation5 + $0x380] sm:$0xff]  ;;  %v5317_v41 = vcombine.low %v2096_v29, %v2104_v31 }
 0x155   : > { %5787 = vpow2.f32 %v1765_v39  ;;  %v5334_v43 = vcombine.high %v2112_v36, %v2120_v37 }
 0x156   : > { %5789 = vpow2.f32 %v1763_v40  ;;  %v712_v40 = vrot.slane %v6227_v13, %v711_v33 }
 0x157   : > { %5791 = vpow2.f32 %v1767_v42 }
 0x15e   : > { %v5786_v59 = vpop.eup %5785 }
 0x15f   : > { %v5788_v62 = vpop.eup %5787  ;;  %v5199_v1 = vadd.f32 -1.0, %v5786_v59 }
 0x160   : > { %v5790_v63 = vpop.eup %5789  ;;  %v5201_v2 = vadd.f32 -1.0, %v5788_v62 }
 0x161   : > { %v5792_v4 = vpop.eup %5791  ;;  %v5200_v7 = vadd.f32 -1.0, %v5790_v63  ;;  %v1809_v18 = vsel %vm1729_vm2, %v6247_v22, %v5199_v1  ;;  %v707_v22 = vsub.s32 6, %v6219_v10 }
 0x162   : > { %v1811_v6 = vsel %vm1731_vm0, %v1477_v25, %v5201_v2  ;;  %v5202_v8 = vadd.f32 -1.0, %v5792_v4  ;;  %v5302_v25 = vcombine.high %v2080_v9, %v2088_v11 }
 0x163   : > { %v1827_v17 = vrot.slane %v1811_v6, 6  ;;  %v1810_v27 = vsel %vm1730_vm4, %v6249_v26, %v5200_v7  ;;  %v700_v26 = vrot.slane %v6227_v13, %v699_v28  ;;  %v708_v38 = vrot.slane %v6227_v13, %v707_v22 }
 0x164   : > { %v1812_v19 = vsel %vm1732_vm3, %v6252_v30, %v5202_v8  ;;  %v703_v30 = vsub.s32 5, %v6219_v10  ;;  %3546 = vmatprep.subr.bf16.mxu1 %v5302_v25  ;;  %vm1890_vm3 = vcmask 130048  }
 0x165   : > { %v6270_v23 = vsel %vm1861_vm1, %v1809_v18, %v1827_v17  ;;  %v1828_v24 = vrot.slane %v1812_v19, 6  ;;  %3547 = vmatpush1.bf16.msra.mxu1 %v5301_v34 }
 0x166   : > { %v704_v39 = vrot.slane %v6227_v13, %v703_v30  ;;  %3548 = vmatprep.subr.bf16.mxu1 %v5318_v35  ;;  %v5333_v13 = vcombine.low %v2112_v36, %v2120_v37  ;;  %v678_v36 = vld [vmem:[%s6610_s2 + $0x8] sm:$0xff] }
 0x167   : > { %v6278_v32 = vsel %vm1861_vm1, %v1810_v27, %v1828_v24 }
 0x169   : > { %3549 = vmatpush1.bf16.msra.mxu1 %v5317_v41 }
 0x16a   : > { %3550 = vmatprep.subr.bf16.mxu1 %v5334_v43 }
 0x16d   : > { %v1517_v42 = vpop.f32.mrb[4].mxu0  ;;  %v1558_v45 = vpop.f32.mrb[4].mxu1  ;;  %3551 = vmatpush1.bf16.msra.mxu1 %v5333_v13 }
 0x16e   : > { %v1518_v44 = vadd.f32 %v1517_v42, %v700_v26  ;;  %v1519_v46 = vpop.f32.mrb[5].mxu0  ;;  %v1559_v49 = vadd.f32 %v1558_v45, %v708_v38  ;;  %v1560_v51 = vpop.f32.mrb[5].mxu1  ;;  %3552 = vmatprep.subr.bf16.mxu1 %v5350_v60  ;;  %v716_v38 = vrot.slane %v678_v36, %v6222_v12 }
 0x16f   : > { %v1520_v50 = vadd.f32 %v1519_v46, %v704_v39  ;;  %v1521_v52 = vpop.f32.mrb[6].mxu0  ;;  %v1561_v54 = vadd.f32 %v1560_v51, %v712_v40  ;;  %v1562_v55 = vpop.f32.mrb[6].mxu1  ;;  %v720_v39 = vrot.slane %v678_v36, %v6233_v15  ;;  %v728_v40 = vrot.slane %v678_v36, %v6236_v16 }
 0x170   : > { %v1749_v53 = vmin.f32 %v1518_v44, 0.0  ;;  %v1522_v56 = vpop.f32.mrb[7].mxu0  ;;  %v1751_v57 = vmin.f32 %v1559_v49, 0.0  ;;  %v1563_v59 = vpop.f32.mrb[7].mxu1  ;;  %vm1733_vm5 = vcmp.gt.f32.partialorder %v1518_v44, 0.0  ;;  %vm1735_vm7 = vcmp.gt.f32.partialorder %v1559_v49, 0.0 }
 0x171   : > { %v1750_v58 = vmin.f32 %v1520_v50, 0.0  ;;  %v1752_v62 = vmin.f32 %v1561_v54, 0.0  ;;  %3553 = vmatpush1.bf16.msra.mxu1 %v5349_v3  ;;  %vm1734_vm9 = vcmp.gt.f32.partialorder %v1520_v50, 0.0  ;;  %vm1736_vm10 = vcmp.gt.f32.partialorder %v1561_v54, 0.0 }
 0x172   : > { %v1769_v61 = vmul.f32 1.442695, %v1749_v53  ;;  %v1773_v63 = vmul.f32 1.442695, %v1751_v57 }
 0x173   : > { %v1771_v1 = vmul.f32 1.442695, %v1750_v58  ;;  %v1775_v2 = vmul.f32 1.442695, %v1752_v62 }
 0x174   : > { %5793 = vpow2.f32 %v1769_v61 }
 0x175   : > { %5795 = vpow2.f32 %v1773_v63 }
 0x176   : > { %5797 = vpow2.f32 %v1771_v1 }
 0x177   : > { %5799 = vpow2.f32 %v1775_v2 }
 0x17e   : > { %v5794_v4 = vpop.eup %5793 }
 0x17f   : > { %v5796_v5 = vpop.eup %5795  ;;  %v5203_v6 = vadd.f32 -1.0, %v5794_v4 }
 0x180   : > { %v5798_v7 = vpop.eup %5797  ;;  %v5205_v8 = vadd.f32 -1.0, %v5796_v5 }
 0x181   : > { %v5800_v9 = vpop.eup %5799  ;;  %v1813_v11 = vsel %vm1733_vm5, %v1518_v44, %v5203_v6  ;;  %v5204_v17 = vadd.f32 -1.0, %v5798_v7 }
 0x182   : > { %v1833_v18 = vrot.slane %v1813_v11, 4  ;;  %v1815_v19 = vsel %vm1735_vm7, %v1559_v49, %v5205_v8  ;;  %v5206_v21 = vadd.f32 -1.0, %v5800_v9 }
 0x183   : > { %v1839_v24 = vrot.slane %v1815_v19, 2  ;;  %v1814_v25 = vsel %vm1734_vm9, %v1520_v50, %v5204_v17  ;;  %v740_v19 = vrot.slane %v678_v36, %v707_v22 }
 0x184   : > { %v1865_v27 = vsel %vm1864_vm6, %v6270_v23, %v1833_v18  ;;  %v1834_v29 = vrot.slane %v1814_v25, 4  ;;  %v1816_v31 = vsel %vm1736_vm10, %v1561_v54, %v5206_v21  ;;  %v724_v23 = vrot.slane %v678_v36, %v6230_v14 }
 0x185   : > { %v1840_v34 = vrot.slane %v1816_v31, 2  ;;  %v6296_v35 = vsel %vm1867_vm8, %v1865_v27, %v1839_v24  ;;  %v732_v18 = vrot.slane %v678_v36, %v699_v28  ;;  %v736_v21 = vrot.slane %v678_v36, %v703_v30 }
 0x186   : > { %v1866_v26 = vsel %vm1864_vm6, %v6278_v32, %v1834_v29  ;;  %v744_v24 = vrot.slane %v678_v36, %v711_v33 }
 0x187   : > { %v6304_v37 = vsel %vm1867_vm8, %v1866_v26, %v1840_v34 }
 0x18d   : > { %v1599_v41 = vpop.f32.mrb[8].mxu0  ;;  %v1640_v43 = vpop.f32.mrb[8].mxu1 }
 0x18e   : > { %v1600_v42 = vadd.f32 %v1599_v41, %v716_v38  ;;  %v1601_v44 = vpop.f32.mrb[9].mxu0  ;;  %v1641_v32 = vadd.f32 %v1640_v43, %v724_v23  ;;  %v1642_v46 = vpop.f32.mrb[9].mxu1 }
 0x18f   : > { %v1602_v45 = vadd.f32 %v1601_v44, %v720_v39  ;;  %v1603_v47 = vpop.f32.mrb[10].mxu0  ;;  %v1643_v49 = vadd.f32 %v1642_v46, %v728_v40  ;;  %v1644_v50 = vpop.f32.mrb[10].mxu1 }
 0x190   : > { %v1753_v48 = vmin.f32 %v1600_v42, 0.0  ;;  %v1604_v51 = vpop.f32.mrb[11].mxu0  ;;  %v1755_v52 = vmin.f32 %v1641_v32, 0.0  ;;  %v1645_v54 = vpop.f32.mrb[11].mxu1  ;;  %vm1739_vm11 = vcmp.gt.f32.partialorder %v1641_v32, 0.0  ;;  %vm1737_vm12 = vcmp.gt.f32.partialorder %v1600_v42, 0.0 }
 0x191   : > { %v1754_v53 = vmin.f32 %v1602_v45, 0.0  ;;  %v1756_v56 = vmin.f32 %v1643_v49, 0.0  ;;  %vm1740_vm13 = vcmp.gt.f32.partialorder %v1643_v49, 0.0  ;;  %vm1738_vm14 = vcmp.gt.f32.partialorder %v1602_v45, 0.0 }
 0x192   : > { %v1777_v55 = vmul.f32 1.442695, %v1753_v48  ;;  %v1781_v13 = vmul.f32 1.442695, %v1755_v52 }
 0x193   : > { %v1779_v57 = vmul.f32 1.442695, %v1754_v53  ;;  %v1783_v58 = vmul.f32 1.442695, %v1756_v56 }
 0x194   : > { %5801 = vpow2.f32 %v1777_v55 }
 0x195   : > { %5803 = vpow2.f32 %v1781_v13 }
 0x196   : > { %5805 = vpow2.f32 %v1779_v57 }
 0x197   : > { %5807 = vpow2.f32 %v1783_v58 }
 0x19e   : > { %v5802_v59 = vpop.eup %5801 }
 0x19f   : > { %v5804_v60 = vpop.eup %5803  ;;  %v5207_v62 = vadd.f32 -1.0, %v5802_v59 }
 0x1a0   : > { %v5806_v61 = vpop.eup %5805  ;;  %v5209_v63 = vadd.f32 -1.0, %v5804_v60 }
 0x1a1   : > { %v5808_v1 = vpop.eup %5807  ;;  %v5208_v3 = vadd.f32 -1.0, %v5806_v61  ;;  %v1817_v6 = vsel %vm1737_vm12, %v1600_v42, %v5207_v62  ;;  %v2001_v61 = vld [vmem:[#allocation5 + $0x8] sm:$0xff] }
 0x1a2   : > { %v1819_v2 = vsel %vm1739_vm11, %v1641_v32, %v5209_v63  ;;  %v5210_v4 = vadd.f32 -1.0, %v5808_v1  ;;  %v2009_v62 = vld [vmem:[#allocation5 + $0x48] sm:$0xff] }
 0x1a3   : > { %v1845_v5 = vrot.slane %v1819_v2, 6  ;;  %v1818_v11 = vsel %vm1738_vm14, %v1602_v45, %v5208_v3 }
 0x1a4   : > { %v1820_v7 = vsel %vm1740_vm13, %v1643_v49, %v5210_v4  ;;  %v5224_v4 = vcombine.high %v2001_v61, %v2009_v62 }
 0x1a5   : > { %v1870_v8 = vsel %vm1861_vm1, %v1817_v6, %v1845_v5  ;;  %v1846_v9 = vrot.slane %v1820_v7, 6  ;;  %v2017_v5 = vld [vmem:[#allocation5 + $0x88] sm:$0xff]  ;;  %v1876_v7 = vld [vmem:[%s6611_s3] sm:$0xff] }
 0x1a6   : > { %v2025_v6 = vld [vmem:[#allocation5 + $0xc8] sm:$0xff] }
 0x1a7   : > { %v1871_v17 = vsel %vm1861_vm1, %v1818_v11, %v1846_v9  ;;  %v5240_v9 = vcombine.high %v2017_v5, %v2025_v6  ;;  %v2033_v11 = vld [vmem:[#allocation5 + $0x108] sm:$0xff] }
 0x1ad   : > { %v1681_v25 = vpop.f32.mrb[12].mxu0  ;;  %v1722_v29 = vpop.f32.mrb[12].mxu1 }
 0x1ae   : > { %v1682_v27 = vadd.f32 %v1681_v25, %v732_v18  ;;  %v1683_v31 = vpop.f32.mrb[13].mxu0  ;;  %v1723_v34 = vadd.f32 %v1722_v29, %v740_v19  ;;  %v1724_v38 = vpop.f32.mrb[13].mxu1  ;;  %v2049_v19 = vld [vmem:[#allocation5 + $0x188] sm:$0xff] }
 0x1af   : > { %v1684_v26 = vadd.f32 %v1683_v31, %v736_v21  ;;  %v1685_v23 = vpop.f32.mrb[14].mxu0  ;;  %v1725_v40 = vadd.f32 %v1724_v38, %v744_v24  ;;  %v1726_v28 = vpop.f32.mrb[14].mxu1  ;;  %v2057_v21 = vld [vmem:[#allocation5 + $0x1c8] sm:$0xff] }
 0x1b0   : > { %v1757_v39 = vmin.f32 %v1682_v27, 0.0  ;;  %v1686_v41 = vpop.f32.mrb[15].mxu0  ;;  %v1759_v42 = vmin.f32 %v1723_v34, 0.0  ;;  %v1727_v43 = vpop.f32.mrb[15].mxu1  ;;  %vm1741_vm15 = vcmp.gt.f32.partialorder %v1682_v27, 0.0  ;;  %vm1743_vm0 = vcmp.gt.f32.partialorder %v1723_v34, 0.0 }
 0x1b1   : > { %v1758_v22 = vmin.f32 %v1684_v26, 0.0  ;;  %v1760_v30 = vmin.f32 %v1725_v40, 0.0  ;;  %vm1742_vm1 = vcmp.gt.f32.partialorder %v1684_v26, 0.0  ;;  %vm1744_vm2 = vcmp.gt.f32.partialorder %v1725_v40, 0.0  ;;  %v2073_v29 = vld [vmem:[#allocation5 + $0x248] sm:$0xff] }
 0x1b2   : > { %v1785_v44 = vmul.f32 1.442695, %v1757_v39  ;;  %v1789_v32 = vmul.f32 1.442695, %v1759_v42  ;;  %v5272_v25 = vcombine.high %v2049_v19, %v2057_v21  ;;  %v5271_v31 = vcombine.low %v2049_v19, %v2057_v21  ;;  %v2089_v38 = vld [vmem:[#allocation5 + $0x2c8] sm:$0xff]  ;;  %v2216_v19 = vld [vmem:[#allocation5 + $0x6c0] sm:$0xff] }
 0x1b3   : > { %v1787_v10 = vmul.f32 1.442695, %v1758_v22  ;;  %v1791_v33 = vmul.f32 1.442695, %v1760_v30  ;;  %v2105_v28 = vld [vmem:[#allocation5 + $0x348] sm:$0xff] }
 0x1b4   : > { %5809 = vpow2.f32 %v1785_v44  ;;  %v2113_v22 = vld [vmem:[#allocation5 + $0x388] sm:$0xff] }
 0x1b5   : > { %5811 = vpow2.f32 %v1789_v32  ;;  %v2121_v43 = vld [vmem:[#allocation5 + $0x3c8] sm:$0xff] }
 0x1b6   : > { %5813 = vpow2.f32 %v1787_v10  ;;  %v5336_v30 = vcombine.high %v2113_v22, %v2121_v43  ;;  %v2129_v32 = vld [vmem:[#allocation5 + $0x408] sm:$0xff] }
 0x1b7   : > { %5815 = vpow2.f32 %v1791_v33  ;;  %v2137_v10 = vld [vmem:[#allocation5 + $0x448] sm:$0xff]  ;;  %v5335_v33 = vcombine.low %v2113_v22, %v2121_v43  ;;  %v2248_v22 = vld [vmem:[#allocation5 + $0x7c0] sm:$0xff] }
 0x1b8   : > { %v2209_v21 = vld [vmem:[#allocation5 + $0x688] sm:$0xff] }
 0x1b9   : > { %v2241_v43 = vld [vmem:[#allocation5 + $0x788] sm:$0xff] }
 0x1be   : > { %v5810_v36 = vpop.eup %5809 }
 0x1bf   : > { %v5812_v45 = vpop.eup %5811  ;;  %v5211_v46 = vadd.f32 -1.0, %v5810_v36  ;;  %v5352_v36 = vcombine.high %v2129_v32, %v2137_v10 }
 0x1c0   : > { %v5814_v47 = vpop.eup %5813  ;;  %v5213_v48 = vadd.f32 -1.0, %v5812_v45  ;;  %v5351_v45 = vcombine.low %v2129_v32, %v2137_v10 }
 0x1c1   : > { %v5816_v49 = vpop.eup %5815  ;;  %v1821_v50 = vsel %vm1741_vm15, %v1682_v27, %v5211_v46  ;;  %v5212_v51 = vadd.f32 -1.0, %v5814_v47  ;;  %v2065_v27 = vld [vmem:[#allocation5 + $0x208] sm:$0xff]  ;;  %v2144_v46 = vld [vmem:[#allocation5 + $0x480] sm:$0xff] }
 0x1c2   : > { %v1851_v52 = vrot.slane %v1821_v50, 4  ;;  %v1823_v53 = vsel %vm1743_vm0, %v1723_v34, %v5213_v48  ;;  %v5214_v54 = vadd.f32 -1.0, %v5816_v49  ;;  %v5288_v34 = vcombine.high %v2065_v27, %v2073_v29  ;;  %v2152_v47 = vld [vmem:[#allocation5 + $0x4c0] sm:$0xff]  ;;  %v2145_v48 = vld [vmem:[#allocation5 + $0x488] sm:$0xff] }
 0x1c3   : > { %v1857_v55 = vrot.slane %v1823_v53, 2  ;;  %v1822_v56 = vsel %vm1742_vm1, %v1684_v26, %v5212_v51  ;;  %v2081_v26 = vld [vmem:[#allocation5 + $0x288] sm:$0xff]  ;;  %v5287_v23 = vcombine.low %v2065_v27, %v2073_v29  ;;  %v5366_v49 = vcombine.high %v2144_v46, %v2152_v47 }
 0x1c4   : > { %v1872_v13 = vsel %vm1864_vm6, %v1870_v8, %v1851_v52  ;;  %v1852_v57 = vrot.slane %v1822_v56, 4  ;;  %v1824_v58 = vsel %vm1744_vm2, %v1725_v40, %v5214_v54  ;;  %v5223_v8 = vcombine.low %v2001_v61, %v2009_v62  ;;  %v2097_v40 = vld [vmem:[#allocation5 + $0x308] sm:$0xff]  ;;  %v2160_v54 = vld [vmem:[#allocation5 + $0x500] sm:$0xff] }
 0x1c5   : > { %v1858_v59 = vrot.slane %v1824_v58, 2  ;;  %v1874_v60 = vsel %vm1867_vm8, %v1872_v13, %v1857_v55  ;;  %v5304_v39 = vcombine.high %v2081_v26, %v2089_v38  ;;  %v5303_v41 = vcombine.low %v2081_v26, %v2089_v38  ;;  %v2153_v50 = vld [vmem:[#allocation5 + $0x4c8] sm:$0xff]  ;;  %3554 = vmatprep.subr.bf16.mxu1 %v5366_v49  ;;  %v2168_v55 = vld [vmem:[#allocation5 + $0x540] sm:$0xff] }
 0x1c6   : > { %v1873_v63 = vsel %vm1864_vm6, %v1871_v17, %v1852_v57  ;;  %v5633_v1 = vpack.c.bf16 %v1874_v60, %v6296_v35  ;;  %v2041_v17 = vld [vmem:[#allocation5 + $0x148] sm:$0xff]  ;;  %v5320_v42 = vcombine.high %v2097_v40, %v2105_v28  ;;  %v5319_v44 = vcombine.low %v2097_v40, %v2105_v28  ;;  %v2176_v61 = vld [vmem:[#allocation5 + $0x580] sm:$0xff] }
 0x1c7   : > { %v1875_v2 = vsel %vm1867_vm8, %v1873_v63, %v1858_v59  ;;  %v1877_v35 = vld [vmem:[%s6611_s3 + $0x8] sm:$0xff]  ;;  %v5256_v18 = vcombine.high %v2033_v11, %v2041_v17  ;;  %v5255_v24 = vcombine.low %v2033_v11, %v2041_v17  ;;  %v5365_v51 = vcombine.low %v2144_v46, %v2152_v47  ;;  %v2184_v62 = vld [vmem:[#allocation5 + $0x5c0] sm:$0xff]  ;;  %v6339_v46 = vld [vmem:[#allocation5 + $0x18] sm:$0xff] }
 0x1c8   : > { %v5631_v3 = vpack.c.bf16 %v1875_v2, %v6304_v37  ;;  %v5239_v37 = vcombine.low %v2017_v5, %v2025_v6  ;;  %v5367_v52 = vcombine.low %v2145_v48, %v2153_v50  ;;  %v5368_v53 = vcombine.high %v2145_v48, %v2153_v50  ;;  %v2161_v56 = vld [vmem:[#allocation5 + $0x508] sm:$0xff]  ;;  %v2192_v6 = vld [vmem:[#allocation5 + $0x600] sm:$0xff]  ;;  %v2011_v48 = vld [vmem:[#allocation5 + $0x58] sm:$0xff] }
 0x1c9   : > { %3555 = vmatpush1.bf16.msra.mxu1 %v5365_v51  ;;  %v5382_v13 = vcombine.high %v2160_v54, %v2168_v55  ;;  %v2169_v57 = vld [vmem:[#allocation5 + $0x548] sm:$0xff]  ;;  %v5381_v58 = vcombine.low %v2160_v54, %v2168_v55  ;;  %v2232_v26 = vld [vmem:[#allocation5 + $0x740] sm:$0xff]  ;;  %v5227_v50 = vcombine.low %v6339_v46, %v2011_v48  ;;  %v5228_v51 = vcombine.high %v6339_v46, %v2011_v48  ;;  %v2066_v48 = vld [vmem:[#allocation5 + $0x210] sm:$0xff] }
 0x1ca   : > { %5632 = vmatprep.subr.bf16.mxu0 %v5631_v3  ;;  %v5383_v59 = vcombine.low %v2161_v56, %v2169_v57  ;;  %v5384_v60 = vcombine.high %v2161_v56, %v2169_v57  ;;  %v2177_v63 = vld [vmem:[#allocation5 + $0x588] sm:$0xff]  ;;  %v5397_v3 = vcombine.low %v2176_v61, %v2184_v62 }
 0x1cb   : > { %5634 = vmatpush1.bf16.msra.mxu0 %v5633_v1  ;;  %3556 = vmatprep.subr.bf16.mxu1 %v5382_v13  ;;  %v5398_v1 = vcombine.high %v2176_v61, %v2184_v62  ;;  %v2185_v2 = vld [vmem:[#allocation5 + $0x5c8] sm:$0xff] }
 0x1cc   : > { %3579 = vmatprep.subr.bf16.mxu0 %v5224_v4  ;;  %v5399_v4 = vcombine.low %v2177_v63, %v2185_v2  ;;  %v5400_v5 = vcombine.high %v2177_v63, %v2185_v2  ;;  %v2201_v11 = vld [vmem:[#allocation5 + $0x648] sm:$0xff] }
 0x1cd   : > { %3557 = vmatpush1.bf16.msra.mxu1 %v5381_v58  ;;  %v2225_v38 = vld [vmem:[#allocation5 + $0x708] sm:$0xff] }
 0x1ce   : > { %5215 = vmatmul.mubr.msk.f32.vlgmr.msra.gmra.mrb[16].mxu0 %vm1890_vm3, %v1876_v7  ;;  %3558 = vmatprep.subr.bf16.mxu1 %v5398_v1  ;;  %v2200_v7 = vld [vmem:[#allocation5 + $0x640] sm:$0xff] }
 0x1cf   : > { %1967 = vmatprep.mubr.f32.mxu0 %v5974_v20  ;;  %3580 = vmatpush1.bf16.msra.mxu0 %v5223_v8  ;;  %v2193_v8 = vld [vmem:[#allocation5 + $0x608] sm:$0xff]  ;;  %v5413_v17 = vcombine.low %v2192_v6, %v2200_v7 }
 0x1d0   : > { %3581 = vmatprep.subr.bf16.mxu0 %v5240_v9  ;;  %v5414_v9 = vcombine.high %v2192_v6, %v2200_v7 }
 0x1d1   : > { %3559 = vmatpush1.bf16.msra.mxu1 %v5397_v3 }
 0x1d2   : > { %5216 = vmatmul.mubr.msk.f32.gmra.mrb[18].mxu0 %vm1890_vm3, %v1877_v35  ;;  %v5415_v35 = vcombine.low %v2193_v8, %v2201_v11  ;;  %3560 = vmatprep.subr.bf16.mxu1 %v5414_v9 }
 0x1d3   : > { %3582 = vmatpush1.bf16.msra.mxu0 %v5239_v37  ;;  %v5416_v37 = vcombine.high %v2193_v8, %v2201_v11 }
 0x1d4   : > { %3583 = vmatprep.subr.bf16.mxu0 %v5256_v18  ;;  %v2208_v18 = vld [vmem:[#allocation5 + $0x680] sm:$0xff] }
 0x1d5   : > { %3561 = vmatpush1.bf16.msra.mxu1 %v5413_v17  ;;  %v5429_v27 = vcombine.low %v2208_v18, %v2216_v19 }
 0x1d7   : > { %3584 = vmatpush1.bf16.msra.mxu0 %v5255_v24  ;;  %v5430_v24 = vcombine.high %v2208_v18, %v2216_v19 }
 0x1d8   : > { %3585 = vmatprep.subr.bf16.mxu0 %v5272_v25  ;;  %v2217_v25 = vld [vmem:[#allocation5 + $0x6c8] sm:$0xff] }
 0x1d9   : > { %v5431_v29 = vcombine.low %v2209_v21, %v2217_v25  ;;  %3562 = vmatprep.subr.bf16.mxu1 %v5430_v24 }
 0x1da   : > { %3563 = vmatpush1.bf16.msra.mxu1 %v5429_v27 }
 0x1db   : > { %3586 = vmatpush1.bf16.msra.mxu0 %v5271_v31  ;;  %v5432_v31 = vcombine.high %v2209_v21, %v2217_v25  ;;  %v2018_v21 = vld [vmem:[#allocation5 + $0x90] sm:$0xff] }
 0x1dc   : > { %3587 = vmatprep.subr.bf16.mxu0 %v5288_v34  ;;  %v2224_v34 = vld [vmem:[#allocation5 + $0x700] sm:$0xff] }
 0x1dd   : > { %v5445_v40 = vcombine.low %v2224_v34, %v2232_v26 }
 0x1df   : > { %3588 = vmatpush1.bf16.msra.mxu0 %v5287_v23  ;;  %v5446_v23 = vcombine.high %v2224_v34, %v2232_v26  ;;  %v2027_v34 = vld [vmem:[#allocation5 + $0xd8] sm:$0xff] }
 0x1e0   : > { %3589 = vmatprep.subr.bf16.mxu0 %v5304_v39  ;;  %v2233_v39 = vld [vmem:[#allocation5 + $0x748] sm:$0xff] }
 0x1e1   : > { %v5447_v28 = vcombine.low %v2225_v38, %v2233_v39  ;;  %3564 = vmatprep.subr.bf16.mxu1 %v5446_v23 }
 0x1e2   : > { %3565 = vmatpush1.bf16.msra.mxu1 %v5445_v40  ;;  %v2042_v40 = vld [vmem:[#allocation5 + $0x150] sm:$0xff] }
 0x1e3   : > { %3590 = vmatpush1.bf16.msra.mxu0 %v5303_v41  ;;  %v5448_v41 = vcombine.high %v2225_v38, %v2233_v39  ;;  %v2034_v38 = vld [vmem:[#allocation5 + $0x110] sm:$0xff] }
 0x1e4   : > { %3591 = vmatprep.subr.bf16.mxu0 %v5320_v42  ;;  %v2240_v42 = vld [vmem:[#allocation5 + $0x780] sm:$0xff] }
 0x1e5   : > { %v5461_v32 = vcombine.low %v2240_v42, %v2248_v22 }
 0x1e7   : > { %3592 = vmatpush1.bf16.msra.mxu0 %v5319_v44  ;;  %v5462_v44 = vcombine.high %v2240_v42, %v2248_v22 }
 0x1e8   : > { %3593 = vmatprep.subr.bf16.mxu0 %v5336_v30  ;;  %v2249_v30 = vld [vmem:[#allocation5 + $0x7c8] sm:$0xff] }
 0x1e9   : > { %v5463_v10 = vcombine.low %v2241_v43, %v2249_v30  ;;  %3566 = vmatprep.subr.bf16.mxu1 %v5462_v44 }
 0x1ea   : > { %3567 = vmatpush1.bf16.msra.mxu1 %v5461_v32  ;;  %v2058_v32 = vld [vmem:[#allocation5 + $0x1d0] sm:$0xff] }
 0x1eb   : > { %3594 = vmatpush1.bf16.msra.mxu0 %v5335_v33  ;;  %v5464_v33 = vcombine.high %v2241_v43, %v2249_v30  ;;  %v5258_v43 = vcombine.high %v2034_v38, %v2042_v40  ;;  %v2050_v30 = vld [vmem:[#allocation5 + $0x190] sm:$0xff] }
 0x1ec   : > { %3595 = vmatprep.subr.bf16.mxu0 %v5352_v36  ;;  %v6335_v36 = vld [vmem:[#allocation5 + $0x10] sm:$0xff]  ;;  %v5274_v46 = vcombine.high %v2050_v30, %v2058_v32 }
 0x1ef   : > { %3596 = vmatpush1.bf16.msra.mxu0 %v5351_v45  ;;  %v6337_v45 = vld [vmem:[#allocation5 + $0x50] sm:$0xff] }
 0x1f0   : > { %3597 = vmatprep.subr.bf16.mxu0 %v5368_v53  ;;  %v5226_v47 = vcombine.high %v6335_v36, %v6337_v45  ;;  %v5225_v49 = vcombine.low %v6335_v36, %v6337_v45  ;;  %v5257_v36 = vcombine.low %v2034_v38, %v2042_v40  ;;  %v2154_v40 = vld [vmem:[#allocation5 + $0x4d0] sm:$0xff] }
 0x1f2   : > { %3622 = vmatprep.subr.bf16.mxu1 %v5226_v47 }
 0x1f3   : > { %3598 = vmatpush1.bf16.msra.mxu0 %v5367_v52  ;;  %v1883_v52 = vpop.permute.xlu0 %1882 }
 0x1f4   : > { %3599 = vmatprep.subr.bf16.mxu0 %v5384_v60 }
 0x1f7   : > { %3600 = vmatpush1.bf16.msra.mxu0 %v5383_v59  ;;  %v1888_v57 = vpop.permute.xlu0 %1887 }
 0x1f8   : > { %3601 = vmatprep.subr.bf16.mxu0 %v5400_v5 }
 0x1fb   : > { %3602 = vmatpush1.bf16.msra.mxu0 %v5399_v4 }
 0x1fc   : > { %3603 = vmatprep.subr.bf16.mxu0 %v5416_v37 }
 0x1ff   : > { %3604 = vmatpush1.bf16.msra.mxu0 %v5415_v35 }
 0x200   : > { %3605 = vmatprep.subr.bf16.mxu0 %v5432_v31  ;;  %v2019_v31 = vld [vmem:[#allocation5 + $0x98] sm:$0xff] }
 0x201   : > { %v5244_v39 = vcombine.high %v2019_v31, %v2027_v34  ;;  %v5243_v22 = vcombine.low %v2019_v31, %v2027_v34 }
 0x203   : > { %3606 = vmatpush1.bf16.msra.mxu0 %v5431_v29  ;;  %v2026_v29 = vld [vmem:[#allocation5 + $0xd0] sm:$0xff] }
 0x204   : > { %3607 = vmatprep.subr.bf16.mxu0 %v5448_v41  ;;  %v5242_v23 = vcombine.high %v2018_v21, %v2026_v29  ;;  %v2043_v41 = vld [vmem:[#allocation5 + $0x158] sm:$0xff]  ;;  %v5241_v42 = vcombine.low %v2018_v21, %v2026_v29  ;;  %v2130_v21 = vld [vmem:[#allocation5 + $0x410] sm:$0xff] }
 0x205   : > { %v2139_v29 = vld [vmem:[#allocation5 + $0x458] sm:$0xff] }
 0x207   : > { %3608 = vmatpush1.bf16.msra.mxu0 %v5447_v28  ;;  %v2035_v28 = vld [vmem:[#allocation5 + $0x118] sm:$0xff] }
 0x208   : > { %3609 = vmatprep.subr.bf16.mxu0 %v5464_v33  ;;  %v5260_v44 = vcombine.high %v2035_v28, %v2043_v41  ;;  %v2059_v33 = vld [vmem:[#allocation5 + $0x1d8] sm:$0xff]  ;;  %v5259_v45 = vcombine.low %v2035_v28, %v2043_v41 }
 0x209   : > { %v2147_v28 = vld [vmem:[#allocation5 + $0x498] sm:$0xff] }
 0x20a   : > { %v2155_v41 = vld [vmem:[#allocation5 + $0x4d8] sm:$0xff] }
 0x20b   : > { %3610 = vmatpush1.bf16.msra.mxu0 %v5463_v10  ;;  %v2051_v10 = vld [vmem:[#allocation5 + $0x198] sm:$0xff] }
 0x20c   : > { %3665 = vmatprep.subr.bf16.mxu0 %v5228_v51  ;;  %v5276_v47 = vcombine.high %v2051_v10, %v2059_v33  ;;  %v2075_v51 = vld [vmem:[#allocation5 + $0x258] sm:$0xff] }
 0x2a1   : > { %v1963_v53 = vpop.f32.mrb[16].mxu0 }
 0x2a2   : > { %v1964_v54 = vadd.f32 %v1963_v53, %v1883_v52  ;;  %v1965_v55 = vpop.f32.mrb[17].mxu0  ;;  %v5275_v53 = vcombine.low %v2051_v10, %v2059_v33  ;;  %v2163_v10 = vld [vmem:[#allocation5 + $0x518] sm:$0xff] }
 0x2a3   : > { %v1966_v56 = vadd.f32 %v1965_v55, %v1883_v52  ;;  %v5273_v52 = vcombine.low %v2050_v30, %v2058_v32  ;;  %v2162_v30 = vld [vmem:[#allocation5 + $0x510] sm:$0xff]  ;;  %v2171_v33 = vld [vmem:[#allocation5 + $0x558] sm:$0xff] }
 0x2a4   : > { %v1978_v13 = vmin.f32 %v1964_v54, 0.0  ;;  %vm1974_vm4 = vcmp.gt.f32.partialorder %v1964_v54, 0.0  ;;  %v2170_v32 = vld [vmem:[#allocation5 + $0x550] sm:$0xff] }
 0x2a5   : > { %v1979_v58 = vmin.f32 %v1966_v56, 0.0  ;;  %v1969_v59 = vpop.f32.mrb[18].mxu0  ;;  %vm1975_vm6 = vcmp.gt.f32.partialorder %v1966_v56, 0.0 }
 0x2a6   : > { %v1982_v60 = vmul.f32 1.442695, %v1978_v13  ;;  %v1970_v61 = vadd.f32 %v1969_v59, %v1888_v57  ;;  %v1971_v62 = vpop.f32.mrb[19].mxu0  ;;  %v2090_v13 = vld [vmem:[#allocation5 + $0x2d0] sm:$0xff] }
 0x2a7   : > { %v1984_v63 = vmul.f32 1.442695, %v1979_v58  ;;  %v1972_v1 = vadd.f32 %v1971_v62, %v1888_v57  ;;  %v2083_v57 = vld [vmem:[#allocation5 + $0x298] sm:$0xff] }
 0x2a8   : > { %5817 = vpow2.f32 %v1982_v60  ;;  %v1980_v2 = vmin.f32 %v1970_v61, 0.0  ;;  %vm1976_vm5 = vcmp.gt.f32.partialorder %v1970_v61, 0.0  ;;  %v2091_v58 = vld [vmem:[#allocation5 + $0x2d8] sm:$0xff] }
 0x2a9   : > { %5819 = vpow2.f32 %v1984_v63  ;;  %v1981_v3 = vmin.f32 %v1972_v1, 0.0  ;;  %vm1977_vm7 = vcmp.gt.f32.partialorder %v1972_v1, 0.0  ;;  %v5308_v62 = vcombine.high %v2083_v57, %v2091_v58  ;;  %v2098_v63 = vld [vmem:[#allocation5 + $0x310] sm:$0xff] }
 0x2aa   : > { %v1986_v4 = vmul.f32 1.442695, %v1980_v2  ;;  %v2099_v2 = vld [vmem:[#allocation5 + $0x318] sm:$0xff] }
 0x2ab   : > { %v1988_v5 = vmul.f32 1.442695, %v1981_v3  ;;  %v2107_v3 = vld [vmem:[#allocation5 + $0x358] sm:$0xff] }
 0x2ac   : > { %5821 = vpow2.f32 %v1986_v4 }
 0x2ad   : > { %5823 = vpow2.f32 %v1988_v5  ;;  %v5307_v5 = vcombine.low %v2083_v57, %v2091_v58  ;;  %v2195_v57 = vld [vmem:[#allocation5 + $0x618] sm:$0xff] }
 0x2ae   : > { %v2203_v58 = vld [vmem:[#allocation5 + $0x658] sm:$0xff] }
 0x2b2   : > { %v5818_v6 = vpop.eup %5817 }
 0x2b3   : > { %v5820_v7 = vpop.eup %5819  ;;  %v5217_v8 = vadd.f32 -1.0, %v5818_v6 }
 0x2b4   : > { %v5218_v11 = vadd.f32 -1.0, %v5820_v7  ;;  %v5324_v7 = vcombine.high %v2099_v2, %v2107_v3 }
 0x2b5   : > { %v1994_v18 = vsel %vm1974_vm4, %v1964_v54, %v5217_v8  ;;  %v2114_v8 = vld [vmem:[#allocation5 + $0x390] sm:$0xff] }
 0x2b6   : > { %v5822_v9 = vpop.eup %5821  ;;  %v1995_v24 = vsel %vm1975_vm6, %v1966_v56, %v5218_v11  ;;  %v2082_v56 = vld [vmem:[#allocation5 + $0x290] sm:$0xff]  ;;  %v2115_v11 = vld [vmem:[#allocation5 + $0x398] sm:$0xff] }
 0x2b7   : > { %v5824_v17 = vpop.eup %5823  ;;  %v5219_v35 = vadd.f32 -1.0, %v5822_v9  ;;  %v5305_v4 = vcombine.low %v2082_v56, %v2090_v13  ;;  %v2122_v9 = vld [vmem:[#allocation5 + $0x3d0] sm:$0xff] }
 0x2b8   : > { %v5220_v37 = vadd.f32 -1.0, %v5824_v17  ;;  %v2123_v17 = vld [vmem:[#allocation5 + $0x3d8] sm:$0xff]  ;;  %v5337_v31 = vcombine.low %v2114_v8, %v2122_v9 }
 0x2b9   : > { %v1996_v19 = vsel %vm1976_vm5, %v1970_v61, %v5219_v35  ;;  %v5306_v61 = vcombine.high %v2082_v56, %v2090_v13  ;;  %v5339_v34 = vcombine.low %v2115_v11, %v2123_v17  ;;  %v2194_v56 = vld [vmem:[#allocation5 + $0x610] sm:$0xff] }
 0x2ba   : > { %v6347_v25 = vpack.c.bf16 %v1996_v19, %v1994_v18  ;;  %v1997_v27 = vsel %vm1977_vm7, %v1972_v1, %v5220_v37  ;;  %v2106_v1 = vld [vmem:[#allocation5 + $0x350] sm:$0xff]  ;;  %v5323_v37 = vcombine.low %v2099_v2, %v2107_v3  ;;  %v5338_v18 = vcombine.high %v2114_v8, %v2122_v9  ;;  %v2211_v2 = vld [vmem:[#allocation5 + $0x698] sm:$0xff] }
 0x2bb   : > { %v6349_v26 = vpack.c.bf16 %v1997_v27, %v1995_v24  ;;  %v5322_v6 = vcombine.high %v2098_v63, %v2106_v1  ;;  %v5321_v35 = vcombine.low %v2098_v63, %v2106_v1  ;;  %v5340_v19 = vcombine.high %v2115_v11, %v2123_v17  ;;  %v2138_v24 = vld [vmem:[#allocation5 + $0x450] sm:$0xff]  ;;  %v2131_v27 = vld [vmem:[#allocation5 + $0x418] sm:$0xff] }
 0x2bc   : > { %v5354_v38 = vcombine.high %v2130_v21, %v2138_v24  ;;  %v2202_v13 = vld [vmem:[#allocation5 + $0x650] sm:$0xff]  ;;  %v2219_v3 = vld [vmem:[#allocation5 + $0x6d8] sm:$0xff] }
 0x2bd   : > { %3568 = vmatprep.mubr.bf16.mxu1 %v6349_v26  ;;  %3611 = vmatprep.mubr.bf16.mxu0 %v6349_v26  ;;  %v2210_v63 = vld [vmem:[#allocation5 + $0x690] sm:$0xff]  ;;  %v2227_v11 = vld [vmem:[#allocation5 + $0x718] sm:$0xff] }
 0x2be   : > { %3569 = vmatmul.mubr.bf16.vlgmr.msra.gmra.mrb[16].mxu1 %v6347_v25  ;;  %3612 = vmatmul.mubr.bf16.vlgmr.msra.gmra.mrb[20].mxu0 %v6347_v25  ;;  %v2218_v1 = vld [vmem:[#allocation5 + $0x6d0] sm:$0xff]  ;;  %v2235_v17 = vld [vmem:[#allocation5 + $0x758] sm:$0xff] }
 0x2bf   : > { %3623 = vmatpush1.bf16.msra.mxu1 %v5225_v49  ;;  %3666 = vmatpush1.bf16.msra.mxu0 %v5227_v50  ;;  %v2074_v49 = vld [vmem:[#allocation5 + $0x250] sm:$0xff]  ;;  %v2067_v50 = vld [vmem:[#allocation5 + $0x218] sm:$0xff] }
 0x2c0   : > { %3654 = vmatprep.mubr.bf16.mxu1 %v6349_v26  ;;  %3697 = vmatprep.mubr.bf16.mxu0 %v6349_v26  ;;  %v5290_v54 = vcombine.high %v2066_v48, %v2074_v49  ;;  %v5292_v55 = vcombine.high %v2067_v50, %v2075_v51  ;;  %v5289_v59 = vcombine.low %v2066_v48, %v2074_v49  ;;  %v2178_v48 = vld [vmem:[#allocation5 + $0x590] sm:$0xff] }
 0x2c1   : > { %3624 = vmatprep.subr.bf16.mxu1 %v5242_v23  ;;  %3667 = vmatprep.subr.bf16.mxu0 %v5244_v39  ;;  %v5291_v60 = vcombine.low %v2067_v50, %v2075_v51  ;;  %v5356_v23 = vcombine.high %v2131_v27, %v2139_v29  ;;  %v2146_v39 = vld [vmem:[#allocation5 + $0x490] sm:$0xff]  ;;  %v2179_v50 = vld [vmem:[#allocation5 + $0x598] sm:$0xff] }
 0x2c2   : > { %v2186_v49 = vld [vmem:[#allocation5 + $0x5d0] sm:$0xff]  ;;  %v2187_v51 = vld [vmem:[#allocation5 + $0x5d8] sm:$0xff] }
 0x2c3   : > { %3625 = vmatpush1.bf16.msra.mxu1 %v5241_v42  ;;  %3668 = vmatpush1.bf16.msra.mxu0 %v5243_v22  ;;  %v5353_v42 = vcombine.low %v2130_v21, %v2138_v24  ;;  %v5355_v22 = vcombine.low %v2131_v27, %v2139_v29  ;;  %v2226_v8 = vld [vmem:[#allocation5 + $0x710] sm:$0xff]  ;;  %v2243_v27 = vld [vmem:[#allocation5 + $0x798] sm:$0xff] }
 0x2c4   : > { %3626 = vmatprep.subr.bf16.mxu1 %v5258_v43  ;;  %3669 = vmatprep.subr.bf16.mxu0 %v5260_v44  ;;  %v5370_v43 = vcombine.high %v2146_v39, %v2154_v40  ;;  %v5372_v44 = vcombine.high %v2147_v28, %v2155_v41  ;;  %v2234_v9 = vld [vmem:[#allocation5 + $0x750] sm:$0xff]  ;;  %v2251_v29 = vld [vmem:[#allocation5 + $0x7d8] sm:$0xff] }
 0x2c5   : > { %v2242_v21 = vld [vmem:[#allocation5 + $0x790] sm:$0xff] }
 0x2c6   : > { %v2250_v24 = vld [vmem:[#allocation5 + $0x7d0] sm:$0xff] }
 0x2c7   : > { %3627 = vmatpush1.bf16.msra.mxu1 %v5257_v36  ;;  %3670 = vmatpush1.bf16.msra.mxu0 %v5259_v45  ;;  %v5369_v36 = vcombine.low %v2146_v39, %v2154_v40  ;;  %v5371_v45 = vcombine.low %v2147_v28, %v2155_v41  ;;  %v2004_v39 = vld [vmem:[#allocation5 + $0x20] sm:$0xff]  ;;  %v2005_v28 = vld [vmem:[#allocation5 + $0x28] sm:$0xff] }
 0x2c8   : > { %3628 = vmatprep.subr.bf16.mxu1 %v5274_v46  ;;  %3671 = vmatprep.subr.bf16.mxu0 %v5276_v47  ;;  %v5386_v46 = vcombine.high %v2162_v30, %v2170_v32  ;;  %v5388_v47 = vcombine.high %v2163_v10, %v2171_v33  ;;  %v2012_v40 = vld [vmem:[#allocation5 + $0x60] sm:$0xff]  ;;  %v2013_v41 = vld [vmem:[#allocation5 + $0x68] sm:$0xff] }
 0x2cb   : > { %3629 = vmatpush1.bf16.msra.mxu1 %v5273_v52  ;;  %3672 = vmatpush1.bf16.msra.mxu0 %v5275_v53  ;;  %v5385_v52 = vcombine.low %v2162_v30, %v2170_v32  ;;  %v5387_v53 = vcombine.low %v2163_v10, %v2171_v33  ;;  %v2020_v30 = vld [vmem:[#allocation5 + $0xa0] sm:$0xff]  ;;  %v2021_v10 = vld [vmem:[#allocation5 + $0xa8] sm:$0xff] }
 0x2cc   : > { %3630 = vmatprep.subr.bf16.mxu1 %v5290_v54  ;;  %3673 = vmatprep.subr.bf16.mxu0 %v5292_v55  ;;  %v5402_v54 = vcombine.high %v2178_v48, %v2186_v49  ;;  %v5404_v55 = vcombine.high %v2179_v50, %v2187_v51  ;;  %v2028_v32 = vld [vmem:[#allocation5 + $0xe0] sm:$0xff]  ;;  %v2029_v33 = vld [vmem:[#allocation5 + $0xe8] sm:$0xff] }
 0x2cf   : > { %3631 = vmatpush1.bf16.msra.mxu1 %v5289_v59  ;;  %3674 = vmatpush1.bf16.msra.mxu0 %v5291_v60  ;;  %v5401_v59 = vcombine.low %v2178_v48, %v2186_v49  ;;  %v5403_v60 = vcombine.low %v2179_v50, %v2187_v51  ;;  %v2036_v48 = vld [vmem:[#allocation5 + $0x120] sm:$0xff]  ;;  %v2037_v50 = vld [vmem:[#allocation5 + $0x128] sm:$0xff] }
 0x2d0   : > { %3632 = vmatprep.subr.bf16.mxu1 %v5306_v61  ;;  %3675 = vmatprep.subr.bf16.mxu0 %v5308_v62  ;;  %v5418_v61 = vcombine.high %v2194_v56, %v2202_v13  ;;  %v5420_v62 = vcombine.high %v2195_v57, %v2203_v58  ;;  %v2044_v49 = vld [vmem:[#allocation5 + $0x160] sm:$0xff]  ;;  %v2045_v51 = vld [vmem:[#allocation5 + $0x168] sm:$0xff] }
 0x2d3   : > { %3633 = vmatpush1.bf16.msra.mxu1 %v5305_v4  ;;  %3676 = vmatpush1.bf16.msra.mxu0 %v5307_v5  ;;  %v5417_v4 = vcombine.low %v2194_v56, %v2202_v13  ;;  %v5419_v5 = vcombine.low %v2195_v57, %v2203_v58  ;;  %v2052_v56 = vld [vmem:[#allocation5 + $0x1a0] sm:$0xff]  ;;  %v2053_v57 = vld [vmem:[#allocation5 + $0x1a8] sm:$0xff] }
 0x2d4   : > { %3634 = vmatprep.subr.bf16.mxu1 %v5322_v6  ;;  %3677 = vmatprep.subr.bf16.mxu0 %v5324_v7  ;;  %v5434_v6 = vcombine.high %v2210_v63, %v2218_v1  ;;  %v5436_v7 = vcombine.high %v2211_v2, %v2219_v3  ;;  %v2060_v13 = vld [vmem:[#allocation5 + $0x1e0] sm:$0xff]  ;;  %v2061_v58 = vld [vmem:[#allocation5 + $0x1e8] sm:$0xff] }
 0x2d7   : > { %3635 = vmatpush1.bf16.msra.mxu1 %v5321_v35  ;;  %3678 = vmatpush1.bf16.msra.mxu0 %v5323_v37  ;;  %v5433_v35 = vcombine.low %v2210_v63, %v2218_v1  ;;  %v5435_v37 = vcombine.low %v2211_v2, %v2219_v3  ;;  %v2068_v63 = vld [vmem:[#allocation5 + $0x220] sm:$0xff]  ;;  %v2069_v2 = vld [vmem:[#allocation5 + $0x228] sm:$0xff] }
 0x2d8   : > { %3636 = vmatprep.subr.bf16.mxu1 %v5338_v18  ;;  %3679 = vmatprep.subr.bf16.mxu0 %v5340_v19  ;;  %v5450_v18 = vcombine.high %v2226_v8, %v2234_v9  ;;  %v5452_v19 = vcombine.high %v2227_v11, %v2235_v17  ;;  %v2076_v1 = vld [vmem:[#allocation5 + $0x260] sm:$0xff]  ;;  %v2077_v3 = vld [vmem:[#allocation5 + $0x268] sm:$0xff] }
 0x2db   : > { %3637 = vmatpush1.bf16.msra.mxu1 %v5337_v31  ;;  %3680 = vmatpush1.bf16.msra.mxu0 %v5339_v34  ;;  %v5449_v31 = vcombine.low %v2226_v8, %v2234_v9  ;;  %v5451_v34 = vcombine.low %v2227_v11, %v2235_v17  ;;  %v2084_v8 = vld [vmem:[#allocation5 + $0x2a0] sm:$0xff]  ;;  %v2085_v11 = vld [vmem:[#allocation5 + $0x2a8] sm:$0xff] }
 0x2dc   : > { %3638 = vmatprep.subr.bf16.mxu1 %v5354_v38  ;;  %3681 = vmatprep.subr.bf16.mxu0 %v5356_v23  ;;  %v5466_v38 = vcombine.high %v2242_v21, %v2250_v24  ;;  %v5468_v23 = vcombine.high %v2243_v27, %v2251_v29  ;;  %v2092_v9 = vld [vmem:[#allocation5 + $0x2e0] sm:$0xff]  ;;  %v2093_v17 = vld [vmem:[#allocation5 + $0x2e8] sm:$0xff] }
 0x2df   : > { %3639 = vmatpush1.bf16.msra.mxu1 %v5353_v42  ;;  %3682 = vmatpush1.bf16.msra.mxu0 %v5355_v22  ;;  %v5465_v42 = vcombine.low %v2242_v21, %v2250_v24  ;;  %v5467_v22 = vcombine.low %v2243_v27, %v2251_v29  ;;  %v2100_v21 = vld [vmem:[#allocation5 + $0x320] sm:$0xff]  ;;  %v2101_v27 = vld [vmem:[#allocation5 + $0x328] sm:$0xff] }
 0x2e0   : > { %3640 = vmatprep.subr.bf16.mxu1 %v5370_v43  ;;  %3683 = vmatprep.subr.bf16.mxu0 %v5372_v44  ;;  %v5230_v43 = vcombine.high %v2004_v39, %v2012_v40  ;;  %v5232_v44 = vcombine.high %v2005_v28, %v2013_v41  ;;  %v2108_v24 = vld [vmem:[#allocation5 + $0x360] sm:$0xff]  ;;  %v2109_v29 = vld [vmem:[#allocation5 + $0x368] sm:$0xff] }
 0x2e3   : > { %3641 = vmatpush1.bf16.msra.mxu1 %v5369_v36  ;;  %3684 = vmatpush1.bf16.msra.mxu0 %v5371_v45  ;;  %v5229_v36 = vcombine.low %v2004_v39, %v2012_v40  ;;  %v5231_v45 = vcombine.low %v2005_v28, %v2013_v41  ;;  %v2116_v39 = vld [vmem:[#allocation5 + $0x3a0] sm:$0xff]  ;;  %v2117_v28 = vld [vmem:[#allocation5 + $0x3a8] sm:$0xff] }
 0x2e4   : > { %3642 = vmatprep.subr.bf16.mxu1 %v5386_v46  ;;  %3685 = vmatprep.subr.bf16.mxu0 %v5388_v47  ;;  %v5246_v46 = vcombine.high %v2020_v30, %v2028_v32  ;;  %v5248_v47 = vcombine.high %v2021_v10, %v2029_v33  ;;  %v2124_v40 = vld [vmem:[#allocation5 + $0x3e0] sm:$0xff]  ;;  %v2125_v41 = vld [vmem:[#allocation5 + $0x3e8] sm:$0xff] }
 0x2e7   : > { %3643 = vmatpush1.bf16.msra.mxu1 %v5385_v52  ;;  %3686 = vmatpush1.bf16.msra.mxu0 %v5387_v53  ;;  %v5245_v52 = vcombine.low %v2020_v30, %v2028_v32  ;;  %v5247_v53 = vcombine.low %v2021_v10, %v2029_v33  ;;  %v2132_v30 = vld [vmem:[#allocation5 + $0x420] sm:$0xff]  ;;  %v2133_v10 = vld [vmem:[#allocation5 + $0x428] sm:$0xff] }
 0x2e8   : > { %3644 = vmatprep.subr.bf16.mxu1 %v5402_v54  ;;  %3687 = vmatprep.subr.bf16.mxu0 %v5404_v55  ;;  %v5262_v54 = vcombine.high %v2036_v48, %v2044_v49  ;;  %v5264_v55 = vcombine.high %v2037_v50, %v2045_v51  ;;  %v2140_v32 = vld [vmem:[#allocation5 + $0x460] sm:$0xff]  ;;  %v2141_v33 = vld [vmem:[#allocation5 + $0x468] sm:$0xff] }
 0x2eb   : > { %3645 = vmatpush1.bf16.msra.mxu1 %v5401_v59  ;;  %3688 = vmatpush1.bf16.msra.mxu0 %v5403_v60  ;;  %v5261_v59 = vcombine.low %v2036_v48, %v2044_v49  ;;  %v5263_v60 = vcombine.low %v2037_v50, %v2045_v51  ;;  %v2148_v48 = vld [vmem:[#allocation5 + $0x4a0] sm:$0xff]  ;;  %v2149_v50 = vld [vmem:[#allocation5 + $0x4a8] sm:$0xff] }
 0x2ec   : > { %3646 = vmatprep.subr.bf16.mxu1 %v5418_v61  ;;  %3689 = vmatprep.subr.bf16.mxu0 %v5420_v62  ;;  %v5278_v61 = vcombine.high %v2052_v56, %v2060_v13  ;;  %v5280_v62 = vcombine.high %v2053_v57, %v2061_v58  ;;  %v2156_v49 = vld [vmem:[#allocation5 + $0x4e0] sm:$0xff]  ;;  %v2157_v51 = vld [vmem:[#allocation5 + $0x4e8] sm:$0xff] }
 0x2ef   : > { %3647 = vmatpush1.bf16.msra.mxu1 %v5417_v4  ;;  %3690 = vmatpush1.bf16.msra.mxu0 %v5419_v5  ;;  %v5277_v4 = vcombine.low %v2052_v56, %v2060_v13  ;;  %v5279_v5 = vcombine.low %v2053_v57, %v2061_v58  ;;  %v2164_v56 = vld [vmem:[#allocation5 + $0x520] sm:$0xff]  ;;  %v2165_v57 = vld [vmem:[#allocation5 + $0x528] sm:$0xff] }
 0x2f0   : > { %3648 = vmatprep.subr.bf16.mxu1 %v5434_v6  ;;  %3691 = vmatprep.subr.bf16.mxu0 %v5436_v7  ;;  %v5294_v6 = vcombine.high %v2068_v63, %v2076_v1  ;;  %v5296_v7 = vcombine.high %v2069_v2, %v2077_v3  ;;  %v2172_v13 = vld [vmem:[#allocation5 + $0x560] sm:$0xff]  ;;  %v2173_v58 = vld [vmem:[#allocation5 + $0x568] sm:$0xff] }
 0x2f3   : > { %3649 = vmatpush1.bf16.msra.mxu1 %v5433_v35  ;;  %3692 = vmatpush1.bf16.msra.mxu0 %v5435_v37  ;;  %v5293_v35 = vcombine.low %v2068_v63, %v2076_v1  ;;  %v5295_v37 = vcombine.low %v2069_v2, %v2077_v3  ;;  %v2180_v63 = vld [vmem:[#allocation5 + $0x5a0] sm:$0xff]  ;;  %v2181_v2 = vld [vmem:[#allocation5 + $0x5a8] sm:$0xff] }
 0x2f4   : > { %3650 = vmatprep.subr.bf16.mxu1 %v5450_v18  ;;  %3693 = vmatprep.subr.bf16.mxu0 %v5452_v19  ;;  %v5310_v18 = vcombine.high %v2084_v8, %v2092_v9  ;;  %v5312_v19 = vcombine.high %v2085_v11, %v2093_v17  ;;  %v2188_v1 = vld [vmem:[#allocation5 + $0x5e0] sm:$0xff]  ;;  %v2189_v3 = vld [vmem:[#allocation5 + $0x5e8] sm:$0xff] }
 0x2f7   : > { %3651 = vmatpush1.bf16.msra.mxu1 %v5449_v31  ;;  %3694 = vmatpush1.bf16.msra.mxu0 %v5451_v34  ;;  %v5309_v31 = vcombine.low %v2084_v8, %v2092_v9  ;;  %v5311_v34 = vcombine.low %v2085_v11, %v2093_v17  ;;  %v2196_v8 = vld [vmem:[#allocation5 + $0x620] sm:$0xff]  ;;  %v2197_v11 = vld [vmem:[#allocation5 + $0x628] sm:$0xff] }
 0x2f8   : > { %3652 = vmatprep.subr.bf16.mxu1 %v5466_v38  ;;  %3695 = vmatprep.subr.bf16.mxu0 %v5468_v23  ;;  %v5326_v38 = vcombine.high %v2100_v21, %v2108_v24  ;;  %v5328_v23 = vcombine.high %v2101_v27, %v2109_v29  ;;  %v2204_v9 = vld [vmem:[#allocation5 + $0x660] sm:$0xff]  ;;  %v2205_v17 = vld [vmem:[#allocation5 + $0x668] sm:$0xff] }
 0x2fb   : > { %3653 = vmatpush1.bf16.msra.mxu1 %v5465_v42  ;;  %3696 = vmatpush1.bf16.msra.mxu0 %v5467_v22  ;;  %v5325_v42 = vcombine.low %v2100_v21, %v2108_v24  ;;  %v5327_v22 = vcombine.low %v2101_v27, %v2109_v29  ;;  %v2212_v21 = vld [vmem:[#allocation5 + $0x6a0] sm:$0xff]  ;;  %v2213_v27 = vld [vmem:[#allocation5 + $0x6a8] sm:$0xff] }
 0x2fc   : > { %3708 = vmatprep.subr.bf16.mxu1 %v5230_v43  ;;  %3751 = vmatprep.subr.bf16.mxu0 %v5232_v44  ;;  %v5342_v43 = vcombine.high %v2116_v39, %v2124_v40  ;;  %v5344_v44 = vcombine.high %v2117_v28, %v2125_v41  ;;  %v2220_v24 = vld [vmem:[#allocation5 + $0x6e0] sm:$0xff]  ;;  %v2221_v29 = vld [vmem:[#allocation5 + $0x6e8] sm:$0xff] }
 0x2fe   : > { %3655 = vmatmul.mubr.bf16.vlgmr.msra.gmra.mrb[20].mxu1 %v6347_v25  ;;  %3698 = vmatmul.mubr.bf16.vlgmr.msra.gmra.mrb[24].mxu0 %v6347_v25 }
 0x2ff   : > { %3709 = vmatpush1.bf16.msra.mxu1 %v5229_v36  ;;  %3740 = vmatprep.mubr.bf16.mxu1 %v6349_v26  ;;  %v5341_v36 = vcombine.low %v2116_v39, %v2124_v40  ;;  %v2228_v39 = vld [vmem:[#allocation5 + $0x720] sm:$0xff] }
 0x300   : > { %3752 = vmatpush1.bf16.msra.mxu0 %v5231_v45  ;;  %3783 = vmatprep.mubr.bf16.mxu0 %v6349_v26  ;;  %v5343_v45 = vcombine.low %v2117_v28, %v2125_v41  ;;  %v2236_v40 = vld [vmem:[#allocation5 + $0x760] sm:$0xff]  ;;  %v2229_v28 = vld [vmem:[#allocation5 + $0x728] sm:$0xff] }
 0x301   : > { %3710 = vmatprep.subr.bf16.mxu1 %v5246_v46  ;;  %3753 = vmatprep.subr.bf16.mxu0 %v5248_v47  ;;  %v5358_v46 = vcombine.high %v2132_v30, %v2140_v32  ;;  %v5360_v47 = vcombine.high %v2133_v10, %v2141_v33  ;;  %v2237_v41 = vld [vmem:[#allocation5 + $0x768] sm:$0xff] }
 0x303   : > { %3711 = vmatpush1.bf16.msra.mxu1 %v5245_v52  ;;  %v5357_v52 = vcombine.low %v2132_v30, %v2140_v32  ;;  %v2244_v30 = vld [vmem:[#allocation5 + $0x7a0] sm:$0xff] }
 0x304   : > { %3754 = vmatpush1.bf16.msra.mxu0 %v5247_v53  ;;  %3712 = vmatprep.subr.bf16.mxu1 %v5262_v54  ;;  %v5359_v53 = vcombine.low %v2133_v10, %v2141_v33  ;;  %v5374_v54 = vcombine.high %v2148_v48, %v2156_v49  ;;  %v2252_v32 = vld [vmem:[#allocation5 + $0x7e0] sm:$0xff]  ;;  %v2245_v10 = vld [vmem:[#allocation5 + $0x7a8] sm:$0xff] }
 0x305   : > { %3755 = vmatprep.subr.bf16.mxu0 %v5264_v55  ;;  %v5376_v55 = vcombine.high %v2149_v50, %v2157_v51  ;;  %v2253_v33 = vld [vmem:[#allocation5 + $0x7e8] sm:$0xff] }
 0x307   : > { %3713 = vmatpush1.bf16.msra.mxu1 %v5261_v59  ;;  %v5373_v59 = vcombine.low %v2148_v48, %v2156_v49  ;;  %v2006_v48 = vld [vmem:[#allocation5 + $0x30] sm:$0xff] }
 0x308   : > { %3756 = vmatpush1.bf16.msra.mxu0 %v5263_v60  ;;  %3714 = vmatprep.subr.bf16.mxu1 %v5278_v61  ;;  %v5375_v60 = vcombine.low %v2149_v50, %v2157_v51  ;;  %v5390_v61 = vcombine.high %v2164_v56, %v2172_v13  ;;  %v2014_v49 = vld [vmem:[#allocation5 + $0x70] sm:$0xff]  ;;  %v2007_v50 = vld [vmem:[#allocation5 + $0x38] sm:$0xff] }
 0x309   : > { %3757 = vmatprep.subr.bf16.mxu0 %v5280_v62  ;;  %v5392_v62 = vcombine.high %v2165_v57, %v2173_v58  ;;  %v2015_v51 = vld [vmem:[#allocation5 + $0x78] sm:$0xff] }
 0x30b   : > { %3715 = vmatpush1.bf16.msra.mxu1 %v5277_v4  ;;  %v5389_v4 = vcombine.low %v2164_v56, %v2172_v13  ;;  %v2022_v56 = vld [vmem:[#allocation5 + $0xb0] sm:$0xff] }
 0x30c   : > { %3758 = vmatpush1.bf16.msra.mxu0 %v5279_v5  ;;  %3716 = vmatprep.subr.bf16.mxu1 %v5294_v6  ;;  %v5391_v5 = vcombine.low %v2165_v57, %v2173_v58  ;;  %v5406_v6 = vcombine.high %v2180_v63, %v2188_v1  ;;  %v2030_v13 = vld [vmem:[#allocation5 + $0xf0] sm:$0xff]  ;;  %v5233_v57 = vcombine.low %v2006_v48, %v2014_v49  ;;  %v2023_v58 = vld [vmem:[#allocation5 + $0xb8] sm:$0xff] }
 0x30d   : > { %3759 = vmatprep.subr.bf16.mxu0 %v5296_v7  ;;  %v5408_v7 = vcombine.high %v2181_v2, %v2189_v3 }
 0x30f   : > { %3717 = vmatpush1.bf16.msra.mxu1 %v5293_v35  ;;  %v5405_v35 = vcombine.low %v2180_v63, %v2188_v1  ;;  %v2046_v63 = vld [vmem:[#allocation5 + $0x170] sm:$0xff] }
 0x310   : > { %3760 = vmatpush1.bf16.msra.mxu0 %v5295_v37  ;;  %3718 = vmatprep.subr.bf16.mxu1 %v5310_v18  ;;  %v5407_v37 = vcombine.low %v2181_v2, %v2189_v3  ;;  %v5422_v18 = vcombine.high %v2196_v8, %v2204_v9  ;;  %v2039_v2 = vld [vmem:[#allocation5 + $0x138] sm:$0xff] }
 0x311   : > { %3761 = vmatprep.subr.bf16.mxu0 %v5312_v19  ;;  %v5424_v19 = vcombine.high %v2197_v11, %v2205_v17  ;;  %v2047_v3 = vld [vmem:[#allocation5 + $0x178] sm:$0xff] }
 0x313   : > { %3719 = vmatpush1.bf16.msra.mxu1 %v5309_v31  ;;  %v5421_v31 = vcombine.low %v2196_v8, %v2204_v9  ;;  %v2054_v8 = vld [vmem:[#allocation5 + $0x1b0] sm:$0xff] }
 0x314   : > { %3762 = vmatpush1.bf16.msra.mxu0 %v5311_v34  ;;  %3720 = vmatprep.subr.bf16.mxu1 %v5326_v38  ;;  %v5423_v34 = vcombine.low %v2197_v11, %v2205_v17  ;;  %v5438_v38 = vcombine.high %v2212_v21, %v2220_v24  ;;  %v2062_v9 = vld [vmem:[#allocation5 + $0x1f0] sm:$0xff]  ;;  %v2055_v11 = vld [vmem:[#allocation5 + $0x1b8] sm:$0xff] }
 0x315   : > { %3763 = vmatprep.subr.bf16.mxu0 %v5328_v23  ;;  %v5440_v23 = vcombine.high %v2213_v27, %v2221_v29  ;;  %v2063_v17 = vld [vmem:[#allocation5 + $0x1f8] sm:$0xff] }
 0x317   : > { %3721 = vmatpush1.bf16.msra.mxu1 %v5325_v42  ;;  %v5437_v42 = vcombine.low %v2212_v21, %v2220_v24  ;;  %v2070_v21 = vld [vmem:[#allocation5 + $0x230] sm:$0xff] }
 0x318   : > { %3764 = vmatpush1.bf16.msra.mxu0 %v5327_v22  ;;  %3722 = vmatprep.subr.bf16.mxu1 %v5342_v43  ;;  %v5439_v22 = vcombine.low %v2213_v27, %v2221_v29  ;;  %v5454_v43 = vcombine.high %v2228_v39, %v2236_v40  ;;  %v2078_v24 = vld [vmem:[#allocation5 + $0x270] sm:$0xff]  ;;  %v2071_v27 = vld [vmem:[#allocation5 + $0x238] sm:$0xff] }
 0x319   : > { %3765 = vmatprep.subr.bf16.mxu0 %v5344_v44  ;;  %v5456_v44 = vcombine.high %v2229_v28, %v2237_v41  ;;  %v2079_v29 = vld [vmem:[#allocation5 + $0x278] sm:$0xff] }
 0x31b   : > { %3723 = vmatpush1.bf16.msra.mxu1 %v5341_v36  ;;  %v5453_v36 = vcombine.low %v2228_v39, %v2236_v40  ;;  %v2094_v39 = vld [vmem:[#allocation5 + $0x2f0] sm:$0xff]  ;;  %v2087_v40 = vld [vmem:[#allocation5 + $0x2b8] sm:$0xff] }
 0x31c   : > { %3766 = vmatpush1.bf16.msra.mxu0 %v5343_v45  ;;  %3724 = vmatprep.subr.bf16.mxu1 %v5358_v46  ;;  %v5455_v45 = vcombine.low %v2229_v28, %v2237_v41  ;;  %v5470_v46 = vcombine.high %v2244_v30, %v2252_v32  ;;  %v2095_v28 = vld [vmem:[#allocation5 + $0x2f8] sm:$0xff]  ;;  %v5297_v41 = vcombine.low %v2070_v21, %v2078_v24 }
 0x31d   : > { %3767 = vmatprep.subr.bf16.mxu0 %v5360_v47  ;;  %v5472_v47 = vcombine.high %v2245_v10, %v2253_v33 }
 0x31f   : > { %3725 = vmatpush1.bf16.msra.mxu1 %v5357_v52  ;;  %v5469_v52 = vcombine.low %v2244_v30, %v2252_v32  ;;  %v2110_v30 = vld [vmem:[#allocation5 + $0x370] sm:$0xff]  ;;  %v2103_v32 = vld [vmem:[#allocation5 + $0x338] sm:$0xff] }
 0x320   : > { %3768 = vmatpush1.bf16.msra.mxu0 %v5359_v53  ;;  %3726 = vmatprep.subr.bf16.mxu1 %v5374_v54  ;;  %v5471_v53 = vcombine.low %v2245_v10, %v2253_v33  ;;  %v5234_v54 = vcombine.high %v2006_v48, %v2014_v49  ;;  %v2111_v10 = vld [vmem:[#allocation5 + $0x378] sm:$0xff]  ;;  %v2126_v48 = vld [vmem:[#allocation5 + $0x3f0] sm:$0xff] }
 0x321   : > { %3769 = vmatprep.subr.bf16.mxu0 %v5376_v55  ;;  %v5236_v55 = vcombine.high %v2007_v50, %v2015_v51  ;;  %v2119_v49 = vld [vmem:[#allocation5 + $0x3b8] sm:$0xff] }
 0x323   : > { %3727 = vmatpush1.bf16.msra.mxu1 %v5373_v59  ;;  %v2031_v59 = vld [vmem:[#allocation5 + $0xf8] sm:$0xff] }
 0x324   : > { %3770 = vmatpush1.bf16.msra.mxu0 %v5375_v60  ;;  %3728 = vmatprep.subr.bf16.mxu1 %v5390_v61  ;;  %v5235_v60 = vcombine.low %v2007_v50, %v2015_v51  ;;  %v5250_v61 = vcombine.high %v2022_v56, %v2030_v13  ;;  %v5252_v1 = vcombine.high %v2023_v58, %v2031_v59  ;;  %v2127_v50 = vld [vmem:[#allocation5 + $0x3f8] sm:$0xff] }
 0x325   : > { %3771 = vmatprep.subr.bf16.mxu0 %v5392_v62  ;;  %v2038_v62 = vld [vmem:[#allocation5 + $0x130] sm:$0xff] }
 0x327   : > { %3729 = vmatpush1.bf16.msra.mxu1 %v5389_v4  ;;  %v5249_v4 = vcombine.low %v2022_v56, %v2030_v13  ;;  %v2142_v56 = vld [vmem:[#allocation5 + $0x470] sm:$0xff]  ;;  %v2135_v13 = vld [vmem:[#allocation5 + $0x438] sm:$0xff] }
 0x328   : > { %3772 = vmatpush1.bf16.msra.mxu0 %v5391_v5  ;;  %3730 = vmatprep.subr.bf16.mxu1 %v5406_v6  ;;  %v5251_v5 = vcombine.low %v2023_v58, %v2031_v59  ;;  %v5266_v6 = vcombine.high %v2038_v62, %v2046_v63  ;;  %v5347_v59 = vcombine.low %v2119_v49, %v2127_v50 }
 0x329   : > { %3773 = vmatprep.subr.bf16.mxu0 %v5408_v7  ;;  %v5268_v7 = vcombine.high %v2039_v2, %v2047_v3 }
 0x32b   : > { %3731 = vmatpush1.bf16.msra.mxu1 %v5405_v35  ;;  %v5265_v35 = vcombine.low %v2038_v62, %v2046_v63  ;;  %v2150_v62 = vld [vmem:[#allocation5 + $0x4b0] sm:$0xff] }
 0x32c   : > { %3774 = vmatpush1.bf16.msra.mxu0 %v5407_v37  ;;  %3732 = vmatprep.subr.bf16.mxu1 %v5422_v18  ;;  %v5267_v37 = vcombine.low %v2039_v2, %v2047_v3  ;;  %v5282_v18 = vcombine.high %v2054_v8, %v2062_v9  ;;  %v2158_v63 = vld [vmem:[#allocation5 + $0x4f0] sm:$0xff]  ;;  %v2159_v2 = vld [vmem:[#allocation5 + $0x4f8] sm:$0xff] }
 0x32d   : > { %3775 = vmatprep.subr.bf16.mxu0 %v5424_v19  ;;  %v5284_v19 = vcombine.high %v2055_v11, %v2063_v17 }
 0x32f   : > { %3733 = vmatpush1.bf16.msra.mxu1 %v5421_v31  ;;  %v5283_v31 = vcombine.low %v2055_v11, %v2063_v17  ;;  %v2175_v11 = vld [vmem:[#allocation5 + $0x578] sm:$0xff]  ;;  %v5377_v17 = vcombine.low %v2150_v62, %v2158_v63 }
 0x330   : > { %3776 = vmatpush1.bf16.msra.mxu0 %v5423_v34  ;;  %3734 = vmatprep.subr.bf16.mxu1 %v5438_v38  ;;  %v5298_v34 = vcombine.high %v2070_v21, %v2078_v24  ;;  %v5300_v38 = vcombine.high %v2071_v27, %v2079_v29  ;;  %v2190_v21 = vld [vmem:[#allocation5 + $0x5f0] sm:$0xff]  ;;  %v2183_v24 = vld [vmem:[#allocation5 + $0x5b8] sm:$0xff] }
 0x331   : > { %3777 = vmatprep.subr.bf16.mxu0 %v5440_v23  ;;  %v2086_v23 = vld [vmem:[#allocation5 + $0x2b0] sm:$0xff] }
 0x332   : > { %v5313_v33 = vcombine.low %v2086_v23, %v2094_v39 }
 0x333   : > { %3735 = vmatpush1.bf16.msra.mxu1 %v5437_v42  ;;  %v5299_v42 = vcombine.low %v2071_v27, %v2079_v29  ;;  %v2191_v27 = vld [vmem:[#allocation5 + $0x5f8] sm:$0xff] }
 0x334   : > { %3778 = vmatpush1.bf16.msra.mxu0 %v5439_v22  ;;  %3736 = vmatprep.subr.bf16.mxu1 %v5454_v43  ;;  %v5314_v22 = vcombine.high %v2086_v23, %v2094_v39  ;;  %v5316_v43 = vcombine.high %v2087_v40, %v2095_v28  ;;  %v2206_v23 = vld [vmem:[#allocation5 + $0x670] sm:$0xff]  ;;  %v2199_v39 = vld [vmem:[#allocation5 + $0x638] sm:$0xff] }
 0x335   : > { %3779 = vmatprep.subr.bf16.mxu0 %v5456_v44  ;;  %v2102_v44 = vld [vmem:[#allocation5 + $0x330] sm:$0xff] }
 0x336   : > { %v5329_v51 = vcombine.low %v2102_v44, %v2110_v30 }
 0x337   : > { %3737 = vmatpush1.bf16.msra.mxu1 %v5453_v36  ;;  %v5315_v36 = vcombine.low %v2087_v40, %v2095_v28  ;;  %v2207_v40 = vld [vmem:[#allocation5 + $0x678] sm:$0xff] }
 0x338   : > { %3780 = vmatpush1.bf16.msra.mxu0 %v5455_v45  ;;  %3738 = vmatprep.subr.bf16.mxu1 %v5470_v46  ;;  %v5330_v45 = vcombine.high %v2102_v44, %v2110_v30  ;;  %v5332_v46 = vcombine.high %v2103_v32, %v2111_v10  ;;  %v2222_v44 = vld [vmem:[#allocation5 + $0x6f0] sm:$0xff]  ;;  %v2215_v30 = vld [vmem:[#allocation5 + $0x6b8] sm:$0xff] }
 0x339   : > { %3781 = vmatprep.subr.bf16.mxu0 %v5472_v47  ;;  %v2118_v47 = vld [vmem:[#allocation5 + $0x3b0] sm:$0xff] }
 0x33a   : > { %v5345_v58 = vcombine.low %v2118_v47, %v2126_v48 }
 0x33b   : > { %3739 = vmatpush1.bf16.msra.mxu1 %v5469_v52  ;;  %v5331_v52 = vcombine.low %v2103_v32, %v2111_v10  ;;  %v2223_v32 = vld [vmem:[#allocation5 + $0x6f8] sm:$0xff] }
 0x33c   : > { %3782 = vmatpush1.bf16.msra.mxu0 %v5471_v53  ;;  %3794 = vmatprep.subr.bf16.mxu1 %v5234_v54  ;;  %v5346_v53 = vcombine.high %v2118_v47, %v2126_v48  ;;  %v5348_v54 = vcombine.high %v2119_v49, %v2127_v50  ;;  %v2238_v47 = vld [vmem:[#allocation5 + $0x770] sm:$0xff]  ;;  %v2231_v48 = vld [vmem:[#allocation5 + $0x738] sm:$0xff] }
 0x33d   : > { %3837 = vmatprep.subr.bf16.mxu0 %v5236_v55  ;;  %v2134_v55 = vld [vmem:[#allocation5 + $0x430] sm:$0xff]  ;;  %v2239_v49 = vld [vmem:[#allocation5 + $0x778] sm:$0xff] }
 0x33e   : > { %3741 = vmatmul.mubr.bf16.vlgmr.msra.gmra.mrb[24].mxu1 %v6347_v25  ;;  %v5361_v3 = vcombine.low %v2134_v55, %v2142_v56 }
 0x33f   : > { %3784 = vmatmul.mubr.bf16.vlgmr.msra.gmra.mrb[28].mxu0 %v6347_v25  ;;  %3795 = vmatpush1.bf16.msra.mxu1 %v5233_v57  ;;  %v2143_v57 = vld [vmem:[#allocation5 + $0x478] sm:$0xff] }
 0x340   : > { %3826 = vmatprep.mubr.bf16.mxu1 %v6349_v26  ;;  %3838 = vmatpush1.bf16.msra.mxu0 %v5235_v60  ;;  %v5362_v60 = vcombine.high %v2134_v55, %v2142_v56  ;;  %v2254_v55 = vld [vmem:[#allocation5 + $0x7f0] sm:$0xff]  ;;  %v2247_v56 = vld [vmem:[#allocation5 + $0x7b8] sm:$0xff] }
 0x341   : > { %3869 = vmatprep.mubr.bf16.mxu0 %v6349_v26  ;;  %3796 = vmatprep.subr.bf16.mxu1 %v5250_v61  ;;  %v5281_v26 = vcombine.low %v2054_v8, %v2062_v9  ;;  %v5364_v61 = vcombine.high %v2135_v13, %v2143_v57  ;;  %v2174_v8 = vld [vmem:[#allocation5 + $0x570] sm:$0xff]  ;;  %v2167_v9 = vld [vmem:[#allocation5 + $0x538] sm:$0xff] }
 0x342   : > { %3839 = vmatprep.subr.bf16.mxu0 %v5252_v1  ;;  %v2151_v1 = vld [vmem:[#allocation5 + $0x4b8] sm:$0xff] }
 0x343   : > { %3797 = vmatpush1.bf16.msra.mxu1 %v5249_v4  ;;  %v5363_v4 = vcombine.low %v2135_v13, %v2143_v57  ;;  %v2255_v13 = vld [vmem:[#allocation5 + $0x7f8] sm:$0xff] }
 0x344   : > { %3840 = vmatpush1.bf16.msra.mxu0 %v5251_v5  ;;  %3798 = vmatprep.subr.bf16.mxu1 %v5266_v6  ;;  %v5378_v5 = vcombine.high %v2150_v62, %v2158_v63  ;;  %v5380_v6 = vcombine.high %v2151_v1, %v2159_v2  ;;  %v5475_v62 = vcombine.low %v2247_v56, %v2255_v13 }
 0x345   : > { %3841 = vmatprep.subr.bf16.mxu0 %v5268_v7  ;;  %v2166_v7 = vld [vmem:[#allocation5 + $0x530] sm:$0xff] }
 0x346   : > { %v5393_v29 = vcombine.low %v2166_v7, %v2174_v8 }
 0x347   : > { %3799 = vmatpush1.bf16.msra.mxu1 %v5265_v35  ;;  %v5379_v35 = vcombine.low %v2151_v1, %v2159_v2 }
 0x348   : > { %3842 = vmatpush1.bf16.msra.mxu0 %v5267_v37  ;;  %3800 = vmatprep.subr.bf16.mxu1 %v5282_v18  ;;  %v5394_v37 = vcombine.high %v2166_v7, %v2174_v8  ;;  %v5396_v18 = vcombine.high %v2167_v9, %v2175_v11 }
 0x349   : > { %3843 = vmatprep.subr.bf16.mxu0 %v5284_v19  ;;  %v2182_v19 = vld [vmem:[#allocation5 + $0x5b0] sm:$0xff] }
 0x34a   : > { %v5409_v28 = vcombine.low %v2182_v19, %v2190_v21 }
 0x34b   : > { %3801 = vmatpush1.bf16.msra.mxu1 %v5281_v26  ;;  %v5395_v26 = vcombine.low %v2167_v9, %v2175_v11 }
 0x34c   : > { %3844 = vmatpush1.bf16.msra.mxu0 %v5283_v31  ;;  %3802 = vmatprep.subr.bf16.mxu1 %v5298_v34  ;;  %v5410_v31 = vcombine.high %v2182_v19, %v2190_v21  ;;  %v5412_v34 = vcombine.high %v2183_v24, %v2191_v27 }
 0x34d   : > { %3845 = vmatprep.subr.bf16.mxu0 %v5300_v38  ;;  %v2198_v38 = vld [vmem:[#allocation5 + $0x630] sm:$0xff] }
 0x34e   : > { %v5425_v10 = vcombine.low %v2198_v38, %v2206_v23 }
 0x34f   : > { %3803 = vmatpush1.bf16.msra.mxu1 %v5297_v41  ;;  %v5411_v41 = vcombine.low %v2183_v24, %v2191_v27 }
 0x350   : > { %3846 = vmatpush1.bf16.msra.mxu0 %v5299_v42  ;;  %3804 = vmatprep.subr.bf16.mxu1 %v5314_v22  ;;  %v5426_v42 = vcombine.high %v2198_v38, %v2206_v23  ;;  %v5428_v22 = vcombine.high %v2199_v39, %v2207_v40  ;;  %v5784_v38 = vld [vmem:[%s6614_s6 + $0x4] ss:$8 sps:$4 sm:$0xff]  }
 0x351   : > { %3847 = vmatprep.subr.bf16.mxu0 %v5316_v43  ;;  %v2214_v43 = vld [vmem:[#allocation5 + $0x6b0] sm:$0xff]  ;;  %v3898_v23 = vld [vmem:[%s6615_s7] sm:$0xff] }
 0x352   : > { %v5441_v50 = vcombine.low %v2214_v43, %v2222_v44  ;;  %3902 = vperm.xlu1 %5770, %v3898_v23   ;;  %v4085_v23 = vld [vmem:[%s6618_s10 + $0x28] sm:$0xff] }
 0x353   : > { %3805 = vmatpush1.bf16.msra.mxu1 %v5313_v33  ;;  %v5427_v33 = vcombine.low %v2199_v39, %v2207_v40  ;;  %v3899_v39 = vld [vmem:[%s6615_s7 + $0x8] sm:$0xff] }
 0x354   : > { %3848 = vmatpush1.bf16.msra.mxu0 %v5315_v36  ;;  %3806 = vmatprep.subr.bf16.mxu1 %v5330_v45  ;;  %v5442_v36 = vcombine.high %v2214_v43, %v2222_v44  ;;  %v5444_v45 = vcombine.high %v2215_v30, %v2223_v32  ;;  %v3976_v40 = vld [vmem:[%s6617_s9 + $0x8] sm:$0xff] }
 0x355   : > { %3849 = vmatprep.subr.bf16.mxu0 %v5332_v46  ;;  %v2230_v46 = vld [vmem:[#allocation5 + $0x730] sm:$0xff] }
 0x356   : > { %v5457_v57 = vcombine.low %v2230_v46, %v2238_v47  ;;  %3907 = vperm.xlu1 %5770, %v3899_v39  }
 0x357   : > { %3807 = vmatpush1.bf16.msra.mxu1 %v5329_v51  ;;  %v5443_v51 = vcombine.low %v2215_v30, %v2223_v32 }
 0x358   : > { %3850 = vmatpush1.bf16.msra.mxu0 %v5331_v52  ;;  %3808 = vmatprep.subr.bf16.mxu1 %v5346_v53  ;;  %v5458_v52 = vcombine.high %v2230_v46, %v2238_v47  ;;  %v5460_v53 = vcombine.high %v2231_v48, %v2239_v49 }
 0x359   : > { %3851 = vmatprep.subr.bf16.mxu0 %v5348_v54  ;;  %v2246_v54 = vld [vmem:[#allocation5 + $0x7b0] sm:$0xff] }
 0x35a   : > { %3984 = vperm.xlu1 %5770, %v3976_v40   ;;  %v4086_v40 = vld [vmem:[%s6618_s10 + $0x30] sm:$0xff] }
 0x35b   : > { %3809 = vmatpush1.bf16.msra.mxu1 %v5345_v58  ;;  %v5459_v58 = vcombine.low %v2231_v48, %v2239_v49 }
 0x35c   : > { %3852 = vmatpush1.bf16.msra.mxu0 %v5347_v59  ;;  %3810 = vmatprep.subr.bf16.mxu1 %v5362_v60  ;;  %v5474_v59 = vcombine.high %v2246_v54, %v2254_v55  ;;  %v5476_v60 = vcombine.high %v2247_v56, %v2255_v13 }
 0x35d   : > { %3853 = vmatprep.subr.bf16.mxu0 %v5364_v61  ;;  %v5473_v61 = vcombine.low %v2246_v54, %v2254_v55 }
 0x35f   : > { %3811 = vmatpush1.bf16.msra.mxu1 %v5361_v3 }
 0x360   : > { %3854 = vmatpush1.bf16.msra.mxu0 %v5363_v4  ;;  %3812 = vmatprep.subr.bf16.mxu1 %v5378_v5 }
 0x361   : > { %3855 = vmatprep.subr.bf16.mxu0 %v5380_v6 }
 0x363   : > { %3813 = vmatpush1.bf16.msra.mxu1 %v5377_v17 }
 0x364   : > { %3856 = vmatpush1.bf16.msra.mxu0 %v5379_v35  ;;  %3814 = vmatprep.subr.bf16.mxu1 %v5394_v37 }
 0x365   : > { %3857 = vmatprep.subr.bf16.mxu0 %v5396_v18 }
 0x367   : > { %3815 = vmatpush1.bf16.msra.mxu1 %v5393_v29 }
 0x368   : > { %3858 = vmatpush1.bf16.msra.mxu0 %v5395_v26  ;;  %3816 = vmatprep.subr.bf16.mxu1 %v5410_v31 }
 0x369   : > { %3859 = vmatprep.subr.bf16.mxu0 %v5412_v34 }
 0x36b   : > { %3817 = vmatpush1.bf16.msra.mxu1 %v5409_v28 }
 0x36c   : > { %3860 = vmatpush1.bf16.msra.mxu0 %v5411_v41  ;;  %3818 = vmatprep.subr.bf16.mxu1 %v5426_v42 }
 0x36d   : > { %3861 = vmatprep.subr.bf16.mxu0 %v5428_v22 }
 0x36f   : > { %3819 = vmatpush1.bf16.msra.mxu1 %v5425_v10 }
 0x370   : > { %3862 = vmatpush1.bf16.msra.mxu0 %v5427_v33  ;;  %3820 = vmatprep.subr.bf16.mxu1 %v5442_v36 }
 0x371   : > { %3863 = vmatprep.subr.bf16.mxu0 %v5444_v45 }
 0x373   : > { %3821 = vmatpush1.bf16.msra.mxu1 %v5441_v50 }
 0x374   : > { %3864 = vmatpush1.bf16.msra.mxu0 %v5443_v51  ;;  %3822 = vmatprep.subr.bf16.mxu1 %v5458_v52 }
 0x375   : > { %3865 = vmatprep.subr.bf16.mxu0 %v5460_v53 }
 0x377   : > { %3823 = vmatpush1.bf16.msra.mxu1 %v5457_v57  ;;  %v5782_v57 = vld [vmem:[%s6614_s6] ss:$8 sps:$4 sm:$0xff]  }
 0x378   : > { %3866 = vmatpush1.bf16.msra.mxu0 %v5459_v58  ;;  %3824 = vmatprep.subr.bf16.mxu1 %v5474_v59  ;;  %v3973_v58 = vld [vmem:[%s6616_s8] sm:$0xff] }
 0x379   : > { %3867 = vmatprep.subr.bf16.mxu0 %v5476_v60 }
 0x37b   : > { %3825 = vmatpush1.bf16.msra.mxu1 %v5473_v61 }
 0x37c   : > { %3868 = vmatpush1.bf16.msra.mxu0 %v5475_v62 }
 0x37e   : > { %3827 = vmatmul.mubr.bf16.vlgmr.msra.gmra.mrb[28].mxu1 %v6347_v25 }
 0x37f   : > { %3870 = vmatmul.mubr.bf16.vlgmr.msra.gmra.mrb[32].mxu0 %v6347_v25  ;;  %3952 = vmatprep.mubr.bf16.mxu1 %v5784_v38  ;;  %v4084_v38 = vld [vmem:[%s6618_s10 + $0x20] sm:$0xff] }
 0x380   : > { %5568 = vmatprep.mubr.msk.f32.mxu0 %vm1890_vm3, %v3973_v58  ;;  %v5647_v39 = vpack.c.bf16 %v4085_v23, %v4084_v38  ;;  %v5975_v38 = vmov 683565275  }
 0x391   : > { %v3570_v63 = vpop.f32.mrb[16].mxu1  ;;  %v3613_v1 = vpop.f32.mrb[20].mxu0 }
 0x392   : > { %v3572_v2 = vpop.f32.mrb[17].mxu1  ;;  %v3615_v3 = vpop.f32.mrb[21].mxu0 }
 0x393   : > { %v3574_v4 = vpop.f32.mrb[18].mxu1  ;;  %v3617_v5 = vpop.f32.mrb[22].mxu0 }
 0x394   : > { %v3880_v6 = vpack.c.bf16 %v3574_v4, %v3570_v63  ;;  %v3882_v7 = vpack.c.bf16 %v3617_v5, %v3613_v1  ;;  %v3576_v8 = vpop.f32.mrb[19].mxu1  ;;  %v3619_v9 = vpop.f32.mrb[23].mxu0 }
 0x395   : > { %v3881_v11 = vpack.c.bf16 %v3576_v8, %v3572_v2  ;;  %v3883_v17 = vpack.c.bf16 %v3619_v9, %v3615_v3 }
 0x3d1   : > { %v3656_v35 = vpop.f32.mrb[20].mxu1  ;;  %v3699_v37 = vpop.f32.mrb[24].mxu0 }
 0x3d2   : > { %v3658_v18 = vpop.f32.mrb[21].mxu1  ;;  %v3701_v19 = vpop.f32.mrb[25].mxu0 }
 0x3d3   : > { %v3660_v21 = vpop.f32.mrb[22].mxu1  ;;  %v3703_v24 = vpop.f32.mrb[26].mxu0 }
 0x3d4   : > { %v3884_v27 = vpack.c.bf16 %v3660_v21, %v3656_v35  ;;  %v3886_v25 = vpack.c.bf16 %v3703_v24, %v3699_v37  ;;  %v3662_v29 = vpop.f32.mrb[23].mxu1  ;;  %v3705_v26 = vpop.f32.mrb[27].mxu0 }
 0x3d5   : > { %v3885_v31 = vpack.c.bf16 %v3662_v29, %v3658_v18  ;;  %v3887_v34 = vpack.c.bf16 %v3705_v26, %v3701_v19  ;;  %v3903_v59 = vpop.permute.xlu1 %3902  ;;  %v4080_v18 = vld [vmem:[%s6618_s10] sm:$0xff]  ;;  %v4081_v19 = vld [vmem:[%s6618_s10 + $0x8] sm:$0xff]  ;;  %v4082_v29 = vld [vmem:[%s6618_s10 + $0x10] sm:$0xff] }
 0x3d6   : > { %v4083_v26 = vld [vmem:[%s6618_s10 + $0x18] sm:$0xff] }
 0x3d9   : > { %v3908_v4 = vpop.permute.xlu1 %3907 }
 0x411   : > { %v3742_v28 = vpop.f32.mrb[24].mxu1 }
 0x412   : > { %v3785_v41 = vpop.f32.mrb[28].mxu0  ;;  %v3744_v42 = vpop.f32.mrb[25].mxu1 }
 0x413   : > { %v3787_v22 = vpop.f32.mrb[29].mxu0  ;;  %v3746_v43 = vpop.f32.mrb[26].mxu1 }
 0x414   : > { %v3888_v44 = vpack.c.bf16 %v3746_v43, %v3742_v28  ;;  %v3789_v30 = vpop.f32.mrb[30].mxu0  ;;  %v3748_v32 = vpop.f32.mrb[27].mxu1  ;;  %v4087_v28 = vld [vmem:[%s6618_s10 + $0x38] sm:$0xff] }
 0x415   : > { %v3890_v10 = vpack.c.bf16 %v3789_v30, %v3785_v41  ;;  %v3889_v33 = vpack.c.bf16 %v3748_v32, %v3744_v42  ;;  %v3791_v36 = vpop.f32.mrb[31].mxu0  ;;  %v5651_v41 = vpack.c.bf16 %v4087_v28, %v4086_v40  ;;  %v4088_v42 = vld [vmem:[%s6618_s10 + $0x40] sm:$0xff]  ;;  %v4091_v30 = vld [vmem:[%s6618_s10 + $0x58] sm:$0xff]  ;;  %v5976_v28 = vmov 2475754826  }
 0x416   : > { %v3891_v45 = vpack.c.bf16 %v3791_v36, %v3787_v22  ;;  %5508 = vmatprep.subr.bf16.mxu1 %v3888_v44  ;;  %v4089_v22 = vld [vmem:[%s6618_s10 + $0x48] sm:$0xff]  ;;  %v4090_v44 = vld [vmem:[%s6618_s10 + $0x50] sm:$0xff]  ;;  %v4092_v32 = vld [vmem:[%s6618_s10 + $0x60] sm:$0xff] }
 0x417   : > { %5509 = vmatpush3.bf16.msra.mxu1 %v3880_v6  ;;  %v5655_v43 = vpack.c.bf16 %v4089_v22, %v4088_v42  ;;  %v5977_v42 = vmov 2131351028  }
 0x418   : > { %5510 = vmatprep.subr.bf16.mxu1 %v3889_v33  ;;  %v4093_v33 = vld [vmem:[%s6618_s10 + $0x68] sm:$0xff] }
 0x419   : > { %v5663_v36 = vpack.c.bf16 %v4093_v33, %v4092_v32 }
 0x41b   : > { %5511 = vmatpush3.bf16.msra.mxu1 %v3881_v11 }
 0x41c   : > { %5512 = vmatprep.subr.bf16.mxu1 %v3890_v10  ;;  %v5659_v10 = vpack.c.bf16 %v4091_v30, %v4090_v44  ;;  %v5979_v30 = vmov 920167782  }
 0x41f   : > { %5513 = vmatpush3.bf16.msra.mxu1 %v3882_v7 }
 0x420   : > { %5514 = vmatprep.subr.bf16.mxu1 %v3891_v45  ;;  %v4094_v45 = vld [vmem:[%s6618_s10 + $0x70] sm:$0xff] }
 0x423   : > { %5515 = vmatpush3.bf16.msra.mxu1 %v3883_v17 }
 0x451   : > { %v3828_v46 = vpop.f32.mrb[28].mxu1 }
 0x452   : > { %v3871_v47 = vpop.f32.mrb[32].mxu0  ;;  %v3830_v48 = vpop.f32.mrb[29].mxu1 }
 0x453   : > { %v3873_v49 = vpop.f32.mrb[33].mxu0  ;;  %v3832_v50 = vpop.f32.mrb[30].mxu1 }
 0x454   : > { %v3892_v51 = vpack.c.bf16 %v3832_v50, %v3828_v46  ;;  %v3875_v52 = vpop.f32.mrb[34].mxu0  ;;  %v3834_v53 = vpop.f32.mrb[31].mxu1  ;;  %v4095_v46 = vld [vmem:[%s6618_s10 + $0x78] sm:$0xff] }
 0x455   : > { %v3894_v54 = vpack.c.bf16 %v3875_v52, %v3871_v47  ;;  %v3893_v55 = vpack.c.bf16 %v3834_v53, %v3830_v48  ;;  %v3877_v56 = vpop.f32.mrb[35].mxu0  ;;  %v5667_v47 = vpack.c.bf16 %v4095_v46, %v4094_v45  ;;  %v3985_v48 = vpop.permute.xlu1 %3984 }
 0x456   : > { %v3895_v13 = vpack.c.bf16 %v3877_v56, %v3873_v49  ;;  %5516 = vmatprep.subr.bf16.mxu1 %v3892_v51  ;;  %v3980_v50 = vpop.permute.xlu0 %3979 }
 0x457   : > { %5517 = vmatpush3.bf16.msra.mxu1 %v3884_v27 }
 0x458   : > { %5518 = vmatprep.subr.bf16.mxu1 %v3893_v55 }
 0x45b   : > { %5519 = vmatpush3.bf16.msra.mxu1 %v3885_v31  ;;  %v3974_v31 = vld [vmem:[%s6616_s8 + $0x8] sm:$0xff] }
 0x45c   : > { %5520 = vmatprep.subr.bf16.mxu1 %v3894_v54 }
 0x45f   : > { %5521 = vmatpush3.bf16.msra.mxu1 %v3886_v25  ;;  %v5639_v25 = vpack.c.bf16 %v4081_v19, %v4080_v18 }
 0x460   : > { %5522 = vmatprep.subr.bf16.mxu1 %v3895_v13 }
 0x463   : > { %5523 = vmatpush3.bf16.msra.mxu1 %v3887_v34  ;;  %v5643_v34 = vpack.c.bf16 %v4083_v26, %v4082_v29 }
 0x466   : > { %3953 = vmatmul.mubr.bf16.vlgmr.msra.gmra.mrb[32].mxu1 %v5782_v57 }
 0x539   : > { %v5524_v60 = vpop.f32.mrb[32].mxu1 }
 0x53a   : > { %v5525_v61 = vpop.f32.mrb[33].mxu1 }
 0x53b   : > { %v5526_v62 = vadd.f32 %v5525_v61, %v5524_v60  ;;  %v5527_v63 = vpop.f32.mrb[34].mxu1 }
 0x53c   : > { %v5528_v1 = vpop.f32.mrb[35].mxu1 }
 0x53d   : > { %v3955_v2 = vadd.f32 %v5526_v62, %v3903_v59  ;;  %v5529_v3 = vadd.f32 %v5528_v1, %v5527_v63 }
 0x53f   : > { %v3963_v5 = vmin.f32 %v3955_v2, 0.0  ;;  %v3958_v6 = vadd.f32 %v5529_v3, %v3908_v4  ;;  %vm3961_vm8 = vcmp.gt.f32.partialorder %v3955_v2, 0.0 }
 0x541   : > { %v3965_v7 = vmul.f32 1.442695, %v3963_v5  ;;  %v3964_v8 = vmin.f32 %v3958_v6, 0.0  ;;  %vm3962_vm9 = vcmp.gt.f32.partialorder %v3958_v6, 0.0 }
 0x543   : > { %5825 = vpow2.f32 %v3965_v7  ;;  %v3967_v9 = vmul.f32 1.442695, %v3964_v8 }
 0x545   : > { %5827 = vpow2.f32 %v3967_v9 }
 0x54d   : > { %v5826_v11 = vpop.eup %5825 }
 0x54e   : > { %v5479_v17 = vadd.f32 -1.0, %v5826_v11 }
 0x54f   : > { %v5828_v35 = vpop.eup %5827 }
 0x550   : > { %v5480_v37 = vadd.f32 -1.0, %v5828_v35  ;;  %v3971_v21 = vsel %vm3961_vm8, %v3955_v2, %v5479_v17 }
 0x552   : > { %v3972_v24 = vsel %vm3962_vm9, %v3958_v6, %v5480_v37 }
 0x553   : > { %v5635_v27 = vpack.c.bf16 %v3972_v24, %v3971_v21 }
 0x555   : > { %5636 = vmatprep.subr.bf16.mxu0 %v5635_v27 }
 0x556   : > { %5638 = vmatpush3.bf16.msra.mxu0 %v5635_v27 }
 0x557   : > { %5640 = vmatprep.subr.bf16.mxu0 %v5639_v25 }
 0x559   : > { %5569 = vmatmul.mubr.msk.f32.vlgmr.msra.gmra.mrb[36].mxu0 %vm1890_vm3, %v3974_v31 }
 0x55a   : > { %5642 = vmatpush3.bf16.msra.mxu0 %v5639_v25 }
 0x55b   : > { %5644 = vmatprep.subr.bf16.mxu0 %v5643_v34 }
 0x55e   : > { %5646 = vmatpush3.bf16.msra.mxu0 %v5643_v34 }
 0x55f   : > { %5648 = vmatprep.subr.bf16.mxu0 %v5647_v39 }
 0x562   : > { %5650 = vmatpush3.bf16.msra.mxu0 %v5647_v39 }
 0x563   : > { %5652 = vmatprep.subr.bf16.mxu0 %v5651_v41 }
 0x566   : > { %5654 = vmatpush3.bf16.msra.mxu0 %v5651_v41 }
 0x567   : > { %5656 = vmatprep.subr.bf16.mxu0 %v5655_v43 }
 0x56a   : > { %5658 = vmatpush3.bf16.msra.mxu0 %v5655_v43  ;;  %v5978_v43 = vmov 2102212464  }
 0x56b   : > { %5660 = vmatprep.subr.bf16.mxu0 %v5659_v10 }
 0x56e   : > { %5662 = vmatpush3.bf16.msra.mxu0 %v5659_v10 }
 0x56f   : > { %5664 = vmatprep.subr.bf16.mxu0 %v5663_v36 }
 0x572   : > { %5666 = vmatpush3.bf16.msra.mxu0 %v5663_v36 }
 0x573   : > { %5668 = vmatprep.subr.bf16.mxu0 %v5667_v47 }
 0x576   : > { %5670 = vmatpush3.bf16.msra.mxu0 %v5667_v47  ;;  %v5980_v47 = vmov 1326507024  }
 0x62c   : > { %v5570_v49 = vpop.f32.mrb[36].mxu0 }
 0x62d   : > { %v4065_v51 = vadd.f32 %v5570_v49, %v3985_v48  ;;  %v4059_v52 = vpop.f32.mrb[37].mxu0 }
 0x62e   : > { %v4060_v53 = vadd.f32 %v4059_v52, %v3980_v50 }
 0x62f   : > { %v4071_v54 = vmin.f32 %v4065_v51, 0.0  ;;  %vm4069_vm11 = vcmp.gt.f32.partialorder %v4065_v51, 0.0 }
 0x630   : > { %v4070_v55 = vmin.f32 %v4060_v53, 0.0  ;;  %vm4068_vm10 = vcmp.gt.f32.partialorder %v4060_v53, 0.0 }
 0x631   : > { %v4074_v56 = vmul.f32 1.442695, %v4071_v54 }
 0x632   : > { %v4072_v13 = vmul.f32 1.442695, %v4070_v55 }
 0x633   : > { %5829 = vpow2.f32 %v4074_v56 }
 0x634   : > { %5831 = vpow2.f32 %v4072_v13 }
 0x63d   : > { %v5830_v57 = vpop.eup %5829 }
 0x63e   : > { %v5832_v58 = vpop.eup %5831  ;;  %v5484_v59 = vadd.f32 -1.0, %v5830_v57 }
 0x63f   : > { %v5483_v60 = vadd.f32 -1.0, %v5832_v58 }
 0x640   : > { %v4079_v62 = vsel %vm4069_vm11, %v4065_v51, %v5484_v59 }
 0x641   : > { %v4078_v61 = vsel %vm4068_vm10, %v4060_v53, %v5483_v60 }
 0x642   : > { %5603 = vmatprep.mubr.f32.mxu0 %v4078_v61 }
 0x643   : > { %5604 = vmatmul.mubr.f32.vlgmr.msra.gmra.mrb[38].mxu0 %v4079_v62 }
 0x716   : > { %v5605_v63 = vpop.f32.mrb[38].mxu0 }
 0x717   : > { %v6438_v1 = vmul.f32 0.5, %v5605_v63  ;;  %v4162_v2 = vpop.f32.mrb[39].mxu0 }
 0x718   : > { %v6440_v3 = vmul.f32 0.5, %v4162_v2 }
 0x719   : > { %v4276_v4 = vand.u32 2147483647, %v6438_v1  ;;  %v4279_v5 = vand.u32 2139095040, %v6438_v1  ;;  %vm4278_vm11 = vcmp.lt.s32.totalorder %v6438_v1, 0 }
 0x71a   : > { %v4176_v6 = vand.u32 2139095040, %v6440_v3  ;;  %v4173_v9 = vand.u32 2147483647, %v6440_v3 }
 0x71b   : > { %v4280_v7 = vshrl.u32 %v4279_v5, 23  ;;  %v4283_v8 = vand.u32 8388607, %v4276_v4 }
 0x71c   : > { %v4177_v11 = vshrl.u32 %v4176_v6, 23  ;;  %v6450_v19 = vand.u32 8388607, %v4173_v9 }
 0x71d   : > { %v5489_v17 = vadd.s32 4294967169, %v4280_v7  ;;  %v4284_v18 = vor.u32 8388608, %v4283_v8 }
 0x71e   : > { %v5485_v35 = vadd.s32 4294967169, %v4177_v11  ;;  %v4181_v31 = vor.u32 8388608, %v6450_v19 }
 0x71f   : > { %v4286_v37 = vadd.s32 1, %v5489_v17  ;;  %v6452_v26 = vshll.u32 %v4284_v18, 8 }
 0x720   : > { %v4183_v21 = vadd.s32 1, %v5485_v35 }
 0x721   : > { %vm4287_vm12 = vcmp.gt.s32.totalorder %v4286_v37, 0 }
 0x722   : > { %v4288_v24 = vsel %vm4287_vm12, %v4286_v37, 0  ;;  %vm4184_vm13 = vcmp.gt.s32.totalorder %v4183_v21, 0  ;;  %vm4277_vm12 = vcmp.le.f32.partialorder %v4276_v4, 0.7853982 }
 0x723   : > { %v4289_v27 = vshrl.u32 %v4288_v24, 5  ;;  %v4290_v25 = vand.u32 31, %v4288_v24  ;;  %v4185_v29 = vsel %vm4184_vm13, %v4183_v21, 0  ;;  %vm4175_vm13 = vcmp.lt.s32.totalorder %v6440_v3, 0 }
 0x724   : > { %v6455_v39 = vshrl.u32 %v4185_v29, 5  ;;  %v4187_v40 = vand.u32 31, %v4185_v29 }
 0x725   : > { %v4291_v34 = vsub.s32 32, %v4290_v25  ;;  %v4293_v23 = vshll.u32 %v5975_v38, %v4290_v25  ;;  %v4296_v41 = vshll.u32 %v5976_v28, %v4290_v25  ;;  %v4299_v22 = vshll.u32 %v5977_v42, %v4290_v25 }
 0x726   : > { %v4302_v44 = vshll.u32 %v5978_v43, %v4290_v25  ;;  %v4305_v32 = vshll.u32 %v5979_v30, %v4290_v25  ;;  %vm4308_vm14 = vcmp.lt.s32.totalorder %v4289_v27, 1  ;;  %vm4309_vm15 = vcmp.lt.s32.totalorder %v4289_v27, 2 }
 0x727   : > { %v4294_v10 = vshrl.u32 %v5976_v28, %v4291_v34  ;;  %v4297_v33 = vshrl.u32 %v5977_v42, %v4291_v34  ;;  %v4300_v36 = vshrl.u32 %v5978_v43, %v4291_v34  ;;  %v4292_v45 = vshrl.u32 %v5975_v38, %v4291_v34 }
 0x728   : > { %v4303_v46 = vshrl.u32 %v5979_v30, %v4291_v34  ;;  %v4306_v48 = vshrl.u32 %v5980_v47, %v4291_v34  ;;  %v4188_v52 = vsub.s32 32, %v4187_v40  ;;  %vm4310_vm0 = vcmp.lt.s32.totalorder %v4289_v27, 3 }
 0x729   : > { %v4295_v49 = vor.u32 %v4294_v10, %v4293_v23  ;;  %v4298_v50 = vor.u32 %v4297_v33, %v4296_v41  ;;  %v4301_v51 = vor.u32 %v4300_v36, %v4299_v22  ;;  %vm4311_vm1 = vcmp.lt.s32.totalorder %v4289_v27, 4 }
 0x72a   : > { %v4304_v53 = vor.u32 %v4303_v46, %v4302_v44  ;;  %v4307_v54 = vor.u32 %v4306_v48, %v4305_v32  ;;  %v4190_v61 = vshll.u32 %v5975_v38, %v4187_v40  ;;  %v4191_v2 = vshrl.u32 %v5976_v28, %v4188_v52 }
 0x72b   : > { %v4312_v55 = vsel %vm4308_vm14, %v4292_v45, %v4295_v49  ;;  %v4313_v56 = vsel %vm4311_vm1, %v4301_v51, 2102212464  ;;  %v4316_v13 = vsel %vm4308_vm14, %v4295_v49, %v4298_v50  ;;  %v4320_v57 = vsel %vm4308_vm14, %v4298_v50, %v4301_v51 }
 0x72c   : > { %v4314_v58 = vsel %vm4310_vm0, %v4298_v50, %v4313_v56  ;;  %v4317_v59 = vsel %vm4311_vm1, %v4304_v53, 920167782  ;;  %v4321_v60 = vsel %vm4311_vm1, %v4307_v54, 1326507024  ;;  %v4193_v5 = vshll.u32 %v5976_v28, %v4187_v40 }
 0x72d   : > { %v4318_v62 = vsel %vm4310_vm0, %v4301_v51, %v4317_v59  ;;  %v4322_v63 = vsel %vm4310_vm0, %v4304_v53, %v4321_v60  ;;  %v4315_v6 = vsel %vm4309_vm15, %v4312_v55, %v4314_v58  ;;  %v4194_v11 = vshrl.u32 %v5977_v42, %v4188_v52 }
 0x72e   : > { %v4319_v7 = vsel %vm4309_vm15, %v4316_v13, %v4318_v62  ;;  %v4323_v8 = vsel %vm4309_vm15, %v4320_v57, %v4322_v63  ;;  %v4192_v19 = vor.u32 %v4191_v2, %v4190_v61  ;;  %v4196_v24 = vshll.u32 %v5977_v42, %v4187_v40 }
 0x72f   : > { %v6464_v17 = vmul.u32.u64.low %v6452_v26, %v4323_v8  ;;  %v6465_v35 = vmul.u32.u64.high %v6452_v26, %v4323_v8, %v6464_v17  ;;  %v6468_v37 = vmul.u32.u64.low %v6452_v26, %v4319_v7  ;;  %v6469_v18 = vmul.u32.u64.high %v6452_v26, %v4319_v7, %v6468_v37 }
 0x730   : > { %v4195_v21 = vor.u32 %v4194_v11, %v4193_v5  ;;  %v4197_v25 = vshrl.u32 %v5978_v43, %v4188_v52  ;;  %v4199_v29 = vshll.u32 %v5978_v43, %v4187_v40  ;;  %v4200_v34 = vshrl.u32 %v5979_v30, %v4188_v52 }
 0x731   : > { %v4203_v23 = vshrl.u32 %v5980_v47, %v4188_v52  ;;  %v4221_v28 = vshll.u32 %v4181_v31, 8  ;;  %v4331_v27 = vmul.u32 %v6452_v26, %v4315_v6  ;;  %v4189_v41 = vshrl.u32 %v5975_v38, %v4188_v52 }
 0x732   : > { %v4198_v22 = vor.u32 %v4197_v25, %v4196_v24  ;;  %v4202_v44 = vshll.u32 %v5979_v30, %v4187_v40  ;;  %vm4333_vm2 = vc.u32 %v6465_v35, %v6468_v37  ;;  %v4334_v32 = vadd.s32 1, %v6469_v18 }
 0x733   : > { %v4201_v10 = vor.u32 %v4200_v34, %v4199_v29  ;;  %vm4205_vm4 = vcmp.lt.s32.totalorder %v6455_v39, 1  ;;  %vm4207_vm5 = vcmp.lt.s32.totalorder %v6455_v39, 3  ;;  %vm4208_vm6 = vcmp.lt.s32.totalorder %v6455_v39, 4 }
 0x734   : > { %v4204_v33 = vor.u32 %v4203_v23, %v4202_v44  ;;  %v4213_v42 = vsel %vm4205_vm4, %v4192_v19, %v4195_v21  ;;  %v4335_v31 = vsel %vm4333_vm2, %v4334_v32, %v6469_v18  ;;  %v4210_v43 = vsel %vm4208_vm6, %v4198_v22, 2102212464 }
 0x735   : > { %v4214_v26 = vsel %vm4208_vm6, %v4201_v10, 920167782  ;;  %v4217_v38 = vsel %vm4205_vm4, %v4195_v21, %v4198_v22  ;;  %v4336_v36 = vadd.s32 %v4335_v31, %v4331_v27  ;;  %vm4206_vm7 = vcmp.lt.s32.totalorder %v6455_v39, 2 }
 0x736   : > { %v4215_v40 = vsel %vm4207_vm5, %v4198_v22, %v4214_v26  ;;  %v4218_v30 = vsel %vm4208_vm6, %v4204_v33, 1326507024  ;;  %v4209_v45 = vsel %vm4205_vm4, %v4189_v41, %v4192_v19  ;;  %v4211_v46 = vsel %vm4207_vm5, %v4195_v21, %v4210_v43 }
 0x737   : > { %v4216_v47 = vsel %vm4206_vm7, %v4213_v42, %v4215_v40  ;;  %v4219_v48 = vsel %vm4207_vm5, %v4201_v10, %v4218_v30  ;;  %v4337_v49 = vadd.s32 536870912, %v4336_v36  ;;  %v4212_v56 = vsel %vm4206_vm7, %v4209_v45, %v4211_v46 }
 0x738   : > { %v4220_v50 = vsel %vm4206_vm7, %v4217_v38, %v4219_v48  ;;  %v6479_v51 = vmul.u32.u64.low %v4221_v28, %v4216_v47  ;;  %v6480_v52 = vmul.u32.u64.high %v4221_v28, %v4216_v47, %v6479_v51  ;;  %v4228_v39 = vmul.u32 %v4221_v28, %v4212_v56 }
 0x739   : > { %v6482_v53 = vmul.u32.u64.low %v4221_v28, %v4220_v50  ;;  %v6483_v54 = vmul.u32.u64.high %v4221_v28, %v4220_v50, %v6482_v53  ;;  %v4338_v55 = vshrl.u32 %v4337_v49, 30  ;;  %v4332_v18 = vadd.s32 %v6468_v37, %v6465_v35 }
 0x73a   : > { %v4231_v57 = vadd.s32 1, %v6480_v52  ;;  %vm6497_vm14 = vcmp.le.f32.partialorder %v4173_v9, 0.7853982  ;;  %vm4368_vm6 = vweird.f32 %v6438_v1 }
 0x73b   : > { %v4339_v13 = vshll.u32 %v4338_v55, 30  ;;  %vm4230_vm8 = vc.u32 %v6483_v54, %v6479_v51  ;;  %v4229_v33 = vadd.s32 %v6479_v51, %v6483_v54  ;;  %v4362_v37 = vsub.s32 4, %v4338_v55 }
 0x73c   : > { %v4232_v59 = vsel %vm4230_vm8, %v4231_v57, %v6480_v52 }
 0x73d   : > { %v4340_v58 = vsub.s32 %v4336_v36, %v4339_v13  ;;  %v4233_v60 = vadd.s32 %v4232_v59, %v4228_v39  ;;  %v4363_v46 = vsel %vm4278_vm11, %v4362_v37, %v4338_v55 }
 0x73e   : > { %v4365_v51 = vsel %vm4277_vm12, 0, %v4363_v46  ;;  %v4587_v46 = vld [vmem:[%s6619_s11] sm:$0xf] }
 0x73f   : > { %v4342_v61 = vsub.s32 0, %v4340_v58  ;;  %v4234_v62 = vadd.s32 536870912, %v4233_v60  ;;  %v4576_v53 = vadd.s32 3, %v4365_v51  ;;  %v4369_v39 = vand.u32 3, %v4365_v51 }
 0x740   : > { %v4618_v51 = vrot.slane %v4587_v46, %v6222_v12 }
 0x741   : > { %v5490_v63 = vmin.u32 %v4342_v61, %v4340_v58  ;;  %v4235_v2 = vshrl.u32 %v4234_v62, 30  ;;  %v4577_v57 = vand.u32 3, %v4576_v53  ;;  %vm4370_vm0 = vcmp.lt.s32.totalorder %v4369_v39, 2 }
 0x742   : > { %vm4374_vm1 = vcmp.eq.s32.totalorder %v4369_v39, 2  ;;  %vm4371_vm4 = vcmp.eq.s32.totalorder %v4369_v39, 0  ;;  %v4712_v39 = vrot.slane %v4587_v46, %v6236_v16 }
 0x743   : > { %v4344_v5 = vclz %v5490_v63  ;;  %v4236_v6 = vshll.u32 %v4235_v2, 30  ;;  %v4259_v55 = vsub.s32 4, %v4235_v2  ;;  %vm4582_vm15 = vcmp.eq.s32.totalorder %v4577_v57, 2 }
 0x744   : > { %vm4579_vm2 = vcmp.eq.s32.totalorder %v4577_v57, 0  ;;  %vm4578_vm5 = vcmp.lt.s32.totalorder %v4577_v57, 2 }
 0x745   : > { %v5491_v7 = vadd.s32 4294967294, %v4344_v5  ;;  %v4237_v8 = vsub.s32 %v4233_v60, %v4236_v6  ;;  %v4260_v61 = vsel %vm4175_vm13, %v4259_v55, %v4235_v2 }
 0x747   : > { %vm5492_vm9 = vcmp.lt.s32.totalorder %v5491_v7, 0  ;;  %v4239_v17 = vsub.s32 0, %v4237_v8 }
 0x748   : > { %v4347_v11 = vsel %vm5492_vm9, 0, %v5491_v7  ;;  %v4262_v7 = vsel %vm6497_vm14, 0, %v4260_v61 }
 0x749   : > { %v4348_v19 = vsub.s32 32, %v4347_v11  ;;  %v4352_v21 = vsub.s32 4294967266, %v4347_v11  ;;  %v5486_v24 = vmin.u32 %v4239_v17, %v4237_v8  ;;  %v4349_v25 = vshll.u32 %v4340_v58, %v4347_v11 }
 0x74b   : > { %v4350_v29 = vshrl.u32 %v4332_v18, %v4348_v19  ;;  %v4353_v34 = vadd.s32 127, %v4352_v21  ;;  %v4241_v23 = vclz %v5486_v24  ;;  %v4266_v18 = vand.u32 3, %v4262_v7 }
 0x74d   : > { %v4351_v28 = vor.u32 %v4350_v29, %v4349_v25  ;;  %v4354_v27 = vshll.u32 %v4353_v34, 23  ;;  %v5487_v41 = vadd.s32 4294967294, %v4241_v23  ;;  %v4472_v25 = vadd.s32 3, %v4262_v7 }
 0x74e   : > { %v5981_v29 = vmov 2   ;;  %v5982_v34 = vmov 1   ;;  %vm4271_vm7 = vcmp.eq.s32.totalorder %v4266_v18, 2  ;;  %vm4268_vm8 = vcmp.eq.s32.totalorder %v4266_v18, 0 }
 0x74f   : > { %v4355_v22 = vor.u32 4788187, %v4354_v27  ;;  %vm5488_vm10 = vcmp.lt.s32.totalorder %v5487_v41, 0  ;;  %v4358_v32 = vcvt.s32.f32 %v4351_v28  ;;  %vm4267_vm9 = vcmp.lt.s32.totalorder %v4266_v18, 2 }
 0x750   : > { %v4244_v10 = vsel %vm5488_vm10, 0, %v5487_v41  ;;  %v4473_v41 = vand.u32 3, %v4472_v25  ;;  %vm4265_vm10 = vweird.f32 %v6440_v3 }
 0x751   : > { %v4356_v44 = vand.u32 2147483647, %v4355_v22  ;;  %v4245_v42 = vsub.s32 32, %v4244_v10  ;;  %v4249_v31 = vsub.s32 4294967266, %v4244_v10  ;;  %v4246_v43 = vshll.u32 %v4237_v8, %v4244_v10 }
 0x753   : > { %v4359_v35 = vmul.f32 %v4358_v32, %v4356_v44  ;;  %v4247_v26 = vshrl.u32 %v4229_v33, %v4245_v42  ;;  %v4250_v38 = vadd.s32 127, %v4249_v31  ;;  %v5983_v42 = vmov 3  }
 0x755   : > { %v4360_v36 = vxor.u32 2147483648, %v4359_v35  ;;  %v4248_v40 = vor.u32 %v4247_v26, %v4246_v43  ;;  %v4251_v30 = vshll.u32 %v4250_v38, 23 }
 0x757   : > { %v4361_v45 = vsel %vm4278_vm11, %v4360_v36, %v4359_v35  ;;  %v4252_v48 = vor.u32 4788187, %v4251_v30  ;;  %v4255_v50 = vcvt.s32.f32 %v4248_v40  ;;  %vm4475_vm11 = vcmp.eq.s32.totalorder %v4473_v41, 0 }
 0x758   : > { %v4364_v47 = vsel %vm4277_vm12, %v6438_v1, %v4361_v45  ;;  %vm4478_vm12 = vcmp.eq.s32.totalorder %v4473_v41, 2 }
 0x759   : > { %5833 = vcosq.f32 %v4364_v47  ;;  %v4253_v49 = vand.u32 2147483647, %v4252_v48  ;;  %v4588_v48 = vsub.f32 1.0, %v4587_v46 }
 0x75a   : > { %5835 = vsinq.f32 %v4364_v47 }
 0x75b   : > { %v4256_v52 = vmul.f32 %v4255_v50, %v4253_v49  ;;  %v4648_v49 = vrot.slane %v4587_v46, %v6233_v15  ;;  %v4602_v56 = vrot.slane %v4588_v48, %v6222_v12 }
 0x75d   : > { %v4257_v54 = vxor.u32 2147483648, %v4256_v52 }
 0x75f   : > { %v4258_v4 = vsel %vm4175_vm13, %v4257_v54, %v4256_v52  ;;  %vm4474_vm13 = vcmp.lt.s32.totalorder %v4473_v41, 2  ;;  %v4634_v52 = vrot.slane %v4588_v48, %v6233_v15  ;;  %v4680_v54 = vrot.slane %v4587_v46, %v6230_v14 }
 0x760   : > { %v4261_v13 = vsel %vm6497_vm14, %v6440_v3, %v4258_v4  ;;  %v4720_v3 = vld [vmem:[%s6620_s12 + $0x8] sm:$0xff]  ;;  %v4666_v4 = vrot.slane %v4588_v48, %v6230_v14  ;;  %vm5985_vm14 = vmmov 0  }
 0x761   : > { %5837 = vcosq.f32 %v4261_v13 }
 0x762   : > { %5839 = vsinq.f32 %v4261_v13 }
 0x763   : > { %v5834_v58 = vpop.eup %5833 }
 0x764   : > { %v5836_v59 = vpop.eup %5835  ;;  %v4375_v60 = vxor.u32 2147483648, %v5834_v58 }
 0x765   : > { %v4372_v62 = vxor.u32 2147483648, %v5836_v59 }
 0x766   : > { %v4584_v9 = vsel %vm4582_vm15, %v4375_v60, %v5836_v59  ;;  %v4376_v63 = vsel %vm4374_vm1, %v4375_v60, %v5836_v59  ;;  %vm4896_vm15 = vcmask 261120  }
 0x767   : > { %v4581_v5 = vsel %vm4579_vm2, %v5834_v58, %v4372_v62  ;;  %v4373_v6 = vsel %vm4371_vm4, %v5834_v58, %v4372_v62  ;;  %v4698_v62 = vrot.slane %v4588_v48, %v6236_v16  ;;  %v4894_v48 = vld [vmem:[%s6622_s14 + $0x18] sm:$0xff] }
 0x768   : > { %v4585_v8 = vsel %vm4578_vm5, %v4581_v5, %v4584_v9  ;;  %v4377_v11 = vsel %vm4370_vm0, %v4373_v6, %v4376_v63 }
 0x769   : > { %v4586_v17 = vsel %vm4368_vm6, nan, %v4585_v8  ;;  %v4378_v2 = vsel %vm4368_vm6, nan, %v4377_v11 }
 0x76a   : > { %4612 = vperm.xlu0 %5769, %v4586_v17   ;;  %4596 = vperm.xlu1 %5770, %v4378_v2  }
 0x76b   : > { %v5838_v19 = vpop.eup %5837 }
 0x76c   : > { %v5840_v21 = vpop.eup %5839  ;;  %v4272_v24 = vxor.u32 2147483648, %v5838_v19 }
 0x76d   : > { %v4269_v23 = vxor.u32 2147483648, %v5840_v21 }
 0x76e   : > { %5773 = vset.pattern.permute.xlu0 %v5981_v29  ;;  %5771 = vset.pattern.permute.xlu1 %v5982_v34  ;;  %v4273_v1 = vsel %vm4271_vm7, %v4272_v24, %v5840_v21  ;;  %v4480_v32 = vsel %vm4478_vm12, %v4272_v24, %v5840_v21 }
 0x76f   : > { %4674 = vperm.xlu0 %5773, %v4586_v17   ;;  %4628 = vperm.xlu1 %5771, %v4378_v2   ;;  %v4270_v28 = vsel %vm4268_vm8, %v5838_v19, %v4269_v23  ;;  %v4477_v44 = vsel %vm4475_vm11, %v5838_v19, %v4269_v23 }
 0x770   : > { %v4274_v27 = vsel %vm4267_vm9, %v4270_v28, %v4273_v1  ;;  %v4481_v10 = vsel %vm4474_vm13, %v4477_v44, %v4480_v32  ;;  %v5984_v32 = vmov 0.0|0.0  }
 0x771   : > { %v4275_v22 = vsel %vm4265_vm10, nan, %v4274_v27  ;;  %v4482_v33 = vsel %vm4265_vm10, nan, %v4481_v10 }
 0x773   : > { %5774 = vset.pattern.permute.xlu0 %v5973_v0  ;;  %4642 = vperm.xlu1 %5771, %v4586_v17  }
 0x774   : > { %4591 = vperm.xlu0 %5774, %v4275_v22  }
 0x777   : > { %5772 = vset.pattern.permute.xlu1 %v5981_v29 }
 0x778   : > { %4660 = vperm.xlu1 %5772, %v4378_v2   ;;  %5776 = vset.pattern.permute.xlu0 %v5982_v34 }
 0x779   : > { %4624 = vperm.xlu0 %5776, %v4275_v22  }
 0x77c   : > { %5775 = vset.pattern.permute.xlu1 %v5973_v0  ;;  %v4719_v0 = vld [vmem:[%s6620_s12] sm:$0xff] }
 0x77d   : > { %4607 = vperm.xlu1 %5775, %v4482_v33   ;;  %5778 = vset.pattern.permute.xlu0 %v5981_v29  ;;  %v5671_v31 = vpack.c.bf16 %v4720_v3, %v4719_v0  ;;  %v4815_v3 = vld [vmem:[%s6621_s13 + $0x8] sm:$0xff] }
 0x77e   : > { %4656 = vperm.xlu0 %5778, %v4275_v22  }
 0x77f   : > { %5672 = vmatprep.subr.bf16.mxu1 %v5671_v31 }
 0x780   : > { %5674 = vmatpush3.bf16.msra.mxu1 %v5671_v31 }
 0x781   : > { %5777 = vset.pattern.permute.xlu1 %v5982_v34  ;;  %5675 = vmatprep.subr.bf16.mxu1 %v5984_v32 }
 0x782   : > { %4638 = vperm.xlu1 %5777, %v4482_v33   ;;  %5781 = vset.pattern.permute.xlu0 %v5983_v42 }
 0x783   : > { %4702 = vperm.xlu0 %5781, %v4482_v33  }
 0x786   : > { %5779 = vset.pattern.permute.xlu1 %v5981_v29 }
 0x787   : > { %4670 = vperm.xlu1 %5779, %v4482_v33  }
 0x78b   : > { %5780 = vset.pattern.permute.xlu1 %v5983_v42 }
 0x78c   : > { %4688 = vperm.xlu1 %5780, %v4275_v22  }
 0x790   : > { %4692 = vperm.xlu1 %5780, %v4378_v2  }
 0x794   : > { %4706 = vperm.xlu1 %5780, %v4586_v17  }
 0x7e9   : > { %v4597_v35 = vpop.permute.xlu1 %4596  ;;  %v4613_v37 = vpop.permute.xlu0 %4612 }
 0x7ea   : > { %v4620_v14 = vmul.f32 %v4618_v51, %v4613_v37  ;;  %v4604_v11 = vmul.f32 %v4602_v56, %v4597_v35  ;;  %v4814_v35 = vld [vmem:[%s6621_s13] sm:$0xff] }
 0x7ec   : > { %v4622_v34 = vadd.f32 %v4620_v14, %v4604_v11 }
 0x7ee   : > { %v4629_v43 = vpop.permute.xlu1 %4628  ;;  %v4675_v26 = vpop.permute.xlu0 %4674 }
 0x7ef   : > { %v4636_v17 = vmul.f32 %v4634_v52, %v4629_v43  ;;  %v4682_v24 = vmul.f32 %v4680_v54, %v4675_v26 }
 0x7f2   : > { %v4643_v38 = vpop.permute.xlu1 %4642 }
 0x7f3   : > { %v4592_v36 = vpop.permute.xlu0 %4591  ;;  %v4650_v6 = vmul.f32 %v4648_v49, %v4643_v38 }
 0x7f4   : > { %v4603_v59 = vmul.f32 %v4602_v56, %v4592_v36 }
 0x7f5   : > { %v4652_v25 = vadd.f32 %v4650_v6, %v4636_v17 }
 0x7f7   : > { %v4661_v40 = vpop.permute.xlu1 %4660  ;;  %v4654_v1 = vmul.f32 %v4652_v25, %v4622_v34 }
 0x7f8   : > { %v4625_v45 = vpop.permute.xlu0 %4624  ;;  %v4668_v2 = vmul.f32 %v4666_v4, %v4661_v40  ;;  %v4891_v40 = vld [vmem:[%s6622_s14] sm:$0xff] }
 0x7f9   : > { %v4635_v55 = vmul.f32 %v4634_v52, %v4625_v45 }
 0x7fa   : > { %v4684_v16 = vadd.f32 %v4682_v24, %v4668_v2 }
 0x7fc   : > { %v4608_v30 = vpop.permute.xlu1 %4607  ;;  %v4686_v41 = vmul.f32 %v4684_v16, %v4654_v1 }
 0x7fd   : > { %v4657_v50 = vpop.permute.xlu0 %4656  ;;  %v4619_v13 = vmul.f32 %v4618_v51, %v4608_v30  ;;  %v4892_v30 = vld [vmem:[%s6622_s14 + $0x8] sm:$0xff] }
 0x7fe   : > { %v4667_v60 = vmul.f32 %v4666_v4, %v4657_v50  ;;  %v5679_v46 = vpack.c.bf16 %v4892_v30, %v4891_v40 }
 0x7ff   : > { %v4621_v15 = vadd.f32 %v4619_v13, %v4603_v59 }
 0x801   : > { %v4639_v47 = vpop.permute.xlu1 %4638 }
 0x802   : > { %v4649_v53 = vmul.f32 %v4648_v49, %v4639_v47  ;;  %v4703_v9 = vpop.permute.xlu0 %4702  ;;  %v4893_v47 = vld [vmem:[%s6622_s14 + $0x10] sm:$0xff]  ;;  %v5987_v49 = vmov 1.0  }
 0x803   : > { %v4713_v12 = vmul.f32 %v4712_v39, %v4703_v9  ;;  %v5682_v50 = vpack.c.bf16 %v4894_v48, %v4893_v47 }
 0x804   : > { %v4651_v61 = vadd.f32 %v4649_v53, %v4635_v55  ;;  %v4895_v53 = vld [vmem:[%s6660_s16] sm:$0x1] }
 0x806   : > { %v4671_v57 = vpop.permute.xlu1 %4670  ;;  %v4653_v7 = vmul.f32 %v4651_v61, %v4621_v15 }
 0x807   : > { %v4681_v58 = vmul.f32 %v4680_v54, %v4671_v57 }
 0x809   : > { %v4683_v63 = vadd.f32 %v4681_v58, %v4667_v60 }
 0x80b   : > { %v4689_v5 = vpop.permute.xlu1 %4688  ;;  %v4685_v18 = vmul.f32 %v4683_v63, %v4653_v7 }
 0x80c   : > { %v4699_v8 = vmul.f32 %v4698_v62, %v4689_v5 }
 0x80e   : > { %v4715_v19 = vadd.f32 %v4713_v12, %v4699_v8 }
 0x80f   : > { %v4693_v21 = vpop.permute.xlu1 %4692 }
 0x810   : > { %v4717_v29 = vmul.f32 %v4715_v19, %v4685_v18  ;;  %v4700_v28 = vmul.f32 %v4698_v62, %v4693_v21 }
 0x812   : > { %5610 = vmatprep.mubr.msk.f32.mxu1 %vm1890_vm3, %v4717_v29 }
 0x813   : > { %v4707_v23 = vpop.permute.xlu1 %4706 }
 0x814   : > { %v4714_v27 = vmul.f32 %v4712_v39, %v4707_v23 }
 0x816   : > { %v4716_v22 = vadd.f32 %v4714_v27, %v4700_v28 }
 0x818   : > { %v4718_v44 = vmul.f32 %v4716_v22, %v4686_v41 }
 0x81a   : > { %5611 = vmatmul.mubr.msk.f32.vlgmr.msra.gmra.mrb[36].mxu1 %vm1890_vm3, %v4718_v44 }
 0x81b   : > { %5617 = vmatprep.mubr.msk.f32.mxu1 %vm5985_vm14, %v5974_v20 }
 0x8ed   : > { %v5612_v10 = vpop.f32.mrb[36].mxu1 }
 0x8ee   : > { %v4803_v33 = vmul.f32 %v5612_v10, %v5612_v10  ;;  %v4793_v42 = vpop.f32.mrb[37].mxu1 }
 0x8ef   : > { %v4802_v0 = vmul.f32 %v4793_v42, %v4793_v42 }
 0x8f0   : > { %4808 = vrot.lane.b32.xlu1 %v4803_v33, %s5986_s20 }
 0x8f1   : > { %4806 = vrot.lane.b32.xlu0 %v4802_v0, %s5986_s20  ;;  %s5903_s20 = scalar_lea.vmem %s5902_s17, 32 }
 0x8f2   : > { %p5905_p7 = scmp.lt.s32.totalorder %s5903_s20, %s5897_s27 }
 0x8f4   : > { %p5906_p8 = por %p5905_p7, %p5904_p4 }
 0x8f6   : > { %p5907_p11 = pnand %p5906_p8, %p5900_p3 }
 0x962   : > { %v4809_v31 = vpop.permute.xlu1 %4808 }
 0x963   : > { %v4813_v37 = vsel %vm1890_vm3, %v4803_v33, %v4809_v31  ;;  %v4807_v43 = vpop.permute.xlu0 %4806 }
 0x964   : > { %v4817_v26 = vmul.f32 %v4815_v3, %v4813_v37  ;;  %v4812_v38 = vsel %vm1890_vm3, %v4802_v0, %v4807_v43 }
 0x965   : > { %v4816_v36 = vmul.f32 %v4814_v35, %v4812_v38 }
 0x967   : > { %v5676_v45 = vpack.c.bf16 %v4817_v26, %v4816_v36 }
 0x969   : > { %5677 = vmatpush3.bf16.msra.mxu1 %v5676_v45 }
 0x96a   : > { %5678 = vmatprep.subr.bf16.mxu1 %v5984_v32 }
 0x96c   : > { %5618 = vmatmul.mubr.msk.f32.vlgmr.msra.gmra.mrb[38].mxu1 %vm1890_vm3, %v5987_v49  ;;  %vm4970_vm3 = vcmask 8192  }
 0x96d   : > { %5680 = vmatpush3.bf16.msra.mxu1 %v5679_v46  ;;  %5628 = vmatprep.mubr.msk.f32.mxu1 %vm5985_vm14, %v5974_v20 }
 0x96e   : > { %5681 = vmatprep.subr.bf16.mxu1 %v5984_v32 }
 0x971   : > { %5683 = vmatpush3.bf16.msra.mxu1 %v5682_v50 }
 0xa3f   : > { %v4887_v51 = vpop.f32.mrb[38].mxu1 }
 0xa40   : > { %v5619_v52 = vpop.f32.mrb[39].mxu1  ;;  %5629 = vmatmul.mubr.msk.f32.vlgmr.msra.gmra.mrb[40].mxu1 %vm4896_vm15, %v4887_v51 }
 0xb13   : > { %v4966_v54 = vpop.f32.mrb[40].mxu1 }
 0xb14   : > { %v4967_v56 = vadd.f32 %v4966_v54, %v4895_v53  ;;  %v5630_v4 = vpop.f32.mrb[41].mxu1 }
 0xb16   : > { %4971 = vst.msk [vmem:[%s541_s18] sm:$0x1] %vm4970_vm3, %v4967_v56 }
 0xb17   : > { %5910 = shalt.err (!%p5907_p11)
}
 0xb18   : > { %s5911_s28 = scalar_lea.hbm %s6566_s21, 16  ;;  %s5915_s0 = scalar_lea.hbm %s6661_s30, 32 }
 0xb19   : > { %p5912_p13 = scmp.ne.s32.totalorder %s6566_s21, %s5911_s28  ;;  %p5916_p6 = scmp.lt.u32.totalorder %s6566_s21, %s6661_s30 }
 0xb1a   : > { %p5917_p9 = scmp.lt.u32.totalorder %s5915_s0, %s5911_s28  ;;  %p5919_p10 = scmp.lt.u32.totalorder %s5911_s28, %s6566_s21 }
 0xb1b   : > { %p5913_p5 = pnand %p5912_p13, %p6662_p1 }
 0xb1c   : > { %p5918_p12 = por %p5917_p9, %p5916_p6 }
 0xb1d   : > { %p5914_p0 = pneg %p5913_p5 }
 0xb1e   : > { %p5920_p2 = por %p5919_p10, %p5918_p12 }
 0xb20   : > { %p5921_p3 = pnand %p5920_p2, %p5914_p0 }
 0xb22   : > { %5924 = shalt.err (!%p5921_p3)
}
 0xb23   : > { %5700 = dma.vmem_to_hbm [thread:$0]  (%p6662_p1), %s6568_s26, 16, %s6566_s21, %s4973_s24  }
 0xb24 PF: > { %s6663_s23 = sld [smem:[#allocation13_spill]]  ;;  %s6664_s27 = sld [smem:[#allocation11_spill]] }
 0xb25   : > { %s6665_s25 = sld [smem:[#allocation17_spill]] }
 0xb2a   : > { %p5717_p4 = scmp.ge.s32.totalorder %s6663_s23, 2  ;;  %s4997_s17 = sand.u32 1, %s6664_s27  }
 0xb2b   : > { %p6666_p7 = scmp.ne.s32.totalorder %s6665_s25, 0  ;;  %s4998_s20 = scalar_lea.sflag [#allocation4], %s4997_s17 }
 0xb2d   : > { %p5710_p8 = pnand %p5717_p4, %p6666_p7 }
 0xb2f   : > { %5950 = dma.done.wait (!%p5710_p8), %s4998_s20, 16  }
 0xb30   : > { %5952 = vsyncadd (!%p5710_p8), %s4998_s20, 4294967280  ;;  %s6667_s24 = sld [smem:[#allocation14_spill]]  ;;  %s6668_s28 = sld [smem:[#allocation12_spill]] }
 0xb31   : > { %s6669_s23 = sld [smem:[#allocation15_spill]]  ;;  %s6670_s21 = smov %s5959_s22 }
 0xb36   : > { %p28_p11 = scmp.ge.s32.totalorder %s6667_s24, 4   ;;  %s6671_s22 = smov %s6668_s28 }
 0xb38   :  { %30 = sbr.rel (!%p28_p11) target bundleno = 9 (0x9), region = 128 }
 0xb3f   :  { %5002 = vsyncpa [#allocation3], 1 }
 0xb40   :  { %5004 = vsyncpa [#allocation3 + $0x1], 1 }
 0xb41   :  { %5005 = vsyncpa [#allocation6], 1 }
 0xb42   :  { %5006 = vsyncpa [#allocation4], 1 }
 0xb43   :  { %5008 = vsyncpa [#allocation4 + $0x1], 1 }

</bundles_post_ra>
